<compile_context>
chip_gen: v5e
topology: v5e:2x2
jax: 0.10.0
libtpu: 0.0.40
codegen_flags: <defaults>
</compile_context>

<pallas_src>
import functools

import jax
import jax.numpy as jnp
from jax.experimental import pallas as pl
from jax.experimental.pallas import tpu as pltpu

LEAKY_SLOPE = 0.2
BN_EPS = 1e-5
_LANE = 128
_TM_PREF = 256          # M tile (output rows)
_TK_PREF = 512          # K tile (kh*kw*Cin)
_VMEM_LIMIT = 48 * 1024 * 1024  # <= v7x 64 MiB physical VMEM, fine on v5e/v6e

_CP_MM = pltpu.CompilerParams(
    dimension_semantics=("parallel", "arbitrary"),
    vmem_limit_bytes=_VMEM_LIMIT,
)
_CP_EW = pltpu.CompilerParams(
    dimension_semantics=("parallel",),
    vmem_limit_bytes=_VMEM_LIMIT,
)


# ----------------------------- small helpers --------------------------------

def _round_up(x, m):
    return ((x + m - 1) // m) * m


def _choose_m_tile(m):
    """Return (tile, padded_dim) for the M axis."""
    if m >= _TM_PREF:
        return _TM_PREF, _round_up(m, _TM_PREF)
    mp = _round_up(m, 16)           # bf16 sublane packing friendly
    return mp, mp


def _choose_k_tile(k):
    """Return (tile, padded_dim) for the K axis."""
    if k >= _TK_PREF:
        return _TK_PREF, _round_up(k, _TK_PREF)
    return k, k                      # small K: single full-dim block (legal)


def _pad_axis(x, axis, target):
    pad = target - x.shape[axis]
    if pad == 0:
        return x
    cfg = [(0, 0)] * x.ndim
    cfg[axis] = (0, pad)
    return jnp.pad(x, cfg)


# ----------------------------- Pallas kernels -------------------------------

def _mm_bias_kernel(a_ref, w_ref, b_ref, o_ref, acc_ref, *, leaky):
    """Tiled y = a @ w + b (optionally fused LeakyReLU); f32 accumulation."""
    k = pl.program_id(1)

    @pl.when(k == 0)
    def _():
        acc_ref[...] = jnp.zeros_like(acc_ref)

    acc_ref[...] += jnp.dot(a_ref[...], w_ref[...],
                            preferred_element_type=jnp.float32)

    @pl.when(k == pl.num_programs(1) - 1)
    def _():
        y = acc_ref[...] + b_ref[...]
        if leaky:
            y = jnp.where(y >= 0, y, LEAKY_SLOPE * y)
        o_ref[...] = y.astype(o_ref.dtype)


def _mm_stats_kernel(a_ref, w_ref, y_ref, sum_ref, sq_ref, acc_ref):
    """Tiled y = a @ w (no bias) + fused per-channel sum / sum-of-squares."""
    k = pl.program_id(1)

    @pl.when(k == 0)
    def _():
        acc_ref[...] = jnp.zeros_like(acc_ref)

    acc_ref[...] += jnp.dot(a_ref[...], w_ref[...],
                            preferred_element_type=jnp.float32)

    @pl.when(k == pl.num_programs(1) - 1)
    def _():
        y = acc_ref[...]
        y_ref[...] = y
        sum_ref[...] = jnp.sum(y, axis=0, keepdims=True)
        sq_ref[...] = jnp.sum(y * y, axis=0, keepdims=True)


def _bn_leaky_kernel(y_ref, scale_ref, offset_ref, o_ref):
    """z = y * scale + offset ; LeakyReLU(z)   (BN affine folded into scale/offset)."""
    z = y_ref[...] * scale_ref[...] + offset_ref[...]
    o_ref[...] = jnp.where(z >= 0, z, LEAKY_SLOPE * z).astype(o_ref.dtype)


# ----------------------------- pallas_call wrappers --------------------------

def matmul_bias_act(a, w, b, *, leaky, out_dtype):
    """a:[M,K] bf16, w:[K,N] bf16, b:[1,N] f32 -> [M,N] out_dtype."""
    M, K = a.shape
    N = w.shape[1]
    TM, Mp = _choose_m_tile(M)
    TK, Kp = _choose_k_tile(K)
    a = _pad_axis(_pad_axis(a, 0, Mp), 1, Kp)
    w = _pad_axis(w, 0, Kp)

    out = pl.pallas_call(
        functools.partial(_mm_bias_kernel, leaky=leaky),
        grid=(Mp // TM, Kp // TK),
        in_specs=[
            pl.BlockSpec((TM, TK), lambda i, k: (i, k)),
            pl.BlockSpec((TK, N), lambda i, k: (k, 0)),
            pl.BlockSpec((1, N), lambda i, k: (0, 0)),
        ],
        out_specs=pl.BlockSpec((TM, N), lambda i, k: (i, 0)),
        out_shape=jax.ShapeDtypeStruct((Mp, N), out_dtype),
        scratch_shapes=[pltpu.VMEM((TM, N), jnp.float32)],
        compiler_params=_CP_MM,
    )(a, w, b)
    return out[:M]


def matmul_stats(a, w):
    """Conv matmul (no bias) + per-M-tile partial channel sums for BatchNorm."""
    M, K = a.shape
    N = w.shape[1]
    TM, Mp = _choose_m_tile(M)
    TK, Kp = _choose_k_tile(K)
    a = _pad_axis(_pad_axis(a, 0, Mp), 1, Kp)   # zero rows -> contribute 0 to stats
    w = _pad_axis(w, 0, Kp)
    n_m = Mp // TM

    y, s, sq = pl.pallas_call(
        _mm_stats_kernel,
        grid=(n_m, Kp // TK),
        in_specs=[
            pl.BlockSpec((TM, TK), lambda i, k: (i, k)),
            pl.BlockSpec((TK, N), lambda i, k: (k, 0)),
        ],
        out_specs=(
            pl.BlockSpec((TM, N), lambda i, k: (i, 0)),
            pl.BlockSpec((1, N), lambda i, k: (i, 0)),
            pl.BlockSpec((1, N), lambda i, k: (i, 0)),
        ),
        out_shape=(
            jax.ShapeDtypeStruct((Mp, N), jnp.float32),
            jax.ShapeDtypeStruct((n_m, N), jnp.float32),
            jax.ShapeDtypeStruct((n_m, N), jnp.float32),
        ),
        scratch_shapes=[pltpu.VMEM((TM, N), jnp.float32)],
        compiler_params=_CP_MM,
    )(a, w)
    return y, s, sq, M, TM


def bn_leaky_apply(y_pad, scale, offset, m_true, tm, out_dtype):
    Mp, N = y_pad.shape
    out = pl.pallas_call(
        _bn_leaky_kernel,
        grid=(Mp // tm,),
        in_specs=[
            pl.BlockSpec((tm, N), lambda i: (i, 0)),
            pl.BlockSpec((1, N), lambda i: (0, 0)),
            pl.BlockSpec((1, N), lambda i: (0, 0)),
        ],
        out_specs=pl.BlockSpec((tm, N), lambda i: (i, 0)),
        out_shape=jax.ShapeDtypeStruct((Mp, N), out_dtype),
        compiler_params=_CP_EW,
    )(y_pad, scale, offset)
    return out[:m_true]


# ----------------------------- conv layers (glue) ---------------------------

def _im2col(x_nhwc, kh, kw, stride, pad):
    """[N*Ho*Wo, kh*kw*Cin] patches; K ordered (kh, kw, cin). Pure data movement."""
    N, H, W, C = x_nhwc.shape
    xp = jnp.pad(x_nhwc, ((0, 0), (pad, pad), (pad, pad), (0, 0)))
    Ho = (H + 2 * pad - kh) // stride + 1
    Wo = (W + 2 * pad - kw) // stride + 1
    cols = []
    for i in range(kh):
        for j in range(kw):
            cols.append(xp[:, i:i + stride * Ho:stride, j:j + stride * Wo:stride, :])
    patches = jnp.concatenate(cols, axis=-1)                 # [N, Ho, Wo, kh*kw*C]
    return patches.reshape(N * Ho * Wo, kh * kw * C), N, Ho, Wo


def _weight_to_mat(w_oihw):
    """PyTorch OIHW -> [KH*KW*Cin, Cout] matching the im2col K ordering."""
    cout = w_oihw.shape[0]
    return jnp.transpose(w_oihw, (2, 3, 1, 0)).reshape(-1, cout)


def conv2d_bias_act(x_nhwc, w_oihw, b, *, stride, pad, leaky, out_dtype):
    kh, kw = w_oihw.shape[2], w_oihw.shape[3]
    cout = w_oihw.shape[0]
    patches, n, ho, wo = _im2col(x_nhwc.astype(jnp.bfloat16), kh, kw, stride, pad)
    wm = _weight_to_mat(w_oihw).astype(jnp.bfloat16)
    y = matmul_bias_act(patches, wm, b.reshape(1, cout).astype(jnp.float32),
                        leaky=leaky, out_dtype=out_dtype)
    return y.reshape(n, ho, wo, cout)


def conv2d_bn_leaky(x_nhwc, w_oihw, gamma, beta, *, stride, pad):
    kh, kw = w_oihw.shape[2], w_oihw.shape[3]
    cout = w_oihw.shape[0]
    patches, n, ho, wo = _im2col(x_nhwc.astype(jnp.bfloat16), kh, kw, stride, pad)
    wm = _weight_to_mat(w_oihw).astype(jnp.bfloat16)

    y_pad, s_parts, sq_parts, m_true, tm = matmul_stats(patches, wm)

    # tiny (Cout,) scalar math: batch mean / biased var (training-mode BN)
    s = jnp.sum(s_parts, axis=0)
    sq = jnp.sum(sq_parts, axis=0)
    mean = s / m_true
    var = jnp.maximum(sq / m_true - mean * mean, 0.0)        # clamp cancellation
    scale = gamma * jax.lax.rsqrt(var + BN_EPS)
    offset = beta - mean * scale

    z = bn_leaky_apply(y_pad, scale.reshape(1, cout), offset.reshape(1, cout),
                       m_true, tm, jnp.bfloat16)
    return z.reshape(n, ho, wo, cout)


def conv2d_final(x_nhwc, w_oihw, b):
    """Final Conv2d(nf*8, 1, 4, 1, 1): pad Cout 1 -> 128 for lane-dense stores."""
    cout = w_oihw.shape[0]
    cpad = _round_up(cout, _LANE)
    w_pad = jnp.pad(w_oihw, ((0, cpad - cout), (0, 0), (0, 0), (0, 0)))
    b_pad = jnp.pad(b, (0, cpad - cout))
    y = conv2d_bias_act(x_nhwc, w_pad, b_pad, stride=1, pad=1,
                        leaky=False, out_dtype=jnp.float32)
    return y[..., :cout]


# ----------------------------- Discriminator --------------------------------

def init_discriminator_params(key, pred_channels=1, num_filters_last=64, n_layers=3):
    keys = jax.random.split(key, 2 + 3 * n_layers + 2)
    ki = 0

    def conv_w(k, cout, cin, kh=4, kw=4):
        return 0.02 * jax.random.normal(k, (cout, cin, kh, kw), jnp.float32)

    params = {}
    params["w0"] = conv_w(keys[ki], num_filters_last, pred_channels); ki += 1
    params["b0"] = 0.01 * jax.random.normal(keys[ki], (num_filters_last,), jnp.float32); ki += 1

    params["bn_layers"] = []
    mult = 1
    for i in range(1, n_layers + 1):
        mult_last = mult
        mult = min(2 ** i, 8)
        cin = num_filters_last * mult_last
        cout = num_filters_last * mult
        w = conv_w(keys[ki], cout, cin); ki += 1
        gamma = 1.0 + 0.1 * jax.random.normal(keys[ki], (cout,), jnp.float32); ki += 1
        beta = 0.1 * jax.random.normal(keys[ki], (cout,), jnp.float32); ki += 1
        params["bn_layers"].append({"w": w, "gamma": gamma, "beta": beta})

    params["wf"] = conv_w(keys[ki], 1, num_filters_last * mult); ki += 1
    params["bf"] = 0.01 * jax.random.normal(keys[ki], (1,), jnp.float32)
    return params


def discriminator_forward(params, x_nchw, n_layers=3):
    # external layout NCHW (PyTorch); internally NHWC for the kernels.
    x = jnp.transpose(x_nchw, (0, 2, 3, 1))

    # Conv2d(pred_channels, nf, 4, 2, 1) + LeakyReLU(0.2), fused.
    x = conv2d_bias_act(x, params["w0"], params["b0"], stride=2, pad=1,
                        leaky=True, out_dtype=jnp.bfloat16)

    # n_layers of Conv2d(..., 4, stride, 1, bias=False) + BatchNorm2d + LeakyReLU.
    for i, layer in enumerate(params["bn_layers"], start=1):
        stride = 2 if i < n_layers else 1
        x = conv2d_bn_leaky(x, layer["w"], layer["gamma"], layer["beta"],
                            stride=stride, pad=1)

    # Final Conv2d(nf*mult, 1, 4, 1, 1), no activation.
    x = conv2d_final(x, params["wf"], params["bf"])

    return jnp.transpose(x, (0, 3, 1, 2)).astype(jnp.float32)  # back to NCHW


if __name__ == "__main__":
    key = jax.random.PRNGKey(0)
    pkey, xkey = jax.random.split(key)

    params = init_discriminator_params(pkey, pred_channels=1,
                                       num_filters_last=64, n_layers=3)
    # 32x32 is the smallest spatial size for which the PatchGAN stack
    # (16 -> 8 -> 4 -> 3 -> 2) stays valid.
    x = jax.random.normal(xkey, (2, 1, 32, 32), jnp.float32)  # NCHW

    fwd = jax.jit(discriminator_forward)
    out = jax.block_until_ready(fwd(params, x))
    assert out.shape == (2, 1, 2, 2), out.shape
    print("KERNEL_OK")
</pallas_src>

<mosaic_0001>
module attributes {stable_mosaic.version = 11 : i64} {
  func.func @_mm_bias_kernel(%arg0: i32, %arg1: i32, %arg2: memref<256x16xbf16, #tpu.memory_space<vmem>>, %arg3: memref<16x64xbf16, #tpu.memory_space<vmem>>, %arg4: memref<1x64xf32, #tpu.memory_space<vmem>>, %arg5: memref<256x64xbf16, #tpu.memory_space<vmem>>, %arg6: memref<256x64xf32, #tpu.memory_space<vmem>>) attributes {dimension_semantics = [#tpu.dimension_semantics<parallel>, #tpu.dimension_semantics<arbitrary>], iteration_bounds = array<i64: 2, 1>, scalar_prefetch = 0 : i64, scratch_operands = 1 : i64, tpu.core_type = #tpu.core_type<tc>, window_params = [{transform_indices = @transform_0, window_bounds = array<i64: 256, 16>}, {transform_indices = @transform_1, window_bounds = array<i64: 16, 64>}, {pipeline_mode = #tpu.pipeline_mode<synchronous>, transform_indices = @transform_2, window_bounds = array<i64: 1, 64>}, {transform_indices = @transform_3, window_bounds = array<i64: 256, 64>}]} {
    %c0_i32 = arith.constant 0 : i32
    %0 = arith.cmpi eq, %arg1, %c0_i32 : i32
    %1 = arith.extui %0 : i1 to i32
    %c0_i32_0 = arith.constant 0 : i32
    %2 = arith.cmpi ne, %1, %c0_i32_0 : i32
    scf.if %2 {
      %cst_10 = arith.constant 0.000000e+00 : f32
      %12 = vector.broadcast %cst_10 : f32 to vector<256x64xf32>
      %c0_11 = arith.constant 0 : index
      %c0_12 = arith.constant 0 : index
      %13 = vector.load %arg6[%c0_11, %c0_12] : memref<256x64xf32, #tpu.memory_space<vmem>>, vector<256x64xf32>
      tpu.vector_store %arg6[%c0_11, %c0_12], %12 {strides = array<i32>} : memref<256x64xf32, #tpu.memory_space<vmem>>, vector<256x64xf32>,
    } else {
    }
    %c0 = arith.constant 0 : index
    %c0_1 = arith.constant 0 : index
    %3 = vector.load %arg6[%c0, %c0_1] : memref<256x64xf32, #tpu.memory_space<vmem>>, vector<256x64xf32>
    %c0_2 = arith.constant 0 : index
    %c0_3 = arith.constant 0 : index
    %4 = vector.load %arg2[%c0_2, %c0_3] : memref<256x16xbf16, #tpu.memory_space<vmem>>, vector<256x16xbf16>
    %c0_4 = arith.constant 0 : index
    %c0_5 = arith.constant 0 : index
    %5 = vector.load %arg3[%c0_4, %c0_5] : memref<16x64xbf16, #tpu.memory_space<vmem>>, vector<16x64xbf16>
    %cst = arith.constant dense<0.000000e+00> : vector<256x64xf32>
    %6 = tpu.matmul %4, %5, %cst {dimension_numbers = #tpu.dot_dimension_numbers<[1], [0], [0], [1], [0, 0, 1, 1], [], []>} : vector<256x16xbf16>, vector<16x64xbf16>, vector<256x64xf32> -> vector<256x64xf32>
    %7 = arith.addf %3, %6 : vector<256x64xf32>
    %c0_6 = arith.constant 0 : index
    %c0_7 = arith.constant 0 : index
    %8 = vector.load %arg6[%c0_6, %c0_7] : memref<256x64xf32, #tpu.memory_space<vmem>>, vector<256x64xf32>
    tpu.vector_store %arg6[%c0_6, %c0_7], %7 {strides = array<i32>} : memref<256x64xf32, #tpu.memory_space<vmem>>, vector<256x64xf32>,
    %c0_i32_8 = arith.constant 0 : i32
    %9 = arith.cmpi eq, %arg1, %c0_i32_8 : i32
    %10 = arith.extui %9 : i1 to i32
    %c0_i32_9 = arith.constant 0 : i32
    %11 = arith.cmpi ne, %10, %c0_i32_9 : i32
    scf.if %11 {
      %c0_10 = arith.constant 0 : index
      %c0_11 = arith.constant 0 : index
      %12 = vector.load %arg6[%c0_10, %c0_11] : memref<256x64xf32, #tpu.memory_space<vmem>>, vector<256x64xf32>
      %c0_12 = arith.constant 0 : index
      %c0_13 = arith.constant 0 : index
      %13 = vector.load %arg4[%c0_12, %c0_13] : memref<1x64xf32, #tpu.memory_space<vmem>>, vector<1x64xf32>
      %14 = vector.broadcast %13 : vector<1x64xf32> to vector<256x64xf32>
      %15 = arith.addf %12, %14 : vector<256x64xf32>
      %cst_14 = arith.constant 0.000000e+00 : f32
      %16 = vector.broadcast %cst_14 : f32 to vector<256x64xf32>
      %17 = arith.cmpf oge, %15, %16 : vector<256x64xf32>
      %cst_15 = arith.constant 2.000000e-01 : f32
      %18 = vector.broadcast %cst_15 : f32 to vector<256x64xf32>
      %19 = arith.mulf %18, %15 : vector<256x64xf32>
      %20 = arith.select %17, %15, %19 : vector<256x64xi1>, vector<256x64xf32>
      %21 = arith.truncf %20 : vector<256x64xf32> to vector<256x64xbf16>
      %c0_16 = arith.constant 0 : index
      %c0_17 = arith.constant 0 : index
      %22 = vector.load %arg5[%c0_16, %c0_17] : memref<256x64xbf16, #tpu.memory_space<vmem>>, vector<256x64xbf16>
      tpu.vector_store %arg5[%c0_16, %c0_17], %21 {strides = array<i32>} : memref<256x64xbf16, #tpu.memory_space<vmem>>, vector<256x64xbf16>,
    } else {
    }
    return
  }
  func.func @transform_0(%arg0: i32, %arg1: i32) -> (i32, i32) {
    %c0_i32 = arith.constant 0 : i32
    return %arg0, %arg1 : i32, i32
  }
  func.func @transform_1(%arg0: i32, %arg1: i32) -> (i32, i32) {
    %c0_i32 = arith.constant 0 : i32
    %c0_i32_0 = arith.constant 0 : i32
    return %arg1, %c0_i32 : i32, i32
  }
  func.func @transform_2(%arg0: i32, %arg1: i32) -> (i32, i32) {
    %c0_i32 = arith.constant 0 : i32
    %c0_i32_0 = arith.constant 0 : i32
    %c0_i32_1 = arith.constant 0 : i32
    return %c0_i32, %c0_i32_0 : i32, i32
  }
  func.func @transform_3(%arg0: i32, %arg1: i32) -> (i32, i32) {
    %c0_i32 = arith.constant 0 : i32
    %c0_i32_0 = arith.constant 0 : i32
    return %arg0, %c0_i32 : i32, i32
  }
}

module attributes {stable_mosaic.version = 11 : i64} {
  func.func @_mm_stats_kernel(%arg0: i32, %arg1: i32, %arg2: memref<128x512xbf16, #tpu.memory_space<vmem>>, %arg3: memref<512x128xbf16, #tpu.memory_space<vmem>>, %arg4: memref<128x128xf32, #tpu.memory_space<vmem>>, %arg5: memref<1x128xf32, #tpu.memory_space<vmem>>, %arg6: memref<1x128xf32, #tpu.memory_space<vmem>>, %arg7: memref<128x128xf32, #tpu.memory_space<vmem>>) attributes {dimension_semantics = [#tpu.dimension_semantics<parallel>, #tpu.dimension_semantics<arbitrary>], iteration_bounds = array<i64: 1, 2>, scalar_prefetch = 0 : i64, scratch_operands = 1 : i64, tpu.core_type = #tpu.core_type<tc>, window_params = [{transform_indices = @transform_0, window_bounds = array<i64: 128, 512>}, {transform_indices = @transform_1, window_bounds = array<i64: 512, 128>}, {transform_indices = @transform_2, window_bounds = array<i64: 128, 128>}, {transform_indices = @transform_3, window_bounds = array<i64: 1, 128>}, {transform_indices = @transform_4, window_bounds = array<i64: 1, 128>}]} {
    %c0_i32 = arith.constant 0 : i32
    %0 = arith.cmpi eq, %arg1, %c0_i32 : i32
    %1 = arith.extui %0 : i1 to i32
    %c0_i32_0 = arith.constant 0 : i32
    %2 = arith.cmpi ne, %1, %c0_i32_0 : i32
    scf.if %2 {
      %cst_9 = arith.constant 0.000000e+00 : f32
      %12 = vector.broadcast %cst_9 : f32 to vector<128x128xf32>
      %c0_10 = arith.constant 0 : index
      %c0_11 = arith.constant 0 : index
      %13 = vector.load %arg7[%c0_10, %c0_11] : memref<128x128xf32, #tpu.memory_space<vmem>>, vector<128x128xf32>
      tpu.vector_store %arg7[%c0_10, %c0_11], %12 {strides = array<i32>} : memref<128x128xf32, #tpu.memory_space<vmem>>, vector<128x128xf32>,
    } else {
    }
    %c0 = arith.constant 0 : index
    %c0_1 = arith.constant 0 : index
    %3 = vector.load %arg7[%c0, %c0_1] : memref<128x128xf32, #tpu.memory_space<vmem>>, vector<128x128xf32>
    %c0_2 = arith.constant 0 : index
    %c0_3 = arith.constant 0 : index
    %4 = vector.load %arg2[%c0_2, %c0_3] : memref<128x512xbf16, #tpu.memory_space<vmem>>, vector<128x512xbf16>
    %c0_4 = arith.constant 0 : index
    %c0_5 = arith.constant 0 : index
    %5 = vector.load %arg3[%c0_4, %c0_5] : memref<512x128xbf16, #tpu.memory_space<vmem>>, vector<512x128xbf16>
    %cst = arith.constant dense<0.000000e+00> : vector<128x128xf32>
    %6 = tpu.matmul %4, %5, %cst {dimension_numbers = #tpu.dot_dimension_numbers<[1], [0], [0], [1], [0, 0, 1, 1], [], []>} : vector<128x512xbf16>, vector<512x128xbf16>, vector<128x128xf32> -> vector<128x128xf32>
    %7 = arith.addf %3, %6 : vector<128x128xf32>
    %c0_6 = arith.constant 0 : index
    %c0_7 = arith.constant 0 : index
    %8 = vector.load %arg7[%c0_6, %c0_7] : memref<128x128xf32, #tpu.memory_space<vmem>>, vector<128x128xf32>
    tpu.vector_store %arg7[%c0_6, %c0_7], %7 {strides = array<i32>} : memref<128x128xf32, #tpu.memory_space<vmem>>, vector<128x128xf32>,
    %c1_i32 = arith.constant 1 : i32
    %9 = arith.cmpi eq, %arg1, %c1_i32 : i32
    %10 = arith.extui %9 : i1 to i32
    %c0_i32_8 = arith.constant 0 : i32
    %11 = arith.cmpi ne, %10, %c0_i32_8 : i32
    scf.if %11 {
      %c0_9 = arith.constant 0 : index
      %c0_10 = arith.constant 0 : index
      %12 = vector.load %arg7[%c0_9, %c0_10] : memref<128x128xf32, #tpu.memory_space<vmem>>, vector<128x128xf32>
      %c0_11 = arith.constant 0 : index
      %c0_12 = arith.constant 0 : index
      %13 = vector.load %arg4[%c0_11, %c0_12] : memref<128x128xf32, #tpu.memory_space<vmem>>, vector<128x128xf32>
      tpu.vector_store %arg4[%c0_11, %c0_12], %12 {strides = array<i32>} : memref<128x128xf32, #tpu.memory_space<vmem>>, vector<128x128xf32>,
      %cst_13 = arith.constant dense<0.000000e+00> : vector<128xf32>
      %14 = vector.multi_reduction <add>, %12, %cst_13 [0] : vector<128x128xf32> to vector<128xf32>
      %15 = vector.shape_cast %14 : vector<128xf32> to vector<1x128xf32>
      %c0_14 = arith.constant 0 : index
      %c0_15 = arith.constant 0 : index
      %16 = vector.load %arg5[%c0_14, %c0_15] : memref<1x128xf32, #tpu.memory_space<vmem>>, vector<1x128xf32>
      tpu.vector_store %arg5[%c0_14, %c0_15], %15 {strides = array<i32>} : memref<1x128xf32, #tpu.memory_space<vmem>>, vector<1x128xf32>,
      %17 = arith.mulf %12, %12 : vector<128x128xf32>
      %cst_16 = arith.constant dense<0.000000e+00> : vector<128xf32>
      %18 = vector.multi_reduction <add>, %17, %cst_16 [0] : vector<128x128xf32> to vector<128xf32>
      %19 = vector.shape_cast %18 : vector<128xf32> to vector<1x128xf32>
      %c0_17 = arith.constant 0 : index
      %c0_18 = arith.constant 0 : index
      %20 = vector.load %arg6[%c0_17, %c0_18] : memref<1x128xf32, #tpu.memory_space<vmem>>, vector<1x128xf32>
      tpu.vector_store %arg6[%c0_17, %c0_18], %19 {strides = array<i32>} : memref<1x128xf32, #tpu.memory_space<vmem>>, vector<1x128xf32>,
    } else {
    }
    return
  }
  func.func @transform_0(%arg0: i32, %arg1: i32) -> (i32, i32) {
    %c0_i32 = arith.constant 0 : i32
    return %arg0, %arg1 : i32, i32
  }
  func.func @transform_1(%arg0: i32, %arg1: i32) -> (i32, i32) {
    %c0_i32 = arith.constant 0 : i32
    %c0_i32_0 = arith.constant 0 : i32
    return %arg1, %c0_i32 : i32, i32
  }
  func.func @transform_2(%arg0: i32, %arg1: i32) -> (i32, i32) {
    %c0_i32 = arith.constant 0 : i32
    %c0_i32_0 = arith.constant 0 : i32
    return %arg0, %c0_i32 : i32, i32
  }
  func.func @transform_3(%arg0: i32, %arg1: i32) -> (i32, i32) {
    %c0_i32 = arith.constant 0 : i32
    %c0_i32_0 = arith.constant 0 : i32
    return %arg0, %c0_i32 : i32, i32
  }
  func.func @transform_4(%arg0: i32, %arg1: i32) -> (i32, i32) {
    %c0_i32 = arith.constant 0 : i32
    %c0_i32_0 = arith.constant 0 : i32
    return %arg0, %c0_i32 : i32, i32
  }
}

module attributes {stable_mosaic.version = 11 : i64} {
  func.func @_bn_leaky_kernel(%arg0: i32, %arg1: memref<128x128xf32, #tpu.memory_space<vmem>>, %arg2: memref<1x128xf32, #tpu.memory_space<vmem>>, %arg3: memref<1x128xf32, #tpu.memory_space<vmem>>, %arg4: memref<128x128xbf16, #tpu.memory_space<vmem>>) attributes {dimension_semantics = [#tpu.dimension_semantics<parallel>], iteration_bounds = array<i64: 1>, scalar_prefetch = 0 : i64, scratch_operands = 0 : i64, tpu.core_type = #tpu.core_type<tc>, window_params = [{transform_indices = @transform_0, window_bounds = array<i64: 128, 128>}, {pipeline_mode = #tpu.pipeline_mode<synchronous>, transform_indices = @transform_1, window_bounds = array<i64: 1, 128>}, {pipeline_mode = #tpu.pipeline_mode<synchronous>, transform_indices = @transform_2, window_bounds = array<i64: 1, 128>}, {transform_indices = @transform_3, window_bounds = array<i64: 128, 128>}]} {
    %c0 = arith.constant 0 : index
    %c0_0 = arith.constant 0 : index
    %0 = vector.load %arg1[%c0, %c0_0] : memref<128x128xf32, #tpu.memory_space<vmem>>, vector<128x128xf32>
    %c0_1 = arith.constant 0 : index
    %c0_2 = arith.constant 0 : index
    %1 = vector.load %arg2[%c0_1, %c0_2] : memref<1x128xf32, #tpu.memory_space<vmem>>, vector<1x128xf32>
    %2 = vector.broadcast %1 : vector<1x128xf32> to vector<128x128xf32>
    %3 = arith.mulf %0, %2 : vector<128x128xf32>
    %c0_3 = arith.constant 0 : index
    %c0_4 = arith.constant 0 : index
    %4 = vector.load %arg3[%c0_3, %c0_4] : memref<1x128xf32, #tpu.memory_space<vmem>>, vector<1x128xf32>
    %5 = vector.broadcast %4 : vector<1x128xf32> to vector<128x128xf32>
    %6 = arith.addf %3, %5 : vector<128x128xf32>
    %cst = arith.constant 0.000000e+00 : f32
    %7 = vector.broadcast %cst : f32 to vector<128x128xf32>
    %8 = arith.cmpf oge, %6, %7 : vector<128x128xf32>
    %cst_5 = arith.constant 2.000000e-01 : f32
    %9 = vector.broadcast %cst_5 : f32 to vector<128x128xf32>
    %10 = arith.mulf %9, %6 : vector<128x128xf32>
    %11 = arith.select %8, %6, %10 : vector<128x128xi1>, vector<128x128xf32>
    %12 = arith.truncf %11 : vector<128x128xf32> to vector<128x128xbf16>
    %c0_6 = arith.constant 0 : index
    %c0_7 = arith.constant 0 : index
    %13 = vector.load %arg4[%c0_6, %c0_7] : memref<128x128xbf16, #tpu.memory_space<vmem>>, vector<128x128xbf16>
    tpu.vector_store %arg4[%c0_6, %c0_7], %12 {strides = array<i32>} : memref<128x128xbf16, #tpu.memory_space<vmem>>, vector<128x128xbf16>,
    return
  }
  func.func @transform_0(%arg0: i32) -> (i32, i32) {
    %c0_i32 = arith.constant 0 : i32
    %c0_i32_0 = arith.constant 0 : i32
    return %arg0, %c0_i32 : i32, i32
  }
  func.func @transform_1(%arg0: i32) -> (i32, i32) {
    %c0_i32 = arith.constant 0 : i32
    %c0_i32_0 = arith.constant 0 : i32
    %c0_i32_1 = arith.constant 0 : i32
    return %c0_i32, %c0_i32_0 : i32, i32
  }
  func.func @transform_2(%arg0: i32) -> (i32, i32) {
    %c0_i32 = arith.constant 0 : i32
    %c0_i32_0 = arith.constant 0 : i32
    %c0_i32_1 = arith.constant 0 : i32
    return %c0_i32, %c0_i32_0 : i32, i32
  }
  func.func @transform_3(%arg0: i32) -> (i32, i32) {
    %c0_i32 = arith.constant 0 : i32
    %c0_i32_0 = arith.constant 0 : i32
    return %arg0, %c0_i32 : i32, i32
  }
}

module attributes {stable_mosaic.version = 11 : i64} {
  func.func @_mm_stats_kernel(%arg0: i32, %arg1: i32, %arg2: memref<32x512xbf16, #tpu.memory_space<vmem>>, %arg3: memref<512x256xbf16, #tpu.memory_space<vmem>>, %arg4: memref<32x256xf32, #tpu.memory_space<vmem>>, %arg5: memref<1x256xf32, #tpu.memory_space<vmem>>, %arg6: memref<1x256xf32, #tpu.memory_space<vmem>>, %arg7: memref<32x256xf32, #tpu.memory_space<vmem>>) attributes {dimension_semantics = [#tpu.dimension_semantics<parallel>, #tpu.dimension_semantics<arbitrary>], iteration_bounds = array<i64: 1, 4>, scalar_prefetch = 0 : i64, scratch_operands = 1 : i64, tpu.core_type = #tpu.core_type<tc>, window_params = [{transform_indices = @transform_0, window_bounds = array<i64: 32, 512>}, {transform_indices = @transform_1, window_bounds = array<i64: 512, 256>}, {transform_indices = @transform_2, window_bounds = array<i64: 32, 256>}, {transform_indices = @transform_3, window_bounds = array<i64: 1, 256>}, {transform_indices = @transform_4, window_bounds = array<i64: 1, 256>}]} {
    %c0_i32 = arith.constant 0 : i32
    %0 = arith.cmpi eq, %arg1, %c0_i32 : i32
    %1 = arith.extui %0 : i1 to i32
    %c0_i32_0 = arith.constant 0 : i32
    %2 = arith.cmpi ne, %1, %c0_i32_0 : i32
    scf.if %2 {
      %cst_9 = arith.constant 0.000000e+00 : f32
      %12 = vector.broadcast %cst_9 : f32 to vector<32x256xf32>
      %c0_10 = arith.constant 0 : index
      %c0_11 = arith.constant 0 : index
      %13 = vector.load %arg7[%c0_10, %c0_11] : memref<32x256xf32, #tpu.memory_space<vmem>>, vector<32x256xf32>
      tpu.vector_store %arg7[%c0_10, %c0_11], %12 {strides = array<i32>} : memref<32x256xf32, #tpu.memory_space<vmem>>, vector<32x256xf32>,
    } else {
    }
    %c0 = arith.constant 0 : index
    %c0_1 = arith.constant 0 : index
    %3 = vector.load %arg7[%c0, %c0_1] : memref<32x256xf32, #tpu.memory_space<vmem>>, vector<32x256xf32>
    %c0_2 = arith.constant 0 : index
    %c0_3 = arith.constant 0 : index
    %4 = vector.load %arg2[%c0_2, %c0_3] : memref<32x512xbf16, #tpu.memory_space<vmem>>, vector<32x512xbf16>
    %c0_4 = arith.constant 0 : index
    %c0_5 = arith.constant 0 : index
    %5 = vector.load %arg3[%c0_4, %c0_5] : memref<512x256xbf16, #tpu.memory_space<vmem>>, vector<512x256xbf16>
    %cst = arith.constant dense<0.000000e+00> : vector<32x256xf32>
    %6 = tpu.matmul %4, %5, %cst {dimension_numbers = #tpu.dot_dimension_numbers<[1], [0], [0], [1], [0, 0, 1, 1], [], []>} : vector<32x512xbf16>, vector<512x256xbf16>, vector<32x256xf32> -> vector<32x256xf32>
    %7 = arith.addf %3, %6 : vector<32x256xf32>
    %c0_6 = arith.constant 0 : index
    %c0_7 = arith.constant 0 : index
    %8 = vector.load %arg7[%c0_6, %c0_7] : memref<32x256xf32, #tpu.memory_space<vmem>>, vector<32x256xf32>
    tpu.vector_store %arg7[%c0_6, %c0_7], %7 {strides = array<i32>} : memref<32x256xf32, #tpu.memory_space<vmem>>, vector<32x256xf32>,
    %c3_i32 = arith.constant 3 : i32
    %9 = arith.cmpi eq, %arg1, %c3_i32 : i32
    %10 = arith.extui %9 : i1 to i32
    %c0_i32_8 = arith.constant 0 : i32
    %11 = arith.cmpi ne, %10, %c0_i32_8 : i32
    scf.if %11 {
      %c0_9 = arith.constant 0 : index
      %c0_10 = arith.constant 0 : index
      %12 = vector.load %arg7[%c0_9, %c0_10] : memref<32x256xf32, #tpu.memory_space<vmem>>, vector<32x256xf32>
      %c0_11 = arith.constant 0 : index
      %c0_12 = arith.constant 0 : index
      %13 = vector.load %arg4[%c0_11, %c0_12] : memref<32x256xf32, #tpu.memory_space<vmem>>, vector<32x256xf32>
      tpu.vector_store %arg4[%c0_11, %c0_12], %12 {strides = array<i32>} : memref<32x256xf32, #tpu.memory_space<vmem>>, vector<32x256xf32>,
      %cst_13 = arith.constant dense<0.000000e+00> : vector<256xf32>
      %14 = vector.multi_reduction <add>, %12, %cst_13 [0] : vector<32x256xf32> to vector<256xf32>
      %15 = vector.shape_cast %14 : vector<256xf32> to vector<1x256xf32>
      %c0_14 = arith.constant 0 : index
      %c0_15 = arith.constant 0 : index
      %16 = vector.load %arg5[%c0_14, %c0_15] : memref<1x256xf32, #tpu.memory_space<vmem>>, vector<1x256xf32>
      tpu.vector_store %arg5[%c0_14, %c0_15], %15 {strides = array<i32>} : memref<1x256xf32, #tpu.memory_space<vmem>>, vector<1x256xf32>,
      %17 = arith.mulf %12, %12 : vector<32x256xf32>
      %cst_16 = arith.constant dense<0.000000e+00> : vector<256xf32>
      %18 = vector.multi_reduction <add>, %17, %cst_16 [0] : vector<32x256xf32> to vector<256xf32>
      %19 = vector.shape_cast %18 : vector<256xf32> to vector<1x256xf32>
      %c0_17 = arith.constant 0 : index
      %c0_18 = arith.constant 0 : index
      %20 = vector.load %arg6[%c0_17, %c0_18] : memref<1x256xf32, #tpu.memory_space<vmem>>, vector<1x256xf32>
      tpu.vector_store %arg6[%c0_17, %c0_18], %19 {strides = array<i32>} : memref<1x256xf32, #tpu.memory_space<vmem>>, vector<1x256xf32>,
    } else {
    }
    return
  }
  func.func @transform_0(%arg0: i32, %arg1: i32) -> (i32, i32) {
    %c0_i32 = arith.constant 0 : i32
    return %arg0, %arg1 : i32, i32
  }
  func.func @transform_1(%arg0: i32, %arg1: i32) -> (i32, i32) {
    %c0_i32 = arith.constant 0 : i32
    %c0_i32_0 = arith.constant 0 : i32
    return %arg1, %c0_i32 : i32, i32
  }
  func.func @transform_2(%arg0: i32, %arg1: i32) -> (i32, i32) {
    %c0_i32 = arith.constant 0 : i32
    %c0_i32_0 = arith.constant 0 : i32
    return %arg0, %c0_i32 : i32, i32
  }
  func.func @transform_3(%arg0: i32, %arg1: i32) -> (i32, i32) {
    %c0_i32 = arith.constant 0 : i32
    %c0_i32_0 = arith.constant 0 : i32
    return %arg0, %c0_i32 : i32, i32
  }
  func.func @transform_4(%arg0: i32, %arg1: i32) -> (i32, i32) {
    %c0_i32 = arith.constant 0 : i32
    %c0_i32_0 = arith.constant 0 : i32
    return %arg0, %c0_i32 : i32, i32
  }
}

module attributes {stable_mosaic.version = 11 : i64} {
  func.func @_bn_leaky_kernel(%arg0: i32, %arg1: memref<32x256xf32, #tpu.memory_space<vmem>>, %arg2: memref<1x256xf32, #tpu.memory_space<vmem>>, %arg3: memref<1x256xf32, #tpu.memory_space<vmem>>, %arg4: memref<32x256xbf16, #tpu.memory_space<vmem>>) attributes {dimension_semantics = [#tpu.dimension_semantics<parallel>], iteration_bounds = array<i64: 1>, scalar_prefetch = 0 : i64, scratch_operands = 0 : i64, tpu.core_type = #tpu.core_type<tc>, window_params = [{transform_indices = @transform_0, window_bounds = array<i64: 32, 256>}, {pipeline_mode = #tpu.pipeline_mode<synchronous>, transform_indices = @transform_1, window_bounds = array<i64: 1, 256>}, {pipeline_mode = #tpu.pipeline_mode<synchronous>, transform_indices = @transform_2, window_bounds = array<i64: 1, 256>}, {transform_indices = @transform_3, window_bounds = array<i64: 32, 256>}]} {
    %c0 = arith.constant 0 : index
    %c0_0 = arith.constant 0 : index
    %0 = vector.load %arg1[%c0, %c0_0] : memref<32x256xf32, #tpu.memory_space<vmem>>, vector<32x256xf32>
    %c0_1 = arith.constant 0 : index
    %c0_2 = arith.constant 0 : index
    %1 = vector.load %arg2[%c0_1, %c0_2] : memref<1x256xf32, #tpu.memory_space<vmem>>, vector<1x256xf32>
    %2 = vector.broadcast %1 : vector<1x256xf32> to vector<32x256xf32>
    %3 = arith.mulf %0, %2 : vector<32x256xf32>
    %c0_3 = arith.constant 0 : index
    %c0_4 = arith.constant 0 : index
    %4 = vector.load %arg3[%c0_3, %c0_4] : memref<1x256xf32, #tpu.memory_space<vmem>>, vector<1x256xf32>
    %5 = vector.broadcast %4 : vector<1x256xf32> to vector<32x256xf32>
    %6 = arith.addf %3, %5 : vector<32x256xf32>
    %cst = arith.constant 0.000000e+00 : f32
    %7 = vector.broadcast %cst : f32 to vector<32x256xf32>
    %8 = arith.cmpf oge, %6, %7 : vector<32x256xf32>
    %cst_5 = arith.constant 2.000000e-01 : f32
    %9 = vector.broadcast %cst_5 : f32 to vector<32x256xf32>
    %10 = arith.mulf %9, %6 : vector<32x256xf32>
    %11 = arith.select %8, %6, %10 : vector<32x256xi1>, vector<32x256xf32>
    %12 = arith.truncf %11 : vector<32x256xf32> to vector<32x256xbf16>
    %c0_6 = arith.constant 0 : index
    %c0_7 = arith.constant 0 : index
    %13 = vector.load %arg4[%c0_6, %c0_7] : memref<32x256xbf16, #tpu.memory_space<vmem>>, vector<32x256xbf16>
    tpu.vector_store %arg4[%c0_6, %c0_7], %12 {strides = array<i32>} : memref<32x256xbf16, #tpu.memory_space<vmem>>, vector<32x256xbf16>,
    return
  }
  func.func @transform_0(%arg0: i32) -> (i32, i32) {
    %c0_i32 = arith.constant 0 : i32
    %c0_i32_0 = arith.constant 0 : i32
    return %arg0, %c0_i32 : i32, i32
  }
  func.func @transform_1(%arg0: i32) -> (i32, i32) {
    %c0_i32 = arith.constant 0 : i32
    %c0_i32_0 = arith.constant 0 : i32
    %c0_i32_1 = arith.constant 0 : i32
    return %c0_i32, %c0_i32_0 : i32, i32
  }
  func.func @transform_2(%arg0: i32) -> (i32, i32) {
    %c0_i32 = arith.constant 0 : i32
    %c0_i32_0 = arith.constant 0 : i32
    %c0_i32_1 = arith.constant 0 : i32
    return %c0_i32, %c0_i32_0 : i32, i32
  }
  func.func @transform_3(%arg0: i32) -> (i32, i32) {
    %c0_i32 = arith.constant 0 : i32
    %c0_i32_0 = arith.constant 0 : i32
    return %arg0, %c0_i32 : i32, i32
  }
}

module attributes {stable_mosaic.version = 11 : i64} {
  func.func @_mm_stats_kernel(%arg0: i32, %arg1: i32, %arg2: memref<32x512xbf16, #tpu.memory_space<vmem>>, %arg3: memref<512x512xbf16, #tpu.memory_space<vmem>>, %arg4: memref<32x512xf32, #tpu.memory_space<vmem>>, %arg5: memref<1x512xf32, #tpu.memory_space<vmem>>, %arg6: memref<1x512xf32, #tpu.memory_space<vmem>>, %arg7: memref<32x512xf32, #tpu.memory_space<vmem>>) attributes {dimension_semantics = [#tpu.dimension_semantics<parallel>, #tpu.dimension_semantics<arbitrary>], iteration_bounds = array<i64: 1, 8>, scalar_prefetch = 0 : i64, scratch_operands = 1 : i64, tpu.core_type = #tpu.core_type<tc>, window_params = [{transform_indices = @transform_0, window_bounds = array<i64: 32, 512>}, {transform_indices = @transform_1, window_bounds = array<i64: 512, 512>}, {transform_indices = @transform_2, window_bounds = array<i64: 32, 512>}, {transform_indices = @transform_3, window_bounds = array<i64: 1, 512>}, {transform_indices = @transform_4, window_bounds = array<i64: 1, 512>}]} {
    %c0_i32 = arith.constant 0 : i32
    %0 = arith.cmpi eq, %arg1, %c0_i32 : i32
    %1 = arith.extui %0 : i1 to i32
    %c0_i32_0 = arith.constant 0 : i32
    %2 = arith.cmpi ne, %1, %c0_i32_0 : i32
    scf.if %2 {
      %cst_9 = arith.constant 0.000000e+00 : f32
      %12 = vector.broadcast %cst_9 : f32 to vector<32x512xf32>
      %c0_10 = arith.constant 0 : index
      %c0_11 = arith.constant 0 : index
      %13 = vector.load %arg7[%c0_10, %c0_11] : memref<32x512xf32, #tpu.memory_space<vmem>>, vector<32x512xf32>
      tpu.vector_store %arg7[%c0_10, %c0_11], %12 {strides = array<i32>} : memref<32x512xf32, #tpu.memory_space<vmem>>, vector<32x512xf32>,
    } else {
    }
    %c0 = arith.constant 0 : index
    %c0_1 = arith.constant 0 : index
    %3 = vector.load %arg7[%c0, %c0_1] : memref<32x512xf32, #tpu.memory_space<vmem>>, vector<32x512xf32>
    %c0_2 = arith.constant 0 : index
    %c0_3 = arith.constant 0 : index
    %4 = vector.load %arg2[%c0_2, %c0_3] : memref<32x512xbf16, #tpu.memory_space<vmem>>, vector<32x512xbf16>
    %c0_4 = arith.constant 0 : index
    %c0_5 = arith.constant 0 : index
    %5 = vector.load %arg3[%c0_4, %c0_5] : memref<512x512xbf16, #tpu.memory_space<vmem>>, vector<512x512xbf16>
    %cst = arith.constant dense<0.000000e+00> : vector<32x512xf32>
    %6 = tpu.matmul %4, %5, %cst {dimension_numbers = #tpu.dot_dimension_numbers<[1], [0], [0], [1], [0, 0, 1, 1], [], []>} : vector<32x512xbf16>, vector<512x512xbf16>, vector<32x512xf32> -> vector<32x512xf32>
    %7 = arith.addf %3, %6 : vector<32x512xf32>
    %c0_6 = arith.constant 0 : index
    %c0_7 = arith.constant 0 : index
    %8 = vector.load %arg7[%c0_6, %c0_7] : memref<32x512xf32, #tpu.memory_space<vmem>>, vector<32x512xf32>
    tpu.vector_store %arg7[%c0_6, %c0_7], %7 {strides = array<i32>} : memref<32x512xf32, #tpu.memory_space<vmem>>, vector<32x512xf32>,
    %c7_i32 = arith.constant 7 : i32
    %9 = arith.cmpi eq, %arg1, %c7_i32 : i32
    %10 = arith.extui %9 : i1 to i32
    %c0_i32_8 = arith.constant 0 : i32
    %11 = arith.cmpi ne, %10, %c0_i32_8 : i32
    scf.if %11 {
      %c0_9 = arith.constant 0 : index
      %c0_10 = arith.constant 0 : index
      %12 = vector.load %arg7[%c0_9, %c0_10] : memref<32x512xf32, #tpu.memory_space<vmem>>, vector<32x512xf32>
      %c0_11 = arith.constant 0 : index
      %c0_12 = arith.constant 0 : index
      %13 = vector.load %arg4[%c0_11, %c0_12] : memref<32x512xf32, #tpu.memory_space<vmem>>, vector<32x512xf32>
      tpu.vector_store %arg4[%c0_11, %c0_12], %12 {strides = array<i32>} : memref<32x512xf32, #tpu.memory_space<vmem>>, vector<32x512xf32>,
      %cst_13 = arith.constant dense<0.000000e+00> : vector<512xf32>
      %14 = vector.multi_reduction <add>, %12, %cst_13 [0] : vector<32x512xf32> to vector<512xf32>
      %15 = vector.shape_cast %14 : vector<512xf32> to vector<1x512xf32>
      %c0_14 = arith.constant 0 : index
      %c0_15 = arith.constant 0 : index
      %16 = vector.load %arg5[%c0_14, %c0_15] : memref<1x512xf32, #tpu.memory_space<vmem>>, vector<1x512xf32>
      tpu.vector_store %arg5[%c0_14, %c0_15], %15 {strides = array<i32>} : memref<1x512xf32, #tpu.memory_space<vmem>>, vector<1x512xf32>,
      %17 = arith.mulf %12, %12 : vector<32x512xf32>
      %cst_16 = arith.constant dense<0.000000e+00> : vector<512xf32>
      %18 = vector.multi_reduction <add>, %17, %cst_16 [0] : vector<32x512xf32> to vector<512xf32>
      %19 = vector.shape_cast %18 : vector<512xf32> to vector<1x512xf32>
      %c0_17 = arith.constant 0 : index
      %c0_18 = arith.constant 0 : index
      %20 = vector.load %arg6[%c0_17, %c0_18] : memref<1x512xf32, #tpu.memory_space<vmem>>, vector<1x512xf32>
      tpu.vector_store %arg6[%c0_17, %c0_18], %19 {strides = array<i32>} : memref<1x512xf32, #tpu.memory_space<vmem>>, vector<1x512xf32>,
    } else {
    }
    return
  }
  func.func @transform_0(%arg0: i32, %arg1: i32) -> (i32, i32) {
    %c0_i32 = arith.constant 0 : i32
    return %arg0, %arg1 : i32, i32
  }
  func.func @transform_1(%arg0: i32, %arg1: i32) -> (i32, i32) {
    %c0_i32 = arith.constant 0 : i32
    %c0_i32_0 = arith.constant 0 : i32
    return %arg1, %c0_i32 : i32, i32
  }
  func.func @transform_2(%arg0: i32, %arg1: i32) -> (i32, i32) {
    %c0_i32 = arith.constant 0 : i32
    %c0_i32_0 = arith.constant 0 : i32
    return %arg0, %c0_i32 : i32, i32
  }
  func.func @transform_3(%arg0: i32, %arg1: i32) -> (i32, i32) {
    %c0_i32 = arith.constant 0 : i32
    %c0_i32_0 = arith.constant 0 : i32
    return %arg0, %c0_i32 : i32, i32
  }
  func.func @transform_4(%arg0: i32, %arg1: i32) -> (i32, i32) {
    %c0_i32 = arith.constant 0 : i32
    %c0_i32_0 = arith.constant 0 : i32
    return %arg0, %c0_i32 : i32, i32
  }
}

module attributes {stable_mosaic.version = 11 : i64} {
  func.func @_bn_leaky_kernel(%arg0: i32, %arg1: memref<32x512xf32, #tpu.memory_space<vmem>>, %arg2: memref<1x512xf32, #tpu.memory_space<vmem>>, %arg3: memref<1x512xf32, #tpu.memory_space<vmem>>, %arg4: memref<32x512xbf16, #tpu.memory_space<vmem>>) attributes {dimension_semantics = [#tpu.dimension_semantics<parallel>], iteration_bounds = array<i64: 1>, scalar_prefetch = 0 : i64, scratch_operands = 0 : i64, tpu.core_type = #tpu.core_type<tc>, window_params = [{transform_indices = @transform_0, window_bounds = array<i64: 32, 512>}, {pipeline_mode = #tpu.pipeline_mode<synchronous>, transform_indices = @transform_1, window_bounds = array<i64: 1, 512>}, {pipeline_mode = #tpu.pipeline_mode<synchronous>, transform_indices = @transform_2, window_bounds = array<i64: 1, 512>}, {transform_indices = @transform_3, window_bounds = array<i64: 32, 512>}]} {
    %c0 = arith.constant 0 : index
    %c0_0 = arith.constant 0 : index
    %0 = vector.load %arg1[%c0, %c0_0] : memref<32x512xf32, #tpu.memory_space<vmem>>, vector<32x512xf32>
    %c0_1 = arith.constant 0 : index
    %c0_2 = arith.constant 0 : index
    %1 = vector.load %arg2[%c0_1, %c0_2] : memref<1x512xf32, #tpu.memory_space<vmem>>, vector<1x512xf32>
    %2 = vector.broadcast %1 : vector<1x512xf32> to vector<32x512xf32>
    %3 = arith.mulf %0, %2 : vector<32x512xf32>
    %c0_3 = arith.constant 0 : index
    %c0_4 = arith.constant 0 : index
    %4 = vector.load %arg3[%c0_3, %c0_4] : memref<1x512xf32, #tpu.memory_space<vmem>>, vector<1x512xf32>
    %5 = vector.broadcast %4 : vector<1x512xf32> to vector<32x512xf32>
    %6 = arith.addf %3, %5 : vector<32x512xf32>
    %cst = arith.constant 0.000000e+00 : f32
    %7 = vector.broadcast %cst : f32 to vector<32x512xf32>
    %8 = arith.cmpf oge, %6, %7 : vector<32x512xf32>
    %cst_5 = arith.constant 2.000000e-01 : f32
    %9 = vector.broadcast %cst_5 : f32 to vector<32x512xf32>
    %10 = arith.mulf %9, %6 : vector<32x512xf32>
    %11 = arith.select %8, %6, %10 : vector<32x512xi1>, vector<32x512xf32>
    %12 = arith.truncf %11 : vector<32x512xf32> to vector<32x512xbf16>
    %c0_6 = arith.constant 0 : index
    %c0_7 = arith.constant 0 : index
    %13 = vector.load %arg4[%c0_6, %c0_7] : memref<32x512xbf16, #tpu.memory_space<vmem>>, vector<32x512xbf16>
    tpu.vector_store %arg4[%c0_6, %c0_7], %12 {strides = array<i32>} : memref<32x512xbf16, #tpu.memory_space<vmem>>, vector<32x512xbf16>,
    return
  }
  func.func @transform_0(%arg0: i32) -> (i32, i32) {
    %c0_i32 = arith.constant 0 : i32
    %c0_i32_0 = arith.constant 0 : i32
    return %arg0, %c0_i32 : i32, i32
  }
  func.func @transform_1(%arg0: i32) -> (i32, i32) {
    %c0_i32 = arith.constant 0 : i32
    %c0_i32_0 = arith.constant 0 : i32
    %c0_i32_1 = arith.constant 0 : i32
    return %c0_i32, %c0_i32_0 : i32, i32
  }
  func.func @transform_2(%arg0: i32) -> (i32, i32) {
    %c0_i32 = arith.constant 0 : i32
    %c0_i32_0 = arith.constant 0 : i32
    %c0_i32_1 = arith.constant 0 : i32
    return %c0_i32, %c0_i32_0 : i32, i32
  }
  func.func @transform_3(%arg0: i32) -> (i32, i32) {
    %c0_i32 = arith.constant 0 : i32
    %c0_i32_0 = arith.constant 0 : i32
    return %arg0, %c0_i32 : i32, i32
  }
}

module attributes {stable_mosaic.version = 11 : i64} {
  func.func @_mm_bias_kernel(%arg0: i32, %arg1: i32, %arg2: memref<16x512xbf16, #tpu.memory_space<vmem>>, %arg3: memref<512x128xbf16, #tpu.memory_space<vmem>>, %arg4: memref<1x128xf32, #tpu.memory_space<vmem>>, %arg5: memref<16x128xf32, #tpu.memory_space<vmem>>, %arg6: memref<16x128xf32, #tpu.memory_space<vmem>>) attributes {dimension_semantics = [#tpu.dimension_semantics<parallel>, #tpu.dimension_semantics<arbitrary>], iteration_bounds = array<i64: 1, 16>, scalar_prefetch = 0 : i64, scratch_operands = 1 : i64, tpu.core_type = #tpu.core_type<tc>, window_params = [{transform_indices = @transform_0, window_bounds = array<i64: 16, 512>}, {transform_indices = @transform_1, window_bounds = array<i64: 512, 128>}, {pipeline_mode = #tpu.pipeline_mode<synchronous>, transform_indices = @transform_2, window_bounds = array<i64: 1, 128>}, {transform_indices = @transform_3, window_bounds = array<i64: 16, 128>}]} {
    %c0_i32 = arith.constant 0 : i32
    %0 = arith.cmpi eq, %arg1, %c0_i32 : i32
    %1 = arith.extui %0 : i1 to i32
    %c0_i32_0 = arith.constant 0 : i32
    %2 = arith.cmpi ne, %1, %c0_i32_0 : i32
    scf.if %2 {
      %cst_9 = arith.constant 0.000000e+00 : f32
      %12 = vector.broadcast %cst_9 : f32 to vector<16x128xf32>
      %c0_10 = arith.constant 0 : index
      %c0_11 = arith.constant 0 : index
      %13 = vector.load %arg6[%c0_10, %c0_11] : memref<16x128xf32, #tpu.memory_space<vmem>>, vector<16x128xf32>
      tpu.vector_store %arg6[%c0_10, %c0_11], %12 {strides = array<i32>} : memref<16x128xf32, #tpu.memory_space<vmem>>, vector<16x128xf32>,
    } else {
    }
    %c0 = arith.constant 0 : index
    %c0_1 = arith.constant 0 : index
    %3 = vector.load %arg6[%c0, %c0_1] : memref<16x128xf32, #tpu.memory_space<vmem>>, vector<16x128xf32>
    %c0_2 = arith.constant 0 : index
    %c0_3 = arith.constant 0 : index
    %4 = vector.load %arg2[%c0_2, %c0_3] : memref<16x512xbf16, #tpu.memory_space<vmem>>, vector<16x512xbf16>
    %c0_4 = arith.constant 0 : index
    %c0_5 = arith.constant 0 : index
    %5 = vector.load %arg3[%c0_4, %c0_5] : memref<512x128xbf16, #tpu.memory_space<vmem>>, vector<512x128xbf16>
    %cst = arith.constant dense<0.000000e+00> : vector<16x128xf32>
    %6 = tpu.matmul %4, %5, %cst {dimension_numbers = #tpu.dot_dimension_numbers<[1], [0], [0], [1], [0, 0, 1, 1], [], []>} : vector<16x512xbf16>, vector<512x128xbf16>, vector<16x128xf32> -> vector<16x128xf32>
    %7 = arith.addf %3, %6 : vector<16x128xf32>
    %c0_6 = arith.constant 0 : index
    %c0_7 = arith.constant 0 : index
    %8 = vector.load %arg6[%c0_6, %c0_7] : memref<16x128xf32, #tpu.memory_space<vmem>>, vector<16x128xf32>
    tpu.vector_store %arg6[%c0_6, %c0_7], %7 {strides = array<i32>} : memref<16x128xf32, #tpu.memory_space<vmem>>, vector<16x128xf32>,
    %c15_i32 = arith.constant 15 : i32
    %9 = arith.cmpi eq, %arg1, %c15_i32 : i32
    %10 = arith.extui %9 : i1 to i32
    %c0_i32_8 = arith.constant 0 : i32
    %11 = arith.cmpi ne, %10, %c0_i32_8 : i32
    scf.if %11 {
      %c0_9 = arith.constant 0 : index
      %c0_10 = arith.constant 0 : index
      %12 = vector.load %arg6[%c0_9, %c0_10] : memref<16x128xf32, #tpu.memory_space<vmem>>, vector<16x128xf32>
      %c0_11 = arith.constant 0 : index
      %c0_12 = arith.constant 0 : index
      %13 = vector.load %arg4[%c0_11, %c0_12] : memref<1x128xf32, #tpu.memory_space<vmem>>, vector<1x128xf32>
      %14 = vector.broadcast %13 : vector<1x128xf32> to vector<16x128xf32>
      %15 = arith.addf %12, %14 : vector<16x128xf32>
      %c0_13 = arith.constant 0 : index
      %c0_14 = arith.constant 0 : index
      %16 = vector.load %arg5[%c0_13, %c0_14] : memref<16x128xf32, #tpu.memory_space<vmem>>, vector<16x128xf32>
      tpu.vector_store %arg5[%c0_13, %c0_14], %15 {strides = array<i32>} : memref<16x128xf32, #tpu.memory_space<vmem>>, vector<16x128xf32>,
    } else {
    }
    return
  }
  func.func @transform_0(%arg0: i32, %arg1: i32) -> (i32, i32) {
    %c0_i32 = arith.constant 0 : i32
    return %arg0, %arg1 : i32, i32
  }
  func.func @transform_1(%arg0: i32, %arg1: i32) -> (i32, i32) {
    %c0_i32 = arith.constant 0 : i32
    %c0_i32_0 = arith.constant 0 : i32
    return %arg1, %c0_i32 : i32, i32
  }
  func.func @transform_2(%arg0: i32, %arg1: i32) -> (i32, i32) {
    %c0_i32 = arith.constant 0 : i32
    %c0_i32_0 = arith.constant 0 : i32
    %c0_i32_1 = arith.constant 0 : i32
    return %c0_i32, %c0_i32_0 : i32, i32
  }
  func.func @transform_3(%arg0: i32, %arg1: i32) -> (i32, i32) {
    %c0_i32 = arith.constant 0 : i32
    %c0_i32_0 = arith.constant 0 : i32
    return %arg0, %c0_i32 : i32, i32
  }
}

</mosaic_0001>

<bundles_post_ra>
// kernel: discriminator_forward.8
= control target key start
LH: loop header
LB: loop body
LE: loop exit
PB: predicated region body
PF: predicated region fallthrough
CT: control target
= control target key end

     0   :  { %8 = vsyncpa [#allocation4], 0  ;;  %s1189_s12 = smov 0   ;;  %s1191_s13 = smov 0   ;;  %s1434_s0 = inlined_call_operand.vmem [shape: bf16[512,16], index: 0, kind: input, shape index: {}]   ;;  %s1435_s1 = inlined_call_operand.vmem [shape: bf16[16,64], index: 1, kind: input, shape index: {}]   ;;  %s1436_s2 = inlined_call_operand.hbm [shape: f32[1,64], index: 2, kind: input, shape index: {}]   ;;  %s1437_s3 = inlined_call_operand.vmem [shape: bf16[512,64], index: 3, kind: output, shape index: {}]  }
   0x1   :  { %s1193_s14 = smov 0  }
   0x2 LB: > { %s954_s15 = sadd.s32 4294967295, %s1165_s14   ;;  %s26_s16 = sadd.s32 1, %s1161_s13  ;;  %s1165_s14 = sphi %s1193_s14, %s14_s14   ;;  %s1161_s13 = sphi %s1191_s13, %s1439_s13   ;;  %s1157_s12 = sphi %s1189_s12, %s1438_s12  }
   0x3   : > { %p28_p0 = scmp.ge.s32.totalorder %s26_s16, 2  ;;  %p956_p1 = scmp.ge.s32.totalorder %s1165_s14, 1 }
   0x4   : > { %p132_p2 = scmp.lt.s32.totalorder %s1165_s14, 3  ;;  %p1080_p4 = scmp.eq.s32.totalorder %s954_s15, 0 }
   0x5   : > { %s1441_s16 = smov (%p28_p0, %s26_s16), 0  ;;  %s153_s19 = sshll.u32 %s1436_s2, 4  ;;  %s154_s19 = int_to_ptr.hbm [resolvable:$true] %s153_s19 }
   0x6   : > { %p133_p3 = pnand %p956_p1, %p132_p2  ;;  %s1167_s20 = smov [#allocation3]  }
   0x7   : > { %s155_s21 = sshll.u32 %s1167_s20, 4  ;;  %s156_s21 = int_to_ptr.vmem [resolvable:$true] %s155_s21 }
   0x8   : > { %p1076_p5 = pneg %p133_p3  ;;  %180 = sbr.rel (%p133_p3) target bundleno = 233 (0xe9), region = 32 }
   0xa   : > { %p1077_p6 = pnand %p1080_p4, %p1076_p5 }
   0xc   : > { %1079 = dma.hbm_to_vmem [thread:$0]  (!%p1077_p6), %s154_s19, 16, %s156_s21, [#allocation4]  }
   0xd   : > { %1152 = dma.done.wait (%p1080_p4), [#allocation4], 16  }
   0xe   : > { %1154 = vsyncadd (%p1080_p4), [#allocation4], 4294967280  ;;  %s962_s22 = sshll.u32 %s1157_s12, 5  ;;  %v1068_v0 = vld [vmem:[%s1435_s1] sm:$0xff]  ;;  %vm424_vm0 = vcmask 130048   ;;  %vm239_vm1 = vcmask 523264  }
   0xf   : > { %p214_p7 = scmp.lt.s32.totalorder %s962_s22, 63  ;;  %480 = vmatpush.bf16.msra.mxu0 %v1068_v0  ;;  %1069 = vmatpush.bf16.msra.mxu1 %v1068_v0  ;;  %v1168_v9 = vmov 0.0   ;;  %v1290_v28 = vld [vmem:[#allocation3] ss:$0 sm:$0xff]  ;;  %vm826_vm4 = vcmask 519168  }
  0x10   : > { %1070 = vmatpush.bf16.msra.mxu2 %v1068_v0  ;;  %1071 = vmatpush.bf16.msra.mxu3 %v1068_v0  ;;  %240 = vst.msk [vmem:[#allocation2] sm:$0xff] %vm239_vm1, %v1168_v9 }
  0x11   : > { %s1443_s22 = smov (!%p214_p7, %s962_s22), 63  ;;  %241 = vst.msk [vmem:[#allocation2 + $0x8] sm:$0xff] %vm239_vm1, %v1168_v9 }
  0x12   : > { %s963_s23 = sshll.u32 %s1443_s22, 2  ;;  %242 = vst.msk [vmem:[#allocation2 + $0x10] sm:$0xff] %vm239_vm1, %v1168_v9 }
  0x13   : > { %s1219_s26 = scalar_lea.vmem %s1434_s0, %s963_s23  ;;  %243 = vst.msk [vmem:[#allocation2 + $0x18] sm:$0xff] %vm239_vm1, %v1168_v9  ;;  %s1303_s4 = scalar_lea.vmem %s1437_s3, %s963_s23 }
  0x14   : > { %v1052_v1 = vld [vmem:[%s1219_s26] sm:$0xff]  ;;  %v1053_v5 = vld [vmem:[%s1219_s26 + $0x8] sm:$0xff]  ;;  %244 = vst.msk [vmem:[#allocation2 + $0x20] sm:$0xff] %vm239_vm1, %v1168_v9  ;;  %v1054_v10 = vld [vmem:[%s1219_s26 + $0x10] sm:$0xff] }
  0x15   : > { %v1056_v2 = vld [vmem:[%s1219_s26 + $0x20] sm:$0xff]  ;;  %1034 = vmatmul.msk.bf16.vlgmr.msra.gmra.mxu0 %vm424_vm0, %v1052_v1  ;;  %v1057_v6 = vld [vmem:[%s1219_s26 + $0x28] sm:$0xff]  ;;  %245 = vst.msk [vmem:[#allocation2 + $0x28] sm:$0xff] %vm239_vm1, %v1168_v9  ;;  %v1058_v11 = vld [vmem:[%s1219_s26 + $0x30] sm:$0xff] }
  0x16   : > { %v1060_v3 = vld [vmem:[%s1219_s26 + $0x40] sm:$0xff]  ;;  %1038 = vmatmul.msk.bf16.vlgmr.msra.gmra.mxu1 %vm424_vm0, %v1056_v2  ;;  %v1061_v7 = vld [vmem:[%s1219_s26 + $0x48] sm:$0xff]  ;;  %246 = vst.msk [vmem:[#allocation2 + $0x30] sm:$0xff] %vm239_vm1, %v1168_v9  ;;  %v1062_v12 = vld [vmem:[%s1219_s26 + $0x50] sm:$0xff] }
  0x17   : > { %v1064_v4 = vld [vmem:[%s1219_s26 + $0x60] sm:$0xff]  ;;  %1042 = vmatmul.msk.bf16.vlgmr.msra.gmra.mxu2 %vm424_vm0, %v1060_v3  ;;  %v1065_v8 = vld [vmem:[%s1219_s26 + $0x68] sm:$0xff]  ;;  %247 = vst.msk [vmem:[#allocation2 + $0x38] sm:$0xff] %vm239_vm1, %v1168_v9  ;;  %v1066_v13 = vld [vmem:[%s1219_s26 + $0x70] sm:$0xff] }
  0x18   : > { %1046 = vmatmul.msk.bf16.vlgmr.msra.gmra.mxu3 %vm424_vm0, %v1064_v4  ;;  %248 = vst.msk [vmem:[#allocation2 + $0x40] sm:$0xff] %vm239_vm1, %v1168_v9  ;;  %v1055_v14 = vld [vmem:[%s1219_s26 + $0x18] sm:$0xff]  ;;  %v272_v18 = vld [vmem:[#allocation2] sm:$0xff]  ;;  %v273_v26 = vld [vmem:[#allocation2 + $0x8] sm:$0xff] }
  0x19   : > { %249 = vst.msk [vmem:[#allocation2 + $0x48] sm:$0xff] %vm239_vm1, %v1168_v9  ;;  %v1059_v15 = vld [vmem:[%s1219_s26 + $0x38] sm:$0xff]  ;;  %v274_v48 = vld [vmem:[#allocation2 + $0x10] sm:$0xff] }
  0x1a   : > { %250 = vst.msk [vmem:[#allocation2 + $0x50] sm:$0xff] %vm239_vm1, %v1168_v9  ;;  %v1063_v16 = vld [vmem:[%s1219_s26 + $0x58] sm:$0xff] }
  0x1b   : > { %251 = vst.msk [vmem:[#allocation2 + $0x58] sm:$0xff] %vm239_vm1, %v1168_v9  ;;  %v1067_v17 = vld [vmem:[%s1219_s26 + $0x78] sm:$0xff] }
  0x1c   : > { %252 = vst.msk [vmem:[#allocation2 + $0x60] sm:$0xff] %vm239_vm1, %v1168_v9 }
  0x1d   : > { %253 = vst.msk [vmem:[#allocation2 + $0x68] sm:$0xff] %vm239_vm1, %v1168_v9 }
  0x1e   : > { %254 = vst.msk [vmem:[#allocation2 + $0x70] sm:$0xff] %vm239_vm1, %v1168_v9 }
  0x1f   : > { %255 = vst.msk [vmem:[#allocation2 + $0x78] sm:$0xff] %vm239_vm1, %v1168_v9  ;;  %v280_v19 = vld [vmem:[#allocation2 + $0x40] sm:$0xff] }
  0x20   : > { %256 = vst.msk [vmem:[#allocation2 + $0x80] sm:$0xff] %vm239_vm1, %v1168_v9  ;;  %v281_v27 = vld [vmem:[#allocation2 + $0x48] sm:$0xff] }
  0x21   : > { %257 = vst.msk [vmem:[#allocation2 + $0x88] sm:$0xff] %vm239_vm1, %v1168_v9  ;;  %v282_v53 = vld [vmem:[#allocation2 + $0x50] sm:$0xff] }
  0x22   : > { %258 = vst.msk [vmem:[#allocation2 + $0x90] sm:$0xff] %vm239_vm1, %v1168_v9 }
  0x23   : > { %259 = vst.msk [vmem:[#allocation2 + $0x98] sm:$0xff] %vm239_vm1, %v1168_v9 }
  0x24   : > { %260 = vst.msk [vmem:[#allocation2 + $0xa0] sm:$0xff] %vm239_vm1, %v1168_v9 }
  0x25   : > { %1035 = vmatmul.msk.bf16.gmra.mxu0 %vm424_vm0, %v1053_v5  ;;  %261 = vst.msk [vmem:[#allocation2 + $0xa8] sm:$0xff] %vm239_vm1, %v1168_v9 }
  0x26   : > { %1039 = vmatmul.msk.bf16.gmra.mxu1 %vm424_vm0, %v1057_v6  ;;  %262 = vst.msk [vmem:[#allocation2 + $0xb0] sm:$0xff] %vm239_vm1, %v1168_v9 }
  0x27   : > { %1043 = vmatmul.msk.bf16.gmra.mxu2 %vm424_vm0, %v1061_v7  ;;  %263 = vst.msk [vmem:[#allocation2 + $0xb8] sm:$0xff] %vm239_vm1, %v1168_v9  ;;  %v288_v24 = vld [vmem:[#allocation2 + $0x80] sm:$0xff] }
  0x28   : > { %1047 = vmatmul.msk.bf16.gmra.mxu3 %vm424_vm0, %v1065_v8  ;;  %264 = vst.msk [vmem:[#allocation2 + $0xc0] sm:$0xff] %vm239_vm1, %v1168_v9  ;;  %v289_v42 = vld [vmem:[#allocation2 + $0x88] sm:$0xff] }
  0x29   : > { %265 = vst.msk [vmem:[#allocation2 + $0xc8] sm:$0xff] %vm239_vm1, %v1168_v9  ;;  %v290_v7 = vld [vmem:[#allocation2 + $0x90] sm:$0xff] }
  0x2a   : > { %266 = vst.msk [vmem:[#allocation2 + $0xd0] sm:$0xff] %vm239_vm1, %v1168_v9 }
  0x2b   : > { %267 = vst.msk [vmem:[#allocation2 + $0xd8] sm:$0xff] %vm239_vm1, %v1168_v9 }
  0x2c   : > { %268 = vst.msk [vmem:[#allocation2 + $0xe0] sm:$0xff] %vm239_vm1, %v1168_v9 }
  0x2d   : > { %269 = vst.msk [vmem:[#allocation2 + $0xe8] sm:$0xff] %vm239_vm1, %v1168_v9 }
  0x2e   : > { %270 = vst.msk [vmem:[#allocation2 + $0xf0] sm:$0xff] %vm239_vm1, %v1168_v9 }
  0x2f   : > { %271 = vst.msk [vmem:[#allocation2 + $0xf8] sm:$0xff] %vm239_vm1, %v1168_v9  ;;  %v296_v25 = vld [vmem:[#allocation2 + $0xc0] sm:$0xff] }
  0x30   : > { %v297_v44 = vld [vmem:[#allocation2 + $0xc8] sm:$0xff] }
  0x35   : > { %1036 = vmatmul.msk.bf16.gmra.mxu0 %vm424_vm0, %v1054_v10 }
  0x36   : > { %1040 = vmatmul.msk.bf16.gmra.mxu1 %vm424_vm0, %v1058_v11 }
  0x37   : > { %1044 = vmatmul.msk.bf16.gmra.mxu2 %vm424_vm0, %v1062_v12  ;;  %v298_v12 = vld [vmem:[#allocation2 + $0xd0] sm:$0xff] }
  0x38   : > { %1048 = vmatmul.msk.bf16.gmra.mxu3 %vm424_vm0, %v1066_v13 }
  0x45   : > { %1037 = vmatmul.msk.bf16.gmra.mxu0 %vm424_vm0, %v1055_v14 }
  0x46   : > { %1041 = vmatmul.msk.bf16.gmra.mxu1 %vm424_vm0, %v1059_v15 }
  0x47   : > { %1045 = vmatmul.msk.bf16.gmra.mxu2 %vm424_vm0, %v1063_v16  ;;  %v275_v16 = vld [vmem:[#allocation2 + $0x18] sm:$0xff] }
  0x48   : > { %1049 = vmatmul.msk.bf16.gmra.mxu3 %vm424_vm0, %v1067_v17 }
  0x92   : > { %v482_v20 = vpop.f32.mrf.mxu0 }
  0x93   : > { %v502_v21 = vpop.f32.mrf.mxu1  ;;  %v562_v22 = vadd.f32 %v482_v20, %v272_v18 }
  0x94   : > { %v570_v23 = vadd.f32 %v502_v21, %v280_v19 }
  0x95   : > { %595 = vst.msk [vmem:[#allocation2] sm:$0xff] %vm239_vm1, %v562_v22  ;;  %v283_v22 = vld [vmem:[#allocation2 + $0x58] sm:$0xff] }
  0x96   : > { %603 = vst.msk [vmem:[#allocation2 + $0x40] sm:$0xff] %vm239_vm1, %v570_v23 }
  0x9a   : > { %v522_v29 = vpop.f32.mrf.mxu2  ;;  %v484_v33 = vpop.f32.mrf.mxu0 }
  0x9b   : > { %v542_v30 = vpop.f32.mrf.mxu3  ;;  %v578_v31 = vadd.f32 %v522_v29, %v288_v24  ;;  %v504_v34 = vpop.f32.mrf.mxu1  ;;  %v563_v35 = vadd.f32 %v484_v33, %v273_v26  ;;  %v291_v33 = vld [vmem:[#allocation2 + $0x98] sm:$0xff] }
  0x9c   : > { %v586_v32 = vadd.f32 %v542_v30, %v296_v25  ;;  %v571_v36 = vadd.f32 %v504_v34, %v281_v27  ;;  %v630_v37 = vld [vmem:[#allocation2] sm:$0xff] }
  0x9d   : > { %611 = vst.msk [vmem:[#allocation2 + $0x80] sm:$0xff] %vm239_vm1, %v578_v31  ;;  %v666_v38 = vadd.f32 %v1290_v28, %v630_v37  ;;  %v638_v39 = vld [vmem:[#allocation2 + $0x40] sm:$0xff] }
  0x9e   : > { %619 = vst.msk [vmem:[#allocation2 + $0xc0] sm:$0xff] %vm239_vm1, %v586_v32  ;;  %v674_v40 = vadd.f32 %v1290_v28, %v638_v39 }
  0x9f   : > { %596 = vst.msk [vmem:[#allocation2 + $0x8] sm:$0xff] %vm239_vm1, %v563_v35  ;;  %vm698_vm2 = vcmp.ge.f32.partialorder %v666_v38, 0.0  ;;  %v730_v41 = vmul.f32 0.2, %v666_v38 }
  0xa0   : > { %604 = vst.msk [vmem:[#allocation2 + $0x48] sm:$0xff] %vm239_vm1, %v571_v36  ;;  %vm706_vm3 = vcmp.ge.f32.partialorder %v674_v40, 0.0  ;;  %v738_v43 = vmul.f32 0.2, %v674_v40 }
  0xa1   : > { %v762_v45 = vsel %vm698_vm2, %v666_v38, %v730_v41 }
  0xa2   : > { %v524_v46 = vpop.f32.mrf.mxu2  ;;  %v794_v49 = vpack.c.bf16 %v762_v45, %v762_v45  ;;  %v770_v50 = vsel %vm706_vm3, %v674_v40, %v738_v43  ;;  %v487_v52 = vpop.f32.mrf.mxu0 }
  0xa3   : > { %v544_v47 = vpop.f32.mrf.mxu3  ;;  %v579_v51 = vadd.f32 %v524_v46, %v289_v42  ;;  %v507_v54 = vpop.f32.mrf.mxu1  ;;  %v802_v55 = vpack.c.bf16 %v770_v50, %v770_v50  ;;  %v564_v60 = vadd.f32 %v487_v52, %v274_v48  ;;  %v276_v50 = vld [vmem:[#allocation2 + $0x20] sm:$0xff] }
  0xa4   : > { %v646_v56 = vld [vmem:[#allocation2 + $0x80] sm:$0xff]  ;;  %v587_v57 = vadd.f32 %v544_v47, %v297_v44  ;;  %827 = vst.msk [vmem:[%s1303_s4] sm:$0xf] %vm826_vm4, %v794_v49  ;;  %v572_v63 = vadd.f32 %v507_v54, %v282_v53  ;;  %v299_v44 = vld [vmem:[#allocation2 + $0xd8] sm:$0xff] }
  0xa5   : > { %v682_v58 = vadd.f32 %v1290_v28, %v646_v56  ;;  %v654_v59 = vld [vmem:[#allocation2 + $0xc0] sm:$0xff]  ;;  %835 = vst.msk [vmem:[%s1303_s4 + $0x20] sm:$0xf] %vm826_vm4, %v802_v55 }
  0xa6   : > { %v690_v61 = vadd.f32 %v1290_v28, %v654_v59  ;;  %v631_v62 = vld [vmem:[#allocation2 + $0x8] sm:$0xff]  ;;  %612 = vst.msk [vmem:[#allocation2 + $0x88] sm:$0xff] %vm239_vm1, %v579_v51  ;;  %v284_v53 = vld [vmem:[#allocation2 + $0x60] sm:$0xff] }
  0xa7   : > { %vm714_vm5 = vcmp.ge.f32.partialorder %v682_v58, 0.0  ;;  %v746_v0 = vmul.f32 0.2, %v682_v58  ;;  %v667_v1 = vadd.f32 %v1290_v28, %v631_v62  ;;  %v639_v2 = vld [vmem:[#allocation2 + $0x48] sm:$0xff]  ;;  %620 = vst.msk [vmem:[#allocation2 + $0xc8] sm:$0xff] %vm239_vm1, %v587_v57 }
  0xa8   : > { %vm722_vm6 = vcmp.ge.f32.partialorder %v690_v61, 0.0  ;;  %v754_v3 = vmul.f32 0.2, %v690_v61  ;;  %v675_v4 = vadd.f32 %v1290_v28, %v639_v2  ;;  %597 = vst.msk [vmem:[#allocation2 + $0x10] sm:$0xff] %vm239_vm1, %v564_v60  ;;  %v300_v2 = vld [vmem:[#allocation2 + $0xe0] sm:$0xff] }
  0xa9   : > { %v778_v5 = vsel %vm714_vm5, %v682_v58, %v746_v0  ;;  %vm699_vm7 = vcmp.ge.f32.partialorder %v667_v1, 0.0  ;;  %v731_v6 = vmul.f32 0.2, %v667_v1  ;;  %605 = vst.msk [vmem:[#allocation2 + $0x50] sm:$0xff] %vm239_vm1, %v572_v63  ;;  %v292_v63 = vld [vmem:[#allocation2 + $0xa0] sm:$0xff] }
  0xaa   : > { %v810_v8 = vpack.c.bf16 %v778_v5, %v778_v5  ;;  %v786_v9 = vsel %vm722_vm6, %v690_v61, %v754_v3  ;;  %vm707_vm8 = vcmp.ge.f32.partialorder %v675_v4, 0.0  ;;  %v739_v10 = vmul.f32 0.2, %v675_v4  ;;  %v527_v11 = vpop.f32.mrf.mxu2  ;;  %v489_v17 = vpop.f32.mrf.mxu0 }
  0xab   : > { %v547_v13 = vpop.f32.mrf.mxu3  ;;  %v818_v14 = vpack.c.bf16 %v786_v9, %v786_v9  ;;  %v763_v15 = vsel %vm699_vm7, %v667_v1, %v731_v6  ;;  %v509_v18 = vpop.f32.mrf.mxu1  ;;  %v580_v21 = vadd.f32 %v527_v11, %v290_v7  ;;  %v565_v26 = vadd.f32 %v489_v17, %v275_v16  ;;  %v277_v17 = vld [vmem:[#allocation2 + $0x28] sm:$0xff] }
  0xac   : > { %843 = vst.msk [vmem:[%s1303_s4 + $0x40] sm:$0xf] %vm826_vm4, %v810_v8  ;;  %v795_v19 = vpack.c.bf16 %v763_v15, %v763_v15  ;;  %v771_v20 = vsel %vm707_vm8, %v675_v4, %v739_v10  ;;  %v588_v24 = vadd.f32 %v547_v13, %v298_v12  ;;  %v573_v30 = vadd.f32 %v509_v18, %v283_v22 }
  0xad   : > { %851 = vst.msk [vmem:[%s1303_s4 + $0x60] sm:$0xf] %vm826_vm4, %v818_v14  ;;  %v803_v23 = vpack.c.bf16 %v771_v20, %v771_v20  ;;  %v647_v25 = vld [vmem:[#allocation2 + $0x88] sm:$0xff] }
  0xae   : > { %828 = vst.msk [vmem:[%s1303_s4 + $0x4] sm:$0xf] %vm826_vm4, %v795_v19  ;;  %v683_v27 = vadd.f32 %v1290_v28, %v647_v25  ;;  %v655_v29 = vld [vmem:[#allocation2 + $0xc8] sm:$0xff] }
  0xaf   : > { %836 = vst.msk [vmem:[%s1303_s4 + $0x24] sm:$0xf] %vm826_vm4, %v803_v23  ;;  %v691_v31 = vadd.f32 %v1290_v28, %v655_v29  ;;  %v632_v32 = vld [vmem:[#allocation2 + $0x10] sm:$0xff]  ;;  %v293_v29 = vld [vmem:[#allocation2 + $0xa8] sm:$0xff] }
  0xb0   : > { %613 = vst.msk [vmem:[#allocation2 + $0x90] sm:$0xff] %vm239_vm1, %v580_v21  ;;  %vm715_vm9 = vcmp.ge.f32.partialorder %v683_v27, 0.0  ;;  %v747_v34 = vmul.f32 0.2, %v683_v27  ;;  %v668_v35 = vadd.f32 %v1290_v28, %v632_v32  ;;  %v640_v36 = vld [vmem:[#allocation2 + $0x50] sm:$0xff]  ;;  %v285_v21 = vld [vmem:[#allocation2 + $0x68] sm:$0xff] }
  0xb1   : > { %621 = vst.msk [vmem:[#allocation2 + $0xd0] sm:$0xff] %vm239_vm1, %v588_v24  ;;  %vm723_vm10 = vcmp.ge.f32.partialorder %v691_v31, 0.0  ;;  %v755_v37 = vmul.f32 0.2, %v691_v31  ;;  %v676_v38 = vadd.f32 %v1290_v28, %v640_v36 }
  0xb2   : > { %598 = vst.msk [vmem:[#allocation2 + $0x18] sm:$0xff] %vm239_vm1, %v565_v26  ;;  %v529_v39 = vpop.f32.mrf.mxu2  ;;  %v779_v41 = vsel %vm715_vm9, %v683_v27, %v747_v34  ;;  %vm700_vm11 = vcmp.ge.f32.partialorder %v668_v35, 0.0  ;;  %v732_v42 = vmul.f32 0.2, %v668_v35  ;;  %v492_v45 = vpop.f32.mrf.mxu0 }
  0xb3   : > { %v549_v40 = vpop.f32.mrf.mxu3  ;;  %606 = vst.msk [vmem:[#allocation2 + $0x58] sm:$0xff] %vm239_vm1, %v573_v30  ;;  %v581_v43 = vadd.f32 %v529_v39, %v291_v33  ;;  %v512_v46 = vpop.f32.mrf.mxu1  ;;  %v811_v47 = vpack.c.bf16 %v779_v41, %v779_v41  ;;  %v787_v48 = vsel %vm723_vm10, %v691_v31, %v755_v37  ;;  %vm708_vm12 = vcmp.ge.f32.partialorder %v676_v38, 0.0  ;;  %v301_v33 = vld [vmem:[#allocation2 + $0xe8] sm:$0xff] }
  0xb4   : > { %v740_v49 = vmul.f32 0.2, %v676_v38  ;;  %v819_v51 = vpack.c.bf16 %v787_v48, %v787_v48  ;;  %v764_v52 = vsel %vm700_vm11, %v668_v35, %v732_v42  ;;  %v589_v56 = vadd.f32 %v549_v40, %v299_v44  ;;  %v278_v35 = vld [vmem:[#allocation2 + $0x30] sm:$0xff] }
  0xb5   : > { %614 = vst.msk [vmem:[#allocation2 + $0x98] sm:$0xff] %vm239_vm1, %v581_v43  ;;  %v796_v54 = vpack.c.bf16 %v764_v52, %v764_v52  ;;  %v566_v59 = vadd.f32 %v492_v45, %v276_v50  ;;  %v574_v62 = vadd.f32 %v512_v46, %v284_v53 }
  0xb6   : > { %844 = vst.msk [vmem:[%s1303_s4 + $0x44] sm:$0xf] %vm826_vm4, %v811_v47  ;;  %v772_v55 = vsel %vm708_vm12, %v676_v38, %v740_v49 }
  0xb7   : > { %852 = vst.msk [vmem:[%s1303_s4 + $0x64] sm:$0xf] %vm826_vm4, %v819_v51  ;;  %v804_v57 = vpack.c.bf16 %v772_v55, %v772_v55  ;;  %v648_v58 = vld [vmem:[#allocation2 + $0x90] sm:$0xff] }
  0xb8   : > { %829 = vst.msk [vmem:[%s1303_s4 + $0x8] sm:$0xf] %vm826_vm4, %v796_v54  ;;  %v684_v60 = vadd.f32 %v1290_v28, %v648_v58  ;;  %v656_v61 = vld [vmem:[#allocation2 + $0xd0] sm:$0xff] }
  0xb9   : > { %837 = vst.msk [vmem:[%s1303_s4 + $0x28] sm:$0xf] %vm826_vm4, %v804_v57  ;;  %v692_v0 = vadd.f32 %v1290_v28, %v656_v61  ;;  %v633_v1 = vld [vmem:[#allocation2 + $0x18] sm:$0xff]  ;;  %v286_v61 = vld [vmem:[#allocation2 + $0x70] sm:$0xff] }
  0xba   : > { %vm716_vm13 = vcmp.ge.f32.partialorder %v684_v60, 0.0  ;;  %v748_v3 = vmul.f32 0.2, %v684_v60  ;;  %v669_v4 = vadd.f32 %v1290_v28, %v633_v1  ;;  %v641_v5 = vld [vmem:[#allocation2 + $0x58] sm:$0xff]  ;;  %622 = vst.msk [vmem:[#allocation2 + $0xd8] sm:$0xff] %vm239_vm1, %v589_v56  ;;  %v532_v6 = vpop.f32.mrf.mxu2  ;;  %v494_v11 = vpop.f32.mrf.mxu0  ;;  %v294_v1 = vld [vmem:[#allocation2 + $0xb0] sm:$0xff] }
  0xbb   : > { %v552_v7 = vpop.f32.mrf.mxu3  ;;  %vm724_vm14 = vcmp.ge.f32.partialorder %v692_v0, 0.0  ;;  %v756_v8 = vmul.f32 0.2, %v692_v0  ;;  %v677_v9 = vadd.f32 %v1290_v28, %v641_v5  ;;  %599 = vst.msk [vmem:[#allocation2 + $0x20] sm:$0xff] %vm239_vm1, %v566_v59  ;;  %v582_v10 = vadd.f32 %v532_v6, %v292_v63  ;;  %v514_v12 = vpop.f32.mrf.mxu1 }
  0xbc   : > { %v780_v13 = vsel %vm716_vm13, %v684_v60, %v748_v3  ;;  %vm701_vm15 = vcmp.ge.f32.partialorder %v669_v4, 0.0  ;;  %v733_v14 = vmul.f32 0.2, %v669_v4  ;;  %v649_v15 = vld [vmem:[#allocation2 + $0x98] sm:$0xff]  ;;  %607 = vst.msk [vmem:[#allocation2 + $0x60] sm:$0xff] %vm239_vm1, %v574_v62  ;;  %v590_v16 = vadd.f32 %v552_v7, %v300_v2 }
  0xbd   : > { %v812_v18 = vpack.c.bf16 %v780_v13, %v780_v13  ;;  %v788_v19 = vsel %vm724_vm14, %v692_v0, %v756_v8  ;;  %vm709_vm0 = vcmp.ge.f32.partialorder %v677_v9, 0.0  ;;  %v741_v20 = vmul.f32 0.2, %v677_v9  ;;  %615 = vst.msk [vmem:[#allocation2 + $0xa0] sm:$0xff] %vm239_vm1, %v582_v10 }
  0xbe   : > { %v820_v22 = vpack.c.bf16 %v788_v19, %v788_v19  ;;  %v765_v23 = vsel %vm701_vm15, %v669_v4, %v733_v14  ;;  %v685_v24 = vadd.f32 %v1290_v28, %v649_v15  ;;  %623 = vst.msk [vmem:[#allocation2 + $0xe0] sm:$0xff] %vm239_vm1, %v590_v16  ;;  %v567_v27 = vadd.f32 %v494_v11, %v277_v17  ;;  %v302_v4 = vld [vmem:[#allocation2 + $0xf0] sm:$0xff]  ;;  %v279_v11 = vld [vmem:[#allocation2 + $0x38] sm:$0xff] }
  0xbf   : > { %845 = vst.msk [vmem:[%s1303_s4 + $0x48] sm:$0xf] %vm826_vm4, %v812_v18  ;;  %v797_v25 = vpack.c.bf16 %v765_v23, %v765_v23  ;;  %v773_v26 = vsel %vm709_vm0, %v677_v9, %v741_v20  ;;  %v575_v32 = vadd.f32 %v514_v12, %v285_v21  ;;  %v287_v19 = vld [vmem:[#allocation2 + $0x78] sm:$0xff] }
  0xc0   : > { %853 = vst.msk [vmem:[%s1303_s4 + $0x68] sm:$0xf] %vm826_vm4, %v820_v22  ;;  %v805_v30 = vpack.c.bf16 %v773_v26, %v773_v26  ;;  %vm717_vm2 = vcmp.ge.f32.partialorder %v685_v24, 0.0  ;;  %v749_v31 = vmul.f32 0.2, %v685_v24 }
  0xc1   : > { %830 = vst.msk [vmem:[%s1303_s4 + $0xc] sm:$0xf] %vm826_vm4, %v797_v25  ;;  %v657_v34 = vld [vmem:[#allocation2 + $0xd8] sm:$0xff] }
  0xc2   : > { %838 = vst.msk [vmem:[%s1303_s4 + $0x2c] sm:$0xf] %vm826_vm4, %v805_v30  ;;  %v781_v36 = vsel %vm717_vm2, %v685_v24, %v749_v31  ;;  %v693_v37 = vadd.f32 %v1290_v28, %v657_v34  ;;  %v634_v38 = vld [vmem:[#allocation2 + $0x20] sm:$0xff]  ;;  %v534_v39 = vpop.f32.mrf.mxu2  ;;  %v497_v46 = vpop.f32.mrf.mxu0 }
  0xc3   : > { %v554_v40 = vpop.f32.mrf.mxu3  ;;  %v813_v41 = vpack.c.bf16 %v781_v36, %v781_v36  ;;  %v670_v42 = vadd.f32 %v1290_v28, %v634_v38  ;;  %v642_v43 = vld [vmem:[#allocation2 + $0x60] sm:$0xff]  ;;  %600 = vst.msk [vmem:[#allocation2 + $0x28] sm:$0xff] %vm239_vm1, %v567_v27  ;;  %v583_v44 = vadd.f32 %v534_v39, %v293_v29  ;;  %v517_v47 = vpop.f32.mrf.mxu1  ;;  %v568_v51 = vadd.f32 %v497_v46, %v278_v35  ;;  %v295_v38 = vld [vmem:[#allocation2 + $0xb8] sm:$0xff] }
  0xc4   : > { %v591_v45 = vadd.f32 %v554_v40, %v301_v33  ;;  %vm725_vm3 = vcmp.ge.f32.partialorder %v693_v37, 0.0  ;;  %v757_v48 = vmul.f32 0.2, %v693_v37  ;;  %v678_v49 = vadd.f32 %v1290_v28, %v642_v43  ;;  %v650_v50 = vld [vmem:[#allocation2 + $0xa0] sm:$0xff]  ;;  %608 = vst.msk [vmem:[#allocation2 + $0x68] sm:$0xff] %vm239_vm1, %v575_v32 }
  0xc5   : > { %846 = vst.msk [vmem:[%s1303_s4 + $0x4c] sm:$0xf] %vm826_vm4, %v813_v41  ;;  %vm702_vm5 = vcmp.ge.f32.partialorder %v670_v42, 0.0  ;;  %v734_v52 = vmul.f32 0.2, %v670_v42  ;;  %v686_v53 = vadd.f32 %v1290_v28, %v650_v50  ;;  %v658_v54 = vld [vmem:[#allocation2 + $0xe0] sm:$0xff]  ;;  %v576_v8 = vadd.f32 %v517_v47, %v286_v61 }
  0xc6   : > { %v789_v55 = vsel %vm725_vm3, %v693_v37, %v757_v48  ;;  %vm710_vm6 = vcmp.ge.f32.partialorder %v678_v49, 0.0  ;;  %v742_v56 = vmul.f32 0.2, %v678_v49  ;;  %v694_v57 = vadd.f32 %v1290_v28, %v658_v54  ;;  %616 = vst.msk [vmem:[#allocation2 + $0xa8] sm:$0xff] %vm239_vm1, %v583_v44  ;;  %v303_v41 = vld [vmem:[#allocation2 + $0xf8] sm:$0xff] }
  0xc7   : > { %v821_v58 = vpack.c.bf16 %v789_v55, %v789_v55  ;;  %v766_v59 = vsel %vm702_vm5, %v670_v42, %v734_v52  ;;  %vm718_vm7 = vcmp.ge.f32.partialorder %v686_v53, 0.0  ;;  %v750_v60 = vmul.f32 0.2, %v686_v53  ;;  %624 = vst.msk [vmem:[#allocation2 + $0xe8] sm:$0xff] %vm239_vm1, %v591_v45 }
  0xc8   : > { %v798_v62 = vpack.c.bf16 %v766_v59, %v766_v59  ;;  %v774_v63 = vsel %vm710_vm6, %v678_v49, %v742_v56  ;;  %vm726_vm8 = vcmp.ge.f32.partialorder %v694_v57, 0.0  ;;  %v758_v0 = vmul.f32 0.2, %v694_v57  ;;  %601 = vst.msk [vmem:[#allocation2 + $0x30] sm:$0xff] %vm239_vm1, %v568_v51 }
  0xc9   : > { %854 = vst.msk [vmem:[%s1303_s4 + $0x6c] sm:$0xf] %vm826_vm4, %v821_v58  ;;  %v806_v2 = vpack.c.bf16 %v774_v63, %v774_v63  ;;  %v782_v3 = vsel %vm718_vm7, %v686_v53, %v750_v60 }
  0xca   : > { %831 = vst.msk [vmem:[%s1303_s4 + $0x10] sm:$0xf] %vm826_vm4, %v798_v62  ;;  %v814_v5 = vpack.c.bf16 %v782_v3, %v782_v3  ;;  %v790_v6 = vsel %vm726_vm8, %v694_v57, %v758_v0  ;;  %v635_v7 = vld [vmem:[#allocation2 + $0x28] sm:$0xff]  ;;  %v537_v9 = vpop.f32.mrf.mxu2  ;;  %v499_v16 = vpop.f32.mrf.mxu0 }
  0xcb   : > { %v557_v10 = vpop.f32.mrf.mxu3  ;;  %839 = vst.msk [vmem:[%s1303_s4 + $0x30] sm:$0xf] %vm826_vm4, %v806_v2  ;;  %v822_v12 = vpack.c.bf16 %v790_v6, %v790_v6  ;;  %v671_v13 = vadd.f32 %v1290_v28, %v635_v7  ;;  %v643_v14 = vld [vmem:[#allocation2 + $0x68] sm:$0xff]  ;;  %v584_v15 = vadd.f32 %v537_v9, %v294_v1  ;;  %v519_v20 = vpop.f32.mrf.mxu1  ;;  %v569_v23 = vadd.f32 %v499_v16, %v279_v11 }
  0xcc   : > { %847 = vst.msk [vmem:[%s1303_s4 + $0x50] sm:$0xf] %vm826_vm4, %v814_v5  ;;  %v679_v17 = vadd.f32 %v1290_v28, %v643_v14  ;;  %v592_v18 = vadd.f32 %v557_v10, %v302_v4  ;;  %v577_v31 = vadd.f32 %v519_v20, %v287_v19 }
  0xcd   : > { %855 = vst.msk [vmem:[%s1303_s4 + $0x70] sm:$0xf] %vm826_vm4, %v822_v12  ;;  %vm703_vm9 = vcmp.ge.f32.partialorder %v671_v13, 0.0  ;;  %v735_v21 = vmul.f32 0.2, %v671_v13  ;;  %v651_v22 = vld [vmem:[#allocation2 + $0xa8] sm:$0xff] }
  0xce   : > { %vm711_vm10 = vcmp.ge.f32.partialorder %v679_v17, 0.0  ;;  %v743_v24 = vmul.f32 0.2, %v679_v17  ;;  %v687_v25 = vadd.f32 %v1290_v28, %v651_v22  ;;  %v659_v26 = vld [vmem:[#allocation2 + $0xe8] sm:$0xff]  ;;  %609 = vst.msk [vmem:[#allocation2 + $0x70] sm:$0xff] %vm239_vm1, %v576_v8 }
  0xcf   : > { %v767_v27 = vsel %vm703_vm9, %v671_v13, %v735_v21  ;;  %v695_v29 = vadd.f32 %v1290_v28, %v659_v26  ;;  %v636_v30 = vld [vmem:[#allocation2 + $0x30] sm:$0xff]  ;;  %617 = vst.msk [vmem:[#allocation2 + $0xb0] sm:$0xff] %vm239_vm1, %v584_v15 }
  0xd0   : > { %v799_v32 = vpack.c.bf16 %v767_v27, %v767_v27  ;;  %v775_v33 = vsel %vm711_vm10, %v679_v17, %v743_v24  ;;  %vm719_vm11 = vcmp.ge.f32.partialorder %v687_v25, 0.0  ;;  %v751_v34 = vmul.f32 0.2, %v687_v25  ;;  %625 = vst.msk [vmem:[#allocation2 + $0xf0] sm:$0xff] %vm239_vm1, %v592_v18 }
  0xd1   : > { %v807_v35 = vpack.c.bf16 %v775_v33, %v775_v33  ;;  %vm727_vm12 = vcmp.ge.f32.partialorder %v695_v29, 0.0  ;;  %v759_v36 = vmul.f32 0.2, %v695_v29  ;;  %v672_v37 = vadd.f32 %v1290_v28, %v636_v30  ;;  %602 = vst.msk [vmem:[#allocation2 + $0x38] sm:$0xff] %vm239_vm1, %v569_v23 }
  0xd2   : > { %832 = vst.msk [vmem:[%s1303_s4 + $0x14] sm:$0xf] %vm826_vm4, %v799_v32  ;;  %v783_v39 = vsel %vm719_vm11, %v687_v25, %v751_v34  ;;  %v539_v40 = vpop.f32.mrf.mxu2 }
  0xd3   : > { %v559_v42 = vpop.f32.mrf.mxu3  ;;  %840 = vst.msk [vmem:[%s1303_s4 + $0x34] sm:$0xf] %vm826_vm4, %v807_v35  ;;  %v815_v43 = vpack.c.bf16 %v783_v39, %v783_v39  ;;  %v791_v44 = vsel %vm727_vm12, %v695_v29, %v759_v36  ;;  %vm704_vm13 = vcmp.ge.f32.partialorder %v672_v37, 0.0  ;;  %v736_v45 = vmul.f32 0.2, %v672_v37 }
  0xd4   : > { %v823_v46 = vpack.c.bf16 %v791_v44, %v791_v44  ;;  %610 = vst.msk [vmem:[#allocation2 + $0x78] sm:$0xff] %vm239_vm1, %v577_v31  ;;  %v585_v47 = vadd.f32 %v539_v40, %v295_v38  ;;  %v593_v50 = vadd.f32 %v559_v42, %v303_v41 }
  0xd5   : > { %848 = vst.msk [vmem:[%s1303_s4 + $0x54] sm:$0xf] %vm826_vm4, %v815_v43  ;;  %v768_v48 = vsel %vm704_vm13, %v672_v37, %v736_v45  ;;  %v644_v49 = vld [vmem:[#allocation2 + $0x70] sm:$0xff] }
  0xd6   : > { %856 = vst.msk [vmem:[%s1303_s4 + $0x74] sm:$0xf] %vm826_vm4, %v823_v46  ;;  %v800_v51 = vpack.c.bf16 %v768_v48, %v768_v48  ;;  %v680_v52 = vadd.f32 %v1290_v28, %v644_v49  ;;  %v652_v53 = vld [vmem:[#allocation2 + $0xb0] sm:$0xff] }
  0xd7   : > { %v688_v54 = vadd.f32 %v1290_v28, %v652_v53  ;;  %v660_v55 = vld [vmem:[#allocation2 + $0xf0] sm:$0xff]  ;;  %618 = vst.msk [vmem:[#allocation2 + $0xb8] sm:$0xff] %vm239_vm1, %v585_v47 }
  0xd8   : > { %833 = vst.msk [vmem:[%s1303_s4 + $0x18] sm:$0xf] %vm826_vm4, %v800_v51  ;;  %vm712_vm14 = vcmp.ge.f32.partialorder %v680_v52, 0.0  ;;  %v744_v56 = vmul.f32 0.2, %v680_v52  ;;  %v696_v57 = vadd.f32 %v1290_v28, %v660_v55  ;;  %v637_v58 = vld [vmem:[#allocation2 + $0x38] sm:$0xff] }
  0xd9   : > { %vm720_vm15 = vcmp.ge.f32.partialorder %v688_v54, 0.0  ;;  %v752_v59 = vmul.f32 0.2, %v688_v54  ;;  %v673_v60 = vadd.f32 %v1290_v28, %v637_v58  ;;  %626 = vst.msk [vmem:[#allocation2 + $0xf8] sm:$0xff] %vm239_vm1, %v593_v50 }
  0xda   : > { %v776_v61 = vsel %vm712_vm14, %v680_v52, %v744_v56  ;;  %vm728_vm0 = vcmp.ge.f32.partialorder %v696_v57, 0.0  ;;  %v760_v62 = vmul.f32 0.2, %v696_v57 }
  0xdb   : > { %v808_v63 = vpack.c.bf16 %v776_v61, %v776_v61  ;;  %v784_v0 = vsel %vm720_vm15, %v688_v54, %v752_v59  ;;  %vm705_vm2 = vcmp.ge.f32.partialorder %v673_v60, 0.0  ;;  %v737_v1 = vmul.f32 0.2, %v673_v60  ;;  %v645_v2 = vld [vmem:[#allocation2 + $0x78] sm:$0xff] }
  0xdc   : > { %v816_v3 = vpack.c.bf16 %v784_v0, %v784_v0  ;;  %v792_v4 = vsel %vm728_vm0, %v696_v57, %v760_v62  ;;  %v681_v5 = vadd.f32 %v1290_v28, %v645_v2 }
  0xdd   : > { %841 = vst.msk [vmem:[%s1303_s4 + $0x38] sm:$0xf] %vm826_vm4, %v808_v63  ;;  %v824_v6 = vpack.c.bf16 %v792_v4, %v792_v4  ;;  %v769_v7 = vsel %vm705_vm2, %v673_v60, %v737_v1 }
  0xde   : > { %849 = vst.msk [vmem:[%s1303_s4 + $0x58] sm:$0xf] %vm826_vm4, %v816_v3  ;;  %v801_v8 = vpack.c.bf16 %v769_v7, %v769_v7  ;;  %vm713_vm1 = vcmp.ge.f32.partialorder %v681_v5, 0.0  ;;  %v745_v9 = vmul.f32 0.2, %v681_v5  ;;  %v653_v10 = vld [vmem:[#allocation2 + $0xb8] sm:$0xff] }
  0xdf   : > { %857 = vst.msk [vmem:[%s1303_s4 + $0x78] sm:$0xf] %vm826_vm4, %v824_v6  ;;  %v689_v11 = vadd.f32 %v1290_v28, %v653_v10 }
  0xe0   : > { %834 = vst.msk [vmem:[%s1303_s4 + $0x1c] sm:$0xf] %vm826_vm4, %v801_v8  ;;  %v777_v12 = vsel %vm713_vm1, %v681_v5, %v745_v9  ;;  %v661_v13 = vld [vmem:[#allocation2 + $0xf8] sm:$0xff] }
  0xe1   : > { %v809_v14 = vpack.c.bf16 %v777_v12, %v777_v12  ;;  %vm721_vm3 = vcmp.ge.f32.partialorder %v689_v11, 0.0  ;;  %v753_v15 = vmul.f32 0.2, %v689_v11  ;;  %v697_v16 = vadd.f32 %v1290_v28, %v661_v13 }
  0xe3   : > { %842 = vst.msk [vmem:[%s1303_s4 + $0x3c] sm:$0xf] %vm826_vm4, %v809_v14  ;;  %v785_v17 = vsel %vm721_vm3, %v689_v11, %v753_v15  ;;  %vm729_vm5 = vcmp.ge.f32.partialorder %v697_v16, 0.0  ;;  %v761_v18 = vmul.f32 0.2, %v697_v16 }
  0xe4   : > { %v817_v19 = vpack.c.bf16 %v785_v17, %v785_v17 }
  0xe5   : > { %v793_v20 = vsel %vm729_vm5, %v697_v16, %v761_v18 }
  0xe6   : > { %850 = vst.msk [vmem:[%s1303_s4 + $0x5c] sm:$0xf] %vm826_vm4, %v817_v19  ;;  %v825_v21 = vpack.c.bf16 %v793_v20, %v793_v20 }
  0xe8   : > { %858 = vst.msk [vmem:[%s1303_s4 + $0x7c] sm:$0xf] %vm826_vm4, %v825_v21 }
  0xe9 PF: > { %s14_s14 = sadd.s32 1, %s1165_s14   ;;  %s1438_s12 = smov %s1161_s13 }
  0xea   : > { %p11_p8 = scmp.ge.s32.totalorder %s14_s14, 4   ;;  %s1439_s13 = smov %s1441_s16 }
  0xec   :  { %13 = sbr.rel (!%p11_p8) target bundleno = 2 (0x2), region = 78 }
  0xf1   :  { %881 = vsyncpa [#allocation4], 1 }
  0xf2   :  { %883 = vsyncpa [#allocation4 + $0x1], 1 }

// kernel: discriminator_forward.9
= control target key start
LH: loop header
LB: loop body
LE: loop exit
PB: predicated region body
PF: predicated region fallthrough
CT: control target
= control target key end

     0   :  { %s1720_s15 = smov 0   ;;  %s1722_s16 = smov 0   ;;  %s2009_s0 = inlined_call_operand.vmem [shape: bf16[128,1024], index: 0, kind: input, shape index: {}]   ;;  %s2010_s1 = inlined_call_operand.vmem [shape: bf16[1024,128], index: 1, kind: input, shape index: {}]   ;;  %s2011_s2 = inlined_call_operand.vmem [shape: f32[128,128], index: 2, kind: output, shape index: {0}]   ;;  %s2012_s3 = inlined_call_operand.vmem [shape: f32[1,128], index: 3, kind: output, shape index: {1}]   ;;  %s2013_s4 = inlined_call_operand.vmem [shape: f32[1,128], index: 4, kind: output, shape index: {2}]  }
   0x1   :  { %s1724_s17 = smov 0   ;;  %s1726_s18 = smov 0  }
   0x2   :  { %s1728_s19 = smov 0  }
   0x3 LB: > { %s24_s20 = sadd.s32 1, %s1688_s18  ;;  %p43_p1 = scmp.ne.s32.totalorder %s1680_s16, %s1676_s15  ;;  %s1692_s19 = sphi %s1728_s19, %s15_s19   ;;  %s1688_s18 = sphi %s1726_s18, %s2017_s18   ;;  %s1684_s17 = sphi %s1724_s17, %s2016_s17   ;;  %s1680_s16 = sphi %s1722_s16, %s2015_s16   ;;  %s1676_s15 = sphi %s1720_s15, %s2014_s15  }
   0x4   : > { %p25_p0 = scmp.ge.s32.totalorder %s24_s20, 2  ;;  %p44_p2 = scmp.eq.s32.totalorder %s1692_s19, 0 }
   0x5   : > { %s36_s22 = sadd.s32 1, %s1680_s16  ;;  %p1276_p5 = scmp.ge.s32.totalorder %s1692_s19, 2 }
   0x6   : > { %s2019_s20 = smov (%p25_p0, %s24_s20), 0  ;;  %p45_p3 = por %p44_p2, %p43_p1 }
   0x7   : > { %s32_s21 = ssub.s32 %s1688_s18, %s2019_s20  ;;  %173 = sbr.rel (%p1276_p5) target bundleno = 48 (0x30), region = 16 }
   0x8   : > { %p34_p4 = scmp.eq.s32.totalorder %s32_s21, 0 }
   0xa   : > { %s1755_s23 = scalar_select %p34_p4, %s1680_s16, %s36_s22  }
   0xc   : > { %176 = sbr.rel (!%p45_p3) target bundleno = 48 (0x30), region = 20  ;;  %s178_s24 = sand.u32 (%p45_p3), 1, %s1680_s16  }
   0xd   : > { %s1548_s25 = sshll.u32 (%p45_p3), %s1688_s18, 4  ;;  %s1277_s26 = sshll.u32 (%p45_p3), %s178_s24, 8 }
   0xe   : > { %s1763_s29 = scalar_lea.vmem (%p45_p3), %s2009_s0, %s1548_s25  ;;  %s1768_s30 = scalar_lea.vmem (%p45_p3), [#allocation3], %s1277_s26 }
   0xf   : > { %v199_v0 = vld [vmem:[%s1763_s29] sm:$0xff] (%p45_p3)  ;;  %v201_v1 = vld [vmem:[%s1763_s29 + $0x8] sm:$0xff] (%p45_p3) }
  0x10   : > { %v203_v2 = vld [vmem:[%s1763_s29 + $0x20] sm:$0xff] (%p45_p3)  ;;  %200 = vst [vmem:[%s1768_s30] sm:$0xff] (%p45_p3), %v199_v0  ;;  %v205_v3 = vld [vmem:[%s1763_s29 + $0x28] sm:$0xff] (%p45_p3) }
  0x11   : > { %202 = vst [vmem:[%s1768_s30 + $0x8] sm:$0xff] %v201_v1  ;;  %v207_v4 = vld [vmem:[%s1763_s29 + $0x40] sm:$0xff]  ;;  %v209_v5 = vld [vmem:[%s1763_s29 + $0x48] sm:$0xff] }
  0x12   : > { %204 = vst [vmem:[%s1768_s30 + $0x10] sm:$0xff] %v203_v2  ;;  %v211_v6 = vld [vmem:[%s1763_s29 + $0x60] sm:$0xff]  ;;  %v213_v7 = vld [vmem:[%s1763_s29 + $0x68] sm:$0xff] }
  0x13   : > { %206 = vst [vmem:[%s1768_s30 + $0x18] sm:$0xff] %v205_v3  ;;  %v215_v8 = vld [vmem:[%s1763_s29 + $0x80] sm:$0xff]  ;;  %v217_v9 = vld [vmem:[%s1763_s29 + $0x88] sm:$0xff] }
  0x14   : > { %208 = vst [vmem:[%s1768_s30 + $0x20] sm:$0xff] %v207_v4  ;;  %v219_v10 = vld [vmem:[%s1763_s29 + $0xa0] sm:$0xff]  ;;  %v221_v11 = vld [vmem:[%s1763_s29 + $0xa8] sm:$0xff] }
  0x15   : > { %210 = vst [vmem:[%s1768_s30 + $0x28] sm:$0xff] %v209_v5  ;;  %v223_v12 = vld [vmem:[%s1763_s29 + $0xc0] sm:$0xff]  ;;  %v225_v13 = vld [vmem:[%s1763_s29 + $0xc8] sm:$0xff] }
  0x16   : > { %212 = vst [vmem:[%s1768_s30 + $0x30] sm:$0xff] %v211_v6  ;;  %v227_v14 = vld [vmem:[%s1763_s29 + $0xe0] sm:$0xff]  ;;  %v229_v15 = vld [vmem:[%s1763_s29 + $0xe8] sm:$0xff] }
  0x17   : > { %214 = vst [vmem:[%s1768_s30 + $0x38] sm:$0xff] %v213_v7  ;;  %v231_v16 = vld [vmem:[%s1763_s29 + $0x100] sm:$0xff]  ;;  %v233_v17 = vld [vmem:[%s1763_s29 + $0x108] sm:$0xff] }
  0x18   : > { %216 = vst [vmem:[%s1768_s30 + $0x40] sm:$0xff] %v215_v8  ;;  %v235_v18 = vld [vmem:[%s1763_s29 + $0x120] sm:$0xff]  ;;  %v237_v19 = vld [vmem:[%s1763_s29 + $0x128] sm:$0xff] }
  0x19   : > { %218 = vst [vmem:[%s1768_s30 + $0x48] sm:$0xff] %v217_v9  ;;  %v239_v20 = vld [vmem:[%s1763_s29 + $0x140] sm:$0xff]  ;;  %v241_v21 = vld [vmem:[%s1763_s29 + $0x148] sm:$0xff] }
  0x1a   : > { %220 = vst [vmem:[%s1768_s30 + $0x50] sm:$0xff] %v219_v10  ;;  %v243_v22 = vld [vmem:[%s1763_s29 + $0x160] sm:$0xff]  ;;  %v245_v23 = vld [vmem:[%s1763_s29 + $0x168] sm:$0xff] }
  0x1b   : > { %222 = vst [vmem:[%s1768_s30 + $0x58] sm:$0xff] %v221_v11  ;;  %v247_v24 = vld [vmem:[%s1763_s29 + $0x180] sm:$0xff]  ;;  %v249_v25 = vld [vmem:[%s1763_s29 + $0x188] sm:$0xff] }
  0x1c   : > { %224 = vst [vmem:[%s1768_s30 + $0x60] sm:$0xff] %v223_v12  ;;  %v251_v26 = vld [vmem:[%s1763_s29 + $0x1a0] sm:$0xff]  ;;  %v253_v27 = vld [vmem:[%s1763_s29 + $0x1a8] sm:$0xff] }
  0x1d   : > { %226 = vst [vmem:[%s1768_s30 + $0x68] sm:$0xff] %v225_v13  ;;  %v255_v28 = vld [vmem:[%s1763_s29 + $0x1c0] sm:$0xff]  ;;  %v257_v29 = vld [vmem:[%s1763_s29 + $0x1c8] sm:$0xff] }
  0x1e   : > { %228 = vst [vmem:[%s1768_s30 + $0x70] sm:$0xff] %v227_v14  ;;  %v259_v30 = vld [vmem:[%s1763_s29 + $0x1e0] sm:$0xff]  ;;  %v261_v31 = vld [vmem:[%s1763_s29 + $0x1e8] sm:$0xff] }
  0x1f   : > { %230 = vst [vmem:[%s1768_s30 + $0x78] sm:$0xff] %v229_v15 }
  0x20   : > { %232 = vst [vmem:[%s1768_s30 + $0x80] sm:$0xff] %v231_v16 }
  0x21   : > { %234 = vst [vmem:[%s1768_s30 + $0x88] sm:$0xff] %v233_v17 }
  0x22   : > { %236 = vst [vmem:[%s1768_s30 + $0x90] sm:$0xff] %v235_v18 }
  0x23   : > { %238 = vst [vmem:[%s1768_s30 + $0x98] sm:$0xff] %v237_v19 }
  0x24   : > { %240 = vst [vmem:[%s1768_s30 + $0xa0] sm:$0xff] %v239_v20 }
  0x25   : > { %242 = vst [vmem:[%s1768_s30 + $0xa8] sm:$0xff] %v241_v21 }
  0x26   : > { %244 = vst [vmem:[%s1768_s30 + $0xb0] sm:$0xff] %v243_v22 }
  0x27   : > { %246 = vst [vmem:[%s1768_s30 + $0xb8] sm:$0xff] %v245_v23 }
  0x28   : > { %248 = vst [vmem:[%s1768_s30 + $0xc0] sm:$0xff] %v247_v24 }
  0x29   : > { %250 = vst [vmem:[%s1768_s30 + $0xc8] sm:$0xff] %v249_v25 }
  0x2a   : > { %252 = vst [vmem:[%s1768_s30 + $0xd0] sm:$0xff] %v251_v26 }
  0x2b   : > { %254 = vst [vmem:[%s1768_s30 + $0xd8] sm:$0xff] %v253_v27 }
  0x2c   : > { %256 = vst [vmem:[%s1768_s30 + $0xe0] sm:$0xff] %v255_v28 }
  0x2d   : > { %258 = vst [vmem:[%s1768_s30 + $0xe8] sm:$0xff] %v257_v29 }
  0x2e   : > { %260 = vst [vmem:[%s1768_s30 + $0xf0] sm:$0xff] %v259_v30 }
  0x2f   : > { %262 = vst [vmem:[%s1768_s30 + $0xf8] sm:$0xff] %v261_v31 }
  0x30 PF: > { %p1280_p6 = scmp.ge.s32.totalorder %s1692_s19, 1  ;;  %p276_p7 = scmp.lt.s32.totalorder %s1692_s19, 3 }
  0x32   : > { %p277_p8 = pnand %p1280_p6, %p276_p7 }
  0x33   : > { %s283_s5 = sand.u32 (!%p277_p8), 1, %s1676_s15   ;;  %s1282_s6 = sshll.u32 (!%p277_p8), %s1684_s17, 6 }
  0x34   : > { %280 = sbr.rel (%p277_p8) target bundleno = 418 (0x1a2), region = 47  ;;  %s1281_s7 = sshll.u32 (!%p277_p8), %s283_s5, 8 }
  0x35   : > { %p322_p9 = scmp.lt.s32.totalorder (!%p277_p8), %s1282_s6, 127  ;;  %s1840_s12 = scalar_lea.vmem (!%p277_p8), [#allocation3], %s1281_s7 }
  0x36   : > { %p1284_p10 = scmp.ne.s32.totalorder (!%p277_p8), %s1684_s17, 0 }
  0x39   : > { %s2021_s6 = smov (!%p322_p9, %s1282_s6), 127  ;;  %342 = sbr.rel (%p1284_p10) target bundleno = 79 (0x4f), region = 55 }
  0x3a   : > { %s1283_s8 = sshll.u32 %s2021_s6, 2 }
  0x3b   : > { %s1838_s11 = scalar_lea.vmem %s2010_s1, %s1283_s8 }
  0x3e   : > { %v1694_v32 = vmov 0.0  }
  0x3f   : > { %343 = vst [vmem:[#allocation2 + $0x30] sm:$0xff] %v1694_v32 }
  0x40   : > { %344 = vst [vmem:[#allocation2] sm:$0xff] %v1694_v32 }
  0x41   : > { %345 = vst [vmem:[#allocation2 + $0x58] sm:$0xff] %v1694_v32 }
  0x42   : > { %346 = vst [vmem:[#allocation2 + $0x18] sm:$0xff] %v1694_v32 }
  0x43   : > { %347 = vst [vmem:[#allocation2 + $0x50] sm:$0xff] %v1694_v32 }
  0x44   : > { %348 = vst [vmem:[#allocation2 + $0x68] sm:$0xff] %v1694_v32 }
  0x45   : > { %349 = vst [vmem:[#allocation2 + $0x8] sm:$0xff] %v1694_v32 }
  0x46   : > { %350 = vst [vmem:[#allocation2 + $0x48] sm:$0xff] %v1694_v32 }
  0x47   : > { %351 = vst [vmem:[#allocation2 + $0x40] sm:$0xff] %v1694_v32 }
  0x48   : > { %352 = vst [vmem:[#allocation2 + $0x20] sm:$0xff] %v1694_v32 }
  0x49   : > { %353 = vst [vmem:[#allocation2 + $0x10] sm:$0xff] %v1694_v32 }
  0x4a   : > { %354 = vst [vmem:[#allocation2 + $0x38] sm:$0xff] %v1694_v32 }
  0x4b   : > { %355 = vst [vmem:[#allocation2 + $0x60] sm:$0xff] %v1694_v32 }
  0x4c   : > { %356 = vst [vmem:[#allocation2 + $0x70] sm:$0xff] %v1694_v32 }
  0x4d   : > { %357 = vst [vmem:[#allocation2 + $0x78] sm:$0xff] %v1694_v32 }
  0x4e   : > { %358 = vst [vmem:[#allocation2 + $0x28] sm:$0xff] %v1694_v32 }
  0x4f PF: > { %v1588_v33 = vld [vmem:[%s1838_s11 + $0x38] sm:$0xff]  ;;  %v1587_v37 = vld [vmem:[%s1838_s11 + $0x30] sm:$0xff]  ;;  %v1586_v41 = vld [vmem:[%s1838_s11 + $0x28] sm:$0xff]  ;;  %p1541_p11 = scmp.ne.s32.totalorder %s1684_s17, 1 }
  0x50   : > { %v1596_v34 = vld [vmem:[%s1838_s11 + $0x78] sm:$0xff]  ;;  %823 = vmatpush.bf16.msra.mxu0 %v1588_v33  ;;  %v1595_v38 = vld [vmem:[%s1838_s11 + $0x70] sm:$0xff]  ;;  %v1594_v42 = vld [vmem:[%s1838_s11 + $0x68] sm:$0xff] }
  0x51   : > { %v1604_v35 = vld [vmem:[%s1838_s11 + $0xb8] sm:$0xff]  ;;  %872 = vmatpush.bf16.msra.mxu1 %v1596_v34  ;;  %v1603_v39 = vld [vmem:[%s1838_s11 + $0xb0] sm:$0xff]  ;;  %v1602_v43 = vld [vmem:[%s1838_s11 + $0xa8] sm:$0xff] }
  0x52   : > { %v1612_v36 = vld [vmem:[%s1838_s11 + $0xf8] sm:$0xff]  ;;  %921 = vmatpush.bf16.msra.mxu2 %v1604_v35  ;;  %v1611_v40 = vld [vmem:[%s1838_s11 + $0xf0] sm:$0xff]  ;;  %v1610_v44 = vld [vmem:[%s1838_s11 + $0xe8] sm:$0xff] }
  0x53   : > { %970 = vmatpush.bf16.msra.mxu3 %v1612_v36  ;;  %v1585_v45 = vld [vmem:[%s1838_s11 + $0x20] sm:$0xff]  ;;  %v1584_v49 = vld [vmem:[%s1838_s11 + $0x18] sm:$0xff]  ;;  %v1583_v53 = vld [vmem:[%s1838_s11 + $0x10] sm:$0xff] }
  0x54   : > { %824 = vmatpush.bf16.msra.mxu0 %v1587_v37  ;;  %v1593_v46 = vld [vmem:[%s1838_s11 + $0x60] sm:$0xff]  ;;  %v1592_v50 = vld [vmem:[%s1838_s11 + $0x58] sm:$0xff]  ;;  %v1591_v54 = vld [vmem:[%s1838_s11 + $0x50] sm:$0xff] }
  0x55   : > { %873 = vmatpush.bf16.msra.mxu1 %v1595_v38  ;;  %v1601_v47 = vld [vmem:[%s1838_s11 + $0xa0] sm:$0xff]  ;;  %v1600_v51 = vld [vmem:[%s1838_s11 + $0x98] sm:$0xff]  ;;  %v1599_v55 = vld [vmem:[%s1838_s11 + $0x90] sm:$0xff] }
  0x56   : > { %922 = vmatpush.bf16.msra.mxu2 %v1603_v39  ;;  %v1609_v48 = vld [vmem:[%s1838_s11 + $0xe0] sm:$0xff]  ;;  %v1608_v52 = vld [vmem:[%s1838_s11 + $0xd8] sm:$0xff]  ;;  %v1607_v56 = vld [vmem:[%s1838_s11 + $0xd0] sm:$0xff] }
  0x57   : > { %971 = vmatpush.bf16.msra.mxu3 %v1611_v40  ;;  %v1582_v57 = vld [vmem:[%s1838_s11 + $0x8] sm:$0xff]  ;;  %v1581_v61 = vld [vmem:[%s1838_s11] sm:$0xff]  ;;  %v1551_v2 = vld [vmem:[%s1840_s12 + $0xc] sm:$0xf0] }
  0x58   : > { %825 = vmatpush.bf16.msra.mxu0 %v1586_v41  ;;  %v1590_v58 = vld [vmem:[%s1838_s11 + $0x48] sm:$0xff]  ;;  %v1589_v62 = vld [vmem:[%s1838_s11 + $0x40] sm:$0xff]  ;;  %v1289_v4 = vld [vmem:[%s1840_s12 + $0x10] sm:$0xf0] }
  0x59   : > { %874 = vmatpush.bf16.msra.mxu1 %v1594_v42  ;;  %v1598_v59 = vld [vmem:[%s1838_s11 + $0x88] sm:$0xff]  ;;  %v1597_v63 = vld [vmem:[%s1838_s11 + $0x80] sm:$0xff]  ;;  %v1552_v6 = vld [vmem:[%s1840_s12 + $0x14] sm:$0xf0] }
  0x5a   : > { %923 = vmatpush.bf16.msra.mxu2 %v1602_v43  ;;  %v1606_v60 = vld [vmem:[%s1838_s11 + $0xc8] sm:$0xff]  ;;  %v1605_v0 = vld [vmem:[%s1838_s11 + $0xc0] sm:$0xff]  ;;  %v1297_v8 = vld [vmem:[%s1840_s12 + $0x18] sm:$0xf0] }
  0x5b   : > { %972 = vmatpush.bf16.msra.mxu3 %v1610_v44  ;;  %v1287_v1 = vld [vmem:[%s1840_s12] sm:$0xf]  ;;  %v1549_v3 = vld [vmem:[%s1840_s12 + $0x4] sm:$0xf]  ;;  %v1295_v5 = vld [vmem:[%s1840_s12 + $0x8] sm:$0xf] }
  0x5c   : > { %826 = vmatpush.bf16.msra.mxu0 %v1585_v45  ;;  %v1550_v7 = vld [vmem:[%s1840_s12 + $0xc] sm:$0xf]  ;;  %v1288_v9 = vor.u32 %v1551_v2, %v1287_v1  ;;  %v1292_v10 = vor.u32 %v1549_v3, %v1289_v4  ;;  %v1296_v11 = vor.u32 %v1552_v6, %v1295_v5  ;;  %v1303_v13 = vld [vmem:[%s1840_s12 + $0x20] sm:$0xf]  ;;  %v1555_v14 = vld [vmem:[%s1840_s12 + $0x2c] sm:$0xf0] }
  0x5d   : > { %875 = vmatpush.bf16.msra.mxu1 %v1593_v46  ;;  %v1300_v12 = vor.u32 %v1550_v7, %v1297_v8  ;;  %v1553_v15 = vld [vmem:[%s1840_s12 + $0x24] sm:$0xf]  ;;  %v1305_v16 = vld [vmem:[%s1840_s12 + $0x30] sm:$0xf0]  ;;  %v1311_v17 = vld [vmem:[%s1840_s12 + $0x28] sm:$0xf]  ;;  %v1304_v21 = vor.u32 %v1555_v14, %v1303_v13 }
  0x5e   : > { %924 = vmatpush.bf16.msra.mxu2 %v1601_v47  ;;  %v1556_v18 = vld [vmem:[%s1840_s12 + $0x34] sm:$0xf0]  ;;  %v1554_v19 = vld [vmem:[%s1840_s12 + $0x2c] sm:$0xf]  ;;  %v1313_v20 = vld [vmem:[%s1840_s12 + $0x38] sm:$0xf0]  ;;  %v1308_v22 = vor.u32 %v1553_v15, %v1305_v16 }
  0x5f   : > { %973 = vmatpush.bf16.msra.mxu3 %v1609_v48  ;;  %v1312_v23 = vor.u32 %v1556_v18, %v1311_v17  ;;  %v1316_v24 = vor.u32 %v1554_v19, %v1313_v20  ;;  %v1319_v25 = vld [vmem:[%s1840_s12 + $0x40] sm:$0xf]  ;;  %v1559_v26 = vld [vmem:[%s1840_s12 + $0x4c] sm:$0xf0]  ;;  %v1557_v27 = vld [vmem:[%s1840_s12 + $0x44] sm:$0xf] }
  0x60   : > { %827 = vmatpush.bf16.msra.mxu0 %v1584_v49  ;;  %v1321_v28 = vld [vmem:[%s1840_s12 + $0x50] sm:$0xf0]  ;;  %v1327_v29 = vld [vmem:[%s1840_s12 + $0x48] sm:$0xf]  ;;  %v1560_v30 = vld [vmem:[%s1840_s12 + $0x54] sm:$0xf0]  ;;  %v1320_v33 = vor.u32 %v1559_v26, %v1319_v25 }
  0x61   : > { %876 = vmatpush.bf16.msra.mxu1 %v1592_v50  ;;  %v1558_v31 = vld [vmem:[%s1840_s12 + $0x4c] sm:$0xf]  ;;  %v1329_v32 = vld [vmem:[%s1840_s12 + $0x58] sm:$0xf0]  ;;  %v1324_v34 = vor.u32 %v1557_v27, %v1321_v28  ;;  %v1328_v35 = vor.u32 %v1560_v30, %v1327_v29  ;;  %v1335_v37 = vld [vmem:[%s1840_s12 + $0x60] sm:$0xf] }
  0x62   : > { %925 = vmatpush.bf16.msra.mxu2 %v1600_v51  ;;  %v1332_v36 = vor.u32 %v1558_v31, %v1329_v32  ;;  %v1563_v38 = vld [vmem:[%s1840_s12 + $0x6c] sm:$0xf0]  ;;  %v1561_v39 = vld [vmem:[%s1840_s12 + $0x64] sm:$0xf]  ;;  %v1337_v40 = vld [vmem:[%s1840_s12 + $0x70] sm:$0xf0] }
  0x63   : > { %974 = vmatpush.bf16.msra.mxu3 %v1608_v52  ;;  %v1343_v41 = vld [vmem:[%s1840_s12 + $0x68] sm:$0xf]  ;;  %v1564_v42 = vld [vmem:[%s1840_s12 + $0x74] sm:$0xf0]  ;;  %v1562_v43 = vld [vmem:[%s1840_s12 + $0x6c] sm:$0xf]  ;;  %v1336_v45 = vor.u32 %v1563_v38, %v1335_v37  ;;  %v1340_v46 = vor.u32 %v1561_v39, %v1337_v40 }
  0x64   : > { %828 = vmatpush.bf16.msra.mxu0 %v1583_v53  ;;  %v1345_v44 = vld [vmem:[%s1840_s12 + $0x78] sm:$0xf0]  ;;  %v1344_v47 = vor.u32 %v1564_v42, %v1343_v41  ;;  %v1351_v49 = vld [vmem:[%s1840_s12 + $0x80] sm:$0xf]  ;;  %v1567_v50 = vld [vmem:[%s1840_s12 + $0x8c] sm:$0xf0] }
  0x65   : > { %877 = vmatpush.bf16.msra.mxu1 %v1591_v54  ;;  %v1348_v48 = vor.u32 %v1562_v43, %v1345_v44  ;;  %v1565_v51 = vld [vmem:[%s1840_s12 + $0x84] sm:$0xf]  ;;  %v1353_v52 = vld [vmem:[%s1840_s12 + $0x90] sm:$0xf0]  ;;  %v1359_v53 = vld [vmem:[%s1840_s12 + $0x88] sm:$0xf] }
  0x66   : > { %926 = vmatpush.bf16.msra.mxu2 %v1599_v55  ;;  %v1568_v54 = vld [vmem:[%s1840_s12 + $0x94] sm:$0xf0]  ;;  %v1566_v55 = vld [vmem:[%s1840_s12 + $0x8c] sm:$0xf]  ;;  %v1375_v1 = vld [vmem:[%s1840_s12 + $0xa8] sm:$0xf] }
  0x67   : > { %975 = vmatpush.bf16.msra.mxu3 %v1607_v56  ;;  %v1361_v56 = vld [vmem:[%s1840_s12 + $0x98] sm:$0xf0]  ;;  %v1572_v2 = vld [vmem:[%s1840_s12 + $0xb4] sm:$0xf0]  ;;  %v1570_v3 = vld [vmem:[%s1840_s12 + $0xac] sm:$0xf] }
  0x68   : > { %829 = vmatpush.bf16.msra.mxu0 %v1582_v57  ;;  %v1352_v57 = vor.u32 %v1567_v50, %v1351_v49  ;;  %v1377_v4 = vld [vmem:[%s1840_s12 + $0xb8] sm:$0xf0]  ;;  %v1376_v7 = vor.u32 %v1572_v2, %v1375_v1  ;;  %v1391_v13 = vld [vmem:[%s1840_s12 + $0xc8] sm:$0xf]  ;;  %v1576_v14 = vld [vmem:[%s1840_s12 + $0xd4] sm:$0xf0] }
  0x69   : > { %878 = vmatpush.bf16.msra.mxu1 %v1590_v58  ;;  %v1356_v58 = vor.u32 %v1565_v51, %v1353_v52  ;;  %v1380_v8 = vor.u32 %v1570_v3, %v1377_v4  ;;  %v1574_v15 = vld [vmem:[%s1840_s12 + $0xcc] sm:$0xf]  ;;  %v1393_v16 = vld [vmem:[%s1840_s12 + $0xd8] sm:$0xf0]  ;;  %v1392_v19 = vor.u32 %v1576_v14, %v1391_v13  ;;  %v1407_v25 = vld [vmem:[%s1840_s12 + $0xe8] sm:$0xf] }
  0x6a   : > { %927 = vmatpush.bf16.msra.mxu2 %v1598_v59  ;;  %v1360_v59 = vor.u32 %v1568_v54, %v1359_v53  ;;  %v1396_v20 = vor.u32 %v1574_v15, %v1393_v16  ;;  %v1580_v26 = vld [vmem:[%s1840_s12 + $0xf4] sm:$0xf0]  ;;  %v1578_v27 = vld [vmem:[%s1840_s12 + $0xec] sm:$0xf]  ;;  %v1409_v28 = vld [vmem:[%s1840_s12 + $0xf8] sm:$0xf0] }
  0x6b   : > { %976 = vmatpush.bf16.msra.mxu3 %v1606_v60  ;;  %v1364_v60 = vor.u32 %v1566_v55, %v1361_v56  ;;  %v1408_v31 = vor.u32 %v1580_v26, %v1407_v25  ;;  %v1412_v32 = vor.u32 %v1578_v27, %v1409_v28  ;;  %v359_v41 = vld [vmem:[#allocation2 + $0x30] sm:$0xff]  ;;  %v360_v50 = vld [vmem:[#allocation2] sm:$0xff]  ;;  %v362_v4 = vld [vmem:[#allocation2 + $0x18] sm:$0xff] }
  0x6c   : > { %830 = vmatpush.bf16.msra.mxu0 %v1581_v61  ;;  %v1367_v61 = vld [vmem:[%s1840_s12 + $0xa0] sm:$0xf]  ;;  %v363_v13 = vld [vmem:[#allocation2 + $0x50] sm:$0xff] }
  0x6d   : > { %879 = vmatpush.bf16.msra.mxu1 %v1589_v62  ;;  %v1571_v62 = vld [vmem:[%s1840_s12 + $0xac] sm:$0xf0] }
  0x6e   : > { %928 = vmatpush.bf16.msra.mxu2 %v1597_v63  ;;  %v1569_v63 = vld [vmem:[%s1840_s12 + $0xa4] sm:$0xf]  ;;  %v1368_v5 = vor.u32 %v1571_v62, %v1367_v61 }
  0x6f   : > { %977 = vmatpush.bf16.msra.mxu3 %v1605_v0  ;;  %831 = vmatmul.bf16.vlgmr.msra.gmra.mxu0 %v1288_v9  ;;  %v1369_v0 = vld [vmem:[%s1840_s12 + $0xb0] sm:$0xf0]  ;;  %v1383_v9 = vld [vmem:[%s1840_s12 + $0xc0] sm:$0xf] }
  0x70   : > { %880 = vmatmul.bf16.vlgmr.msra.gmra.mxu1 %v1292_v10  ;;  %v1372_v6 = vor.u32 %v1569_v63, %v1369_v0  ;;  %v1575_v10 = vld [vmem:[%s1840_s12 + $0xcc] sm:$0xf0] }
  0x71   : > { %929 = vmatmul.bf16.vlgmr.msra.gmra.mxu2 %v1296_v11  ;;  %v1573_v11 = vld [vmem:[%s1840_s12 + $0xc4] sm:$0xf]  ;;  %v1384_v17 = vor.u32 %v1575_v10, %v1383_v9 }
  0x72   : > { %978 = vmatmul.bf16.vlgmr.msra.gmra.mxu3 %v1300_v12  ;;  %v1385_v12 = vld [vmem:[%s1840_s12 + $0xd0] sm:$0xf0] }
  0x73   : > { %v1388_v18 = vor.u32 %v1573_v11, %v1385_v12 }
  0x7f   : > { %836 = vmatmul.bf16.gmra.mxu0 %v1304_v21  ;;  %v1399_v21 = vld [vmem:[%s1840_s12 + $0xe0] sm:$0xf] }
  0x80   : > { %885 = vmatmul.bf16.gmra.mxu1 %v1308_v22  ;;  %v1579_v22 = vld [vmem:[%s1840_s12 + $0xec] sm:$0xf0] }
  0x81   : > { %934 = vmatmul.bf16.gmra.mxu2 %v1312_v23  ;;  %v1577_v23 = vld [vmem:[%s1840_s12 + $0xe4] sm:$0xf]  ;;  %v1400_v29 = vor.u32 %v1579_v22, %v1399_v21  ;;  %v364_v22 = vld [vmem:[#allocation2 + $0x68] sm:$0xff] }
  0x82   : > { %983 = vmatmul.bf16.gmra.mxu3 %v1316_v24  ;;  %v1401_v24 = vld [vmem:[%s1840_s12 + $0xf0] sm:$0xf0] }
  0x83   : > { %v1404_v30 = vor.u32 %v1577_v23, %v1401_v24 }
  0x8f   : > { %841 = vmatmul.bf16.gmra.mxu0 %v1320_v33 }
  0x90   : > { %890 = vmatmul.bf16.gmra.mxu1 %v1324_v34 }
  0x91   : > { %939 = vmatmul.bf16.gmra.mxu2 %v1328_v35 }
  0x92   : > { %988 = vmatmul.bf16.gmra.mxu3 %v1332_v36 }
  0x9f   : > { %846 = vmatmul.bf16.gmra.mxu0 %v1336_v45 }
  0xa0   : > { %895 = vmatmul.bf16.gmra.mxu1 %v1340_v46 }
  0xa1   : > { %944 = vmatmul.bf16.gmra.mxu2 %v1344_v47 }
  0xa2   : > { %993 = vmatmul.bf16.gmra.mxu3 %v1348_v48 }
  0xaf   : > { %851 = vmatmul.bf16.gmra.mxu0 %v1352_v57 }
  0xb0   : > { %900 = vmatmul.bf16.gmra.mxu1 %v1356_v58 }
  0xb1   : > { %949 = vmatmul.bf16.gmra.mxu2 %v1360_v59  ;;  %v361_v59 = vld [vmem:[#allocation2 + $0x58] sm:$0xff] }
  0xb2   : > { %998 = vmatmul.bf16.gmra.mxu3 %v1364_v60 }
  0xbf   : > { %856 = vmatmul.bf16.gmra.mxu0 %v1368_v5 }
  0xc0   : > { %905 = vmatmul.bf16.gmra.mxu1 %v1372_v6 }
  0xc1   : > { %954 = vmatmul.bf16.gmra.mxu2 %v1376_v7 }
  0xc2   : > { %1003 = vmatmul.bf16.gmra.mxu3 %v1380_v8 }
  0xcf   : > { %861 = vmatmul.bf16.gmra.mxu0 %v1384_v17 }
  0xd0   : > { %910 = vmatmul.bf16.gmra.mxu1 %v1388_v18 }
  0xd1   : > { %959 = vmatmul.bf16.gmra.mxu2 %v1392_v19 }
  0xd2   : > { %1008 = vmatmul.bf16.gmra.mxu3 %v1396_v20 }
  0xdf   : > { %866 = vmatmul.bf16.gmra.mxu0 %v1400_v29 }
  0xe0   : > { %915 = vmatmul.bf16.gmra.mxu1 %v1404_v30 }
  0xe1   : > { %964 = vmatmul.bf16.gmra.mxu2 %v1408_v31  ;;  %v365_v31 = vld [vmem:[#allocation2 + $0x8] sm:$0xff] }
  0xe2   : > { %1013 = vmatmul.bf16.gmra.mxu3 %v1412_v32 }
  0xec   : > { %v832_v33 = vpop.f32.mrf.mxu0 }
  0xed   : > { %v881_v34 = vpop.f32.mrf.mxu1 }
  0xee   : > { %v882_v35 = vadd.f32 %v881_v34, %v832_v33 }
  0xf4   : > { %v930_v36 = vpop.f32.mrf.mxu2  ;;  %v834_v39 = vpop.f32.mrf.mxu0 }
  0xf5   : > { %v979_v37 = vpop.f32.mrf.mxu3  ;;  %v931_v38 = vadd.f32 %v930_v36, %v882_v35  ;;  %v883_v40 = vpop.f32.mrf.mxu1 }
  0xf6   : > { %v884_v44 = vadd.f32 %v883_v40, %v834_v39  ;;  %v366_v40 = vld [vmem:[#allocation2 + $0x48] sm:$0xff] }
  0xf7   : > { %v980_v42 = vadd.f32 %v979_v37, %v931_v38 }
  0xf9   : > { %v1019_v43 = vadd.f32 %v980_v42, %v359_v41 }
  0xfb   : > { %1035 = vst [vmem:[#allocation2 + $0x30] sm:$0xff] %v1019_v43 }
  0xfc   : > { %v932_v45 = vpop.f32.mrf.mxu2  ;;  %v837_v48 = vpop.f32.mrf.mxu0 }
  0xfd   : > { %v981_v46 = vpop.f32.mrf.mxu3  ;;  %v933_v47 = vadd.f32 %v932_v45, %v884_v44  ;;  %v886_v49 = vpop.f32.mrf.mxu1 }
  0xfe   : > { %v887_v53 = vadd.f32 %v886_v49, %v837_v48  ;;  %v367_v49 = vld [vmem:[#allocation2 + $0x40] sm:$0xff] }
  0xff   : > { %v982_v51 = vadd.f32 %v981_v46, %v933_v47 }
 0x101   : > { %v1020_v52 = vadd.f32 %v982_v51, %v360_v50 }
 0x103   : > { %1036 = vst [vmem:[#allocation2] sm:$0xff] %v1020_v52 }
 0x104   : > { %v935_v54 = vpop.f32.mrf.mxu2  ;;  %v839_v57 = vpop.f32.mrf.mxu0 }
 0x105   : > { %v984_v55 = vpop.f32.mrf.mxu3  ;;  %v936_v56 = vadd.f32 %v935_v54, %v887_v53  ;;  %v888_v58 = vpop.f32.mrf.mxu1 }
 0x106   : > { %v889_v62 = vadd.f32 %v888_v58, %v839_v57  ;;  %v368_v58 = vld [vmem:[#allocation2 + $0x20] sm:$0xff] }
 0x107   : > { %v985_v60 = vadd.f32 %v984_v55, %v936_v56 }
 0x109   : > { %v1021_v61 = vadd.f32 %v985_v60, %v361_v59 }
 0x10b   : > { %1037 = vst [vmem:[#allocation2 + $0x58] sm:$0xff] %v1021_v61 }
 0x10c   : > { %v937_v63 = vpop.f32.mrf.mxu2  ;;  %v842_v2 = vpop.f32.mrf.mxu0 }
 0x10d   : > { %v986_v0 = vpop.f32.mrf.mxu3  ;;  %v938_v1 = vadd.f32 %v937_v63, %v889_v62  ;;  %v891_v3 = vpop.f32.mrf.mxu1 }
 0x10e   : > { %v892_v7 = vadd.f32 %v891_v3, %v842_v2  ;;  %v369_v3 = vld [vmem:[#allocation2 + $0x10] sm:$0xff] }
 0x10f   : > { %v987_v5 = vadd.f32 %v986_v0, %v938_v1 }
 0x111   : > { %v1022_v6 = vadd.f32 %v987_v5, %v362_v4 }
 0x113   : > { %1038 = vst [vmem:[#allocation2 + $0x18] sm:$0xff] %v1022_v6 }
 0x114   : > { %v940_v8 = vpop.f32.mrf.mxu2  ;;  %v844_v11 = vpop.f32.mrf.mxu0 }
 0x115   : > { %v989_v9 = vpop.f32.mrf.mxu3  ;;  %v941_v10 = vadd.f32 %v940_v8, %v892_v7  ;;  %v893_v12 = vpop.f32.mrf.mxu1 }
 0x116   : > { %v894_v16 = vadd.f32 %v893_v12, %v844_v11  ;;  %v370_v12 = vld [vmem:[#allocation2 + $0x38] sm:$0xff] }
 0x117   : > { %v990_v14 = vadd.f32 %v989_v9, %v941_v10 }
 0x119   : > { %v1023_v15 = vadd.f32 %v990_v14, %v363_v13 }
 0x11b   : > { %1039 = vst [vmem:[#allocation2 + $0x50] sm:$0xff] %v1023_v15 }
 0x11c   : > { %v942_v17 = vpop.f32.mrf.mxu2  ;;  %v847_v20 = vpop.f32.mrf.mxu0 }
 0x11d   : > { %v991_v18 = vpop.f32.mrf.mxu3  ;;  %v943_v19 = vadd.f32 %v942_v17, %v894_v16  ;;  %v896_v21 = vpop.f32.mrf.mxu1 }
 0x11e   : > { %v897_v25 = vadd.f32 %v896_v21, %v847_v20  ;;  %v371_v21 = vld [vmem:[#allocation2 + $0x60] sm:$0xff] }
 0x11f   : > { %v992_v23 = vadd.f32 %v991_v18, %v943_v19 }
 0x121   : > { %v1024_v24 = vadd.f32 %v992_v23, %v364_v22 }
 0x123   : > { %1040 = vst [vmem:[#allocation2 + $0x68] sm:$0xff] %v1024_v24 }
 0x124   : > { %v945_v26 = vpop.f32.mrf.mxu2  ;;  %v849_v29 = vpop.f32.mrf.mxu0 }
 0x125   : > { %v994_v27 = vpop.f32.mrf.mxu3  ;;  %v946_v28 = vadd.f32 %v945_v26, %v897_v25  ;;  %v898_v30 = vpop.f32.mrf.mxu1 }
 0x126   : > { %v899_v34 = vadd.f32 %v898_v30, %v849_v29 }
 0x127   : > { %v995_v32 = vadd.f32 %v994_v27, %v946_v28  ;;  %v372_v28 = vld [vmem:[#allocation2 + $0x70] sm:$0xff] }
 0x129   : > { %v1025_v33 = vadd.f32 %v995_v32, %v365_v31 }
 0x12b   : > { %1041 = vst [vmem:[#allocation2 + $0x8] sm:$0xff] %v1025_v33 }
 0x12c   : > { %v947_v35 = vpop.f32.mrf.mxu2  ;;  %v852_v38 = vpop.f32.mrf.mxu0 }
 0x12d   : > { %v996_v36 = vpop.f32.mrf.mxu3  ;;  %v948_v37 = vadd.f32 %v947_v35, %v899_v34  ;;  %v901_v39 = vpop.f32.mrf.mxu1 }
 0x12e   : > { %v902_v43 = vadd.f32 %v901_v39, %v852_v38 }
 0x12f   : > { %v997_v41 = vadd.f32 %v996_v36, %v948_v37  ;;  %v373_v37 = vld [vmem:[#allocation2 + $0x78] sm:$0xff] }
 0x131   : > { %v1026_v42 = vadd.f32 %v997_v41, %v366_v40 }
 0x133   : > { %1042 = vst [vmem:[#allocation2 + $0x48] sm:$0xff] %v1026_v42 }
 0x134   : > { %v950_v44 = vpop.f32.mrf.mxu2  ;;  %v854_v47 = vpop.f32.mrf.mxu0 }
 0x135   : > { %v999_v45 = vpop.f32.mrf.mxu3  ;;  %v951_v46 = vadd.f32 %v950_v44, %v902_v43  ;;  %v903_v48 = vpop.f32.mrf.mxu1 }
 0x136   : > { %v904_v52 = vadd.f32 %v903_v48, %v854_v47 }
 0x137   : > { %v1000_v50 = vadd.f32 %v999_v45, %v951_v46  ;;  %v374_v45 = vld [vmem:[#allocation2 + $0x28] sm:$0xff] }
 0x139   : > { %v1027_v51 = vadd.f32 %v1000_v50, %v367_v49 }
 0x13b   : > { %1043 = vst [vmem:[#allocation2 + $0x40] sm:$0xff] %v1027_v51 }
 0x13c   : > { %v952_v53 = vpop.f32.mrf.mxu2  ;;  %v857_v56 = vpop.f32.mrf.mxu0 }
 0x13d   : > { %v1001_v54 = vpop.f32.mrf.mxu3  ;;  %v953_v55 = vadd.f32 %v952_v53, %v904_v52  ;;  %v906_v57 = vpop.f32.mrf.mxu1 }
 0x13e   : > { %v907_v61 = vadd.f32 %v906_v57, %v857_v56 }
 0x13f   : > { %v1002_v59 = vadd.f32 %v1001_v54, %v953_v55 }
 0x141   : > { %v1028_v60 = vadd.f32 %v1002_v59, %v368_v58 }
 0x143   : > { %1044 = vst [vmem:[#allocation2 + $0x20] sm:$0xff] %v1028_v60 }
 0x144   : > { %v955_v62 = vpop.f32.mrf.mxu2  ;;  %v859_v1 = vpop.f32.mrf.mxu0 }
 0x145   : > { %v1004_v63 = vpop.f32.mrf.mxu3  ;;  %v956_v0 = vadd.f32 %v955_v62, %v907_v61  ;;  %v908_v2 = vpop.f32.mrf.mxu1 }
 0x146   : > { %v909_v6 = vadd.f32 %v908_v2, %v859_v1 }
 0x147   : > { %v1005_v4 = vadd.f32 %v1004_v63, %v956_v0 }
 0x149   : > { %v1029_v5 = vadd.f32 %v1005_v4, %v369_v3 }
 0x14b   : > { %1045 = vst [vmem:[#allocation2 + $0x10] sm:$0xff] %v1029_v5 }
 0x14c   : > { %v957_v7 = vpop.f32.mrf.mxu2  ;;  %v862_v10 = vpop.f32.mrf.mxu0 }
 0x14d   : > { %v1006_v8 = vpop.f32.mrf.mxu3  ;;  %v958_v9 = vadd.f32 %v957_v7, %v909_v6  ;;  %v911_v11 = vpop.f32.mrf.mxu1 }
 0x14e   : > { %v912_v15 = vadd.f32 %v911_v11, %v862_v10 }
 0x14f   : > { %v1007_v13 = vadd.f32 %v1006_v8, %v958_v9 }
 0x151   : > { %v1030_v14 = vadd.f32 %v1007_v13, %v370_v12 }
 0x153   : > { %1046 = vst [vmem:[#allocation2 + $0x38] sm:$0xff] %v1030_v14 }
 0x154   : > { %v960_v16 = vpop.f32.mrf.mxu2  ;;  %v864_v19 = vpop.f32.mrf.mxu0 }
 0x155   : > { %v1009_v17 = vpop.f32.mrf.mxu3  ;;  %v961_v18 = vadd.f32 %v960_v16, %v912_v15  ;;  %v913_v20 = vpop.f32.mrf.mxu1 }
 0x156   : > { %v914_v24 = vadd.f32 %v913_v20, %v864_v19 }
 0x157   : > { %v1010_v22 = vadd.f32 %v1009_v17, %v961_v18 }
 0x159   : > { %v1031_v23 = vadd.f32 %v1010_v22, %v371_v21 }
 0x15b   : > { %1047 = vst [vmem:[#allocation2 + $0x60] sm:$0xff] %v1031_v23 }
 0x15c   : > { %v962_v25 = vpop.f32.mrf.mxu2  ;;  %v867_v29 = vpop.f32.mrf.mxu0 }
 0x15d   : > { %v1011_v26 = vpop.f32.mrf.mxu3  ;;  %v963_v27 = vadd.f32 %v962_v25, %v914_v24  ;;  %v916_v30 = vpop.f32.mrf.mxu1 }
 0x15e   : > { %v917_v33 = vadd.f32 %v916_v30, %v867_v29 }
 0x15f   : > { %v1012_v31 = vadd.f32 %v1011_v26, %v963_v27 }
 0x161   : > { %v1032_v32 = vadd.f32 %v1012_v31, %v372_v28 }
 0x163   : > { %1048 = vst [vmem:[#allocation2 + $0x70] sm:$0xff] %v1032_v32 }
 0x164   : > { %v965_v34 = vpop.f32.mrf.mxu2  ;;  %v869_v39 = vpop.f32.mrf.mxu0 }
 0x165   : > { %v1014_v35 = vpop.f32.mrf.mxu3  ;;  %v966_v36 = vadd.f32 %v965_v34, %v917_v33  ;;  %v918_v40 = vpop.f32.mrf.mxu1 }
 0x166   : > { %v919_v42 = vadd.f32 %v918_v40, %v869_v39 }
 0x167   : > { %v1015_v38 = vadd.f32 %v1014_v35, %v966_v36 }
 0x169   : > { %v1033_v41 = vadd.f32 %v1015_v38, %v373_v37 }
 0x16b   : > { %1049 = vst [vmem:[#allocation2 + $0x78] sm:$0xff] %v1033_v41 }
 0x16c   : > { %v967_v43 = vpop.f32.mrf.mxu2 }
 0x16d   : > { %v968_v44 = vadd.f32 %v967_v43, %v919_v42  ;;  %v1016_v46 = vpop.f32.mrf.mxu3 }
 0x16f   : > { %v1017_v47 = vadd.f32 %v1016_v46, %v968_v44  ;;  %1054 = sbr.rel (%p1541_p11) target bundleno = 418 (0x1a2), region = 59 }
 0x171   : > { %v1034_v48 = vadd.f32 %v1017_v47, %v374_v45 }
 0x173   : > { %1050 = vst [vmem:[#allocation2 + $0x28] sm:$0xff] %v1034_v48 }
 0x174   : > { %v1055_v49 = vld [vmem:[#allocation2 + $0x30] sm:$0xff]  ;;  %v1056_v50 = vld [vmem:[#allocation2] sm:$0xff]  ;;  %v1057_v51 = vld [vmem:[#allocation2 + $0x58] sm:$0xff] }
 0x175   : > { %1071 = vst [vmem:[%s2011_s2] sm:$0xff] %v1055_v49  ;;  %v1109_v52 = vmul.f32 %v1055_v49, %v1055_v49  ;;  %v1087_v53 = vadd.f32 %v1056_v50, %v1055_v49  ;;  %v1110_v54 = vmul.f32 %v1056_v50, %v1056_v50  ;;  %v1111_v55 = vmul.f32 %v1057_v51, %v1057_v51  ;;  %v1058_v56 = vld [vmem:[#allocation2 + $0x18] sm:$0xff]  ;;  %v1059_v57 = vld [vmem:[#allocation2 + $0x50] sm:$0xff]  ;;  %v1060_v61 = vld [vmem:[#allocation2 + $0x68] sm:$0xff] }
 0x176   : > { %1072 = vst [vmem:[%s2011_s2 + $0x8] sm:$0xff] %v1056_v50  ;;  %v1112_v60 = vmul.f32 %v1058_v56, %v1058_v56  ;;  %v1113_v0 = vmul.f32 %v1059_v57, %v1059_v57  ;;  %v1061_v1 = vld [vmem:[#allocation2 + $0x8] sm:$0xff]  ;;  %v1114_v4 = vmul.f32 %v1060_v61, %v1060_v61  ;;  %v1063_v6 = vld [vmem:[#allocation2 + $0x40] sm:$0xff]  ;;  %v1065_v11 = vld [vmem:[#allocation2 + $0x10] sm:$0xff] }
 0x177   : > { %v1125_v58 = vadd.f32 %v1110_v54, %v1109_v52  ;;  %1073 = vst [vmem:[%s2011_s2 + $0x10] sm:$0xff] %v1057_v51  ;;  %v1088_v59 = vadd.f32 %v1087_v53, %v1057_v51  ;;  %v1062_v5 = vld [vmem:[#allocation2 + $0x48] sm:$0xff]  ;;  %v1115_v9 = vmul.f32 %v1061_v1, %v1061_v1  ;;  %v1064_v10 = vld [vmem:[#allocation2 + $0x20] sm:$0xff]  ;;  %v1066_v15 = vld [vmem:[#allocation2 + $0x38] sm:$0xff]  ;;  %v1117_v19 = vmul.f32 %v1063_v6, %v1063_v6 }
 0x178   : > { %1074 = vst [vmem:[%s2011_s2 + $0x18] sm:$0xff] %v1058_v56  ;;  %v1116_v14 = vmul.f32 %v1062_v5, %v1062_v5  ;;  %v1067_v16 = vld [vmem:[#allocation2 + $0x60] sm:$0xff]  ;;  %v1068_v20 = vld [vmem:[#allocation2 + $0x70] sm:$0xff]  ;;  %v1069_v21 = vld [vmem:[#allocation2 + $0x78] sm:$0xff]  ;;  %v1118_v24 = vmul.f32 %v1064_v10, %v1064_v10  ;;  %v1119_v28 = vmul.f32 %v1065_v11, %v1065_v11  ;;  %v1120_v31 = vmul.f32 %v1066_v15, %v1066_v15 }
 0x179   : > { %v1126_v62 = vadd.f32 %v1125_v58, %v1111_v55  ;;  %v1089_v63 = vadd.f32 %v1088_v59, %v1058_v56  ;;  %1075 = vst [vmem:[%s2011_s2 + $0x20] sm:$0xff] %v1059_v57  ;;  %v1121_v34 = vmul.f32 %v1067_v16, %v1067_v16  ;;  %v1122_v37 = vmul.f32 %v1068_v20, %v1068_v20 }
 0x17a   : > { %1076 = vst [vmem:[%s2011_s2 + $0x28] sm:$0xff] %v1060_v61  ;;  %v1070_v25 = vld [vmem:[#allocation2 + $0x28] sm:$0xff]  ;;  %v1123_v40 = vmul.f32 %v1069_v21, %v1069_v21 }
 0x17b   : > { %v1127_v2 = vadd.f32 %v1126_v62, %v1112_v60  ;;  %v1090_v3 = vadd.f32 %v1089_v63, %v1059_v57  ;;  %1077 = vst [vmem:[%s2011_s2 + $0x30] sm:$0xff] %v1061_v1  ;;  %v1124_v43 = vmul.f32 %v1070_v25, %v1070_v25 }
 0x17c   : > { %1078 = vst [vmem:[%s2011_s2 + $0x38] sm:$0xff] %v1062_v5 }
 0x17d   : > { %v1128_v7 = vadd.f32 %v1127_v2, %v1113_v0  ;;  %v1091_v8 = vadd.f32 %v1090_v3, %v1060_v61  ;;  %1079 = vst [vmem:[%s2011_s2 + $0x40] sm:$0xff] %v1063_v6 }
 0x17e   : > { %1080 = vst [vmem:[%s2011_s2 + $0x48] sm:$0xff] %v1064_v10 }
 0x17f   : > { %v1129_v12 = vadd.f32 %v1128_v7, %v1114_v4  ;;  %v1092_v13 = vadd.f32 %v1091_v8, %v1061_v1  ;;  %1081 = vst [vmem:[%s2011_s2 + $0x50] sm:$0xff] %v1065_v11 }
 0x180   : > { %1082 = vst [vmem:[%s2011_s2 + $0x58] sm:$0xff] %v1066_v15 }
 0x181   : > { %v1130_v17 = vadd.f32 %v1129_v12, %v1115_v9  ;;  %v1093_v18 = vadd.f32 %v1092_v13, %v1062_v5  ;;  %1083 = vst [vmem:[%s2011_s2 + $0x60] sm:$0xff] %v1067_v16 }
 0x182   : > { %1084 = vst [vmem:[%s2011_s2 + $0x68] sm:$0xff] %v1068_v20 }
 0x183   : > { %v1131_v22 = vadd.f32 %v1130_v17, %v1116_v14  ;;  %v1094_v23 = vadd.f32 %v1093_v18, %v1063_v6  ;;  %1085 = vst [vmem:[%s2011_s2 + $0x70] sm:$0xff] %v1069_v21 }
 0x184   : > { %1086 = vst [vmem:[%s2011_s2 + $0x78] sm:$0xff] %v1070_v25 }
 0x185   : > { %v1132_v26 = vadd.f32 %v1131_v22, %v1117_v19  ;;  %v1095_v27 = vadd.f32 %v1094_v23, %v1064_v10 }
 0x187   : > { %v1133_v29 = vadd.f32 %v1132_v26, %v1118_v24  ;;  %v1096_v30 = vadd.f32 %v1095_v27, %v1065_v11 }
 0x189   : > { %v1134_v32 = vadd.f32 %v1133_v29, %v1119_v28  ;;  %v1097_v33 = vadd.f32 %v1096_v30, %v1066_v15 }
 0x18b   : > { %v1135_v35 = vadd.f32 %v1134_v32, %v1120_v31  ;;  %v1098_v36 = vadd.f32 %v1097_v33, %v1067_v16 }
 0x18d   : > { %v1136_v38 = vadd.f32 %v1135_v35, %v1121_v34  ;;  %v1099_v39 = vadd.f32 %v1098_v36, %v1068_v20 }
 0x18f   : > { %v1137_v41 = vadd.f32 %v1136_v38, %v1122_v37  ;;  %v1100_v42 = vadd.f32 %v1099_v39, %v1069_v21 }
 0x191   : > { %v1138_v44 = vadd.f32 %v1137_v41, %v1123_v40  ;;  %v1101_v45 = vadd.f32 %v1100_v42, %v1070_v25 }
 0x193   : > { %v1102_v46 = vrot.slane %v1101_v45, 4  ;;  %v1139_v47 = vadd.f32 %v1138_v44, %v1124_v43 }
 0x195   : > { %v1103_v48 = vadd.f32 %v1102_v46, %v1101_v45  ;;  %v1140_v49 = vrot.slane %v1139_v47, 4 }
 0x197   : > { %v1104_v50 = vrot.slane %v1103_v48, 2  ;;  %v1141_v51 = vadd.f32 %v1140_v49, %v1139_v47 }
 0x199   : > { %v1105_v52 = vadd.f32 %v1104_v50, %v1103_v48  ;;  %v1142_v53 = vrot.slane %v1141_v51, 2 }
 0x19b   : > { %v1106_v54 = vrot.slane %v1105_v52, 1  ;;  %v1143_v55 = vadd.f32 %v1142_v53, %v1141_v51 }
 0x19d   : > { %v1107_v56 = vadd.f32 %v1106_v54, %v1105_v52  ;;  %v1144_v57 = vrot.slane %v1143_v55, 1 }
 0x19f   : > { %1108 = vst [vmem:[%s2012_s3] sm:$0x1] %v1107_v56  ;;  %v1145_v58 = vadd.f32 %v1144_v57, %v1143_v55 }
 0x1a1   : > { %1146 = vst [vmem:[%s2013_s4] sm:$0x1] %v1145_v58 }
 0x1a2 PF: > { %s15_s19 = sadd.s32 1, %s1692_s19   ;;  %s2014_s15 = smov %s1680_s16 }
 0x1a3   : > { %p12_p12 = scmp.ge.s32.totalorder %s15_s19, 4   ;;  %s2015_s16 = smov %s1755_s23 }
 0x1a4   : > { %s2016_s17 = smov %s1688_s18  ;;  %s2017_s18 = smov %s2019_s20 }
 0x1a5   :  { %14 = sbr.rel (!%p12_p12) target bundleno = 3 (0x3), region = 121 }

// kernel: discriminator_forward.10
= control target key start
LH: loop header
LB: loop body
LE: loop exit
PB: predicated region body
PF: predicated region fallthrough
CT: control target
= control target key end

     0   :  { %s338_s0 = inlined_call_operand.vmem [shape: f32[128,128], index: 0, kind: input, shape index: {}]   ;;  %s339_s1 = inlined_call_operand.vmem [shape: f32[1,128], index: 1, kind: input, shape index: {}]   ;;  %s340_s2 = inlined_call_operand.vmem [shape: f32[1,128], index: 2, kind: input, shape index: {}]   ;;  %s341_s3 = inlined_call_operand.vmem [shape: bf16[128,128], index: 3, kind: output, shape index: {}]  }
   0x1   :  { %v14_v0 = vld [vmem:[%s338_s0] sm:$0xff]  ;;  %v15_v1 = vld [vmem:[%s338_s0 + $0x8] sm:$0xff]  ;;  %v16_v4 = vld [vmem:[%s338_s0 + $0x10] sm:$0xff] }
   0x2   :  { %v232_v2 = vld [vmem:[%s339_s1] ss:$0 sm:$0xff]  ;;  %v17_v5 = vld [vmem:[%s338_s0 + $0x18] sm:$0xff]  ;;  %v19_v11 = vld [vmem:[%s338_s0 + $0x28] sm:$0xff] }
   0x3   :  { %v237_v3 = vld [vmem:[%s340_s2] ss:$0 sm:$0xff]  ;;  %v34_v7 = vmul.f32 %v232_v2, %v14_v0  ;;  %v35_v8 = vmul.f32 %v232_v2, %v15_v1  ;;  %v36_v9 = vmul.f32 %v232_v2, %v16_v4  ;;  %v37_v10 = vmul.f32 %v232_v2, %v17_v5  ;;  %v20_v12 = vld [vmem:[%s338_s0 + $0x30] sm:$0xff]  ;;  %v21_v13 = vld [vmem:[%s338_s0 + $0x38] sm:$0xff] }
   0x4   :  { %v18_v6 = vld [vmem:[%s338_s0 + $0x20] sm:$0xff]  ;;  %v39_v15 = vmul.f32 %v232_v2, %v19_v11  ;;  %v40_v16 = vmul.f32 %v232_v2, %v20_v12  ;;  %v41_v17 = vmul.f32 %v232_v2, %v21_v13  ;;  %v23_v37 = vld [vmem:[%s338_s0 + $0x48] sm:$0xff]  ;;  %v24_v38 = vld [vmem:[%s338_s0 + $0x50] sm:$0xff] }
   0x5   :  { %v38_v14 = vmul.f32 %v232_v2, %v18_v6  ;;  %v54_v18 = vadd.f32 %v237_v3, %v34_v7  ;;  %v55_v19 = vadd.f32 %v237_v3, %v35_v8  ;;  %v56_v20 = vadd.f32 %v237_v3, %v36_v9  ;;  %v22_v32 = vld [vmem:[%s338_s0 + $0x40] sm:$0xff]  ;;  %v25_v39 = vld [vmem:[%s338_s0 + $0x58] sm:$0xff]  ;;  %v27_v51 = vld [vmem:[%s338_s0 + $0x68] sm:$0xff] }
   0x6   :  { %v57_v21 = vadd.f32 %v237_v3, %v37_v10  ;;  %v59_v23 = vadd.f32 %v237_v3, %v39_v15  ;;  %v60_v24 = vadd.f32 %v237_v3, %v40_v16  ;;  %v61_v25 = vadd.f32 %v237_v3, %v41_v17  ;;  %v26_v50 = vld [vmem:[%s338_s0 + $0x60] sm:$0xff]  ;;  %v28_v63 = vld [vmem:[%s338_s0 + $0x70] sm:$0xff]  ;;  %v29_v0 = vld [vmem:[%s338_s0 + $0x78] sm:$0xff] }
   0x7   :  { %v58_v22 = vadd.f32 %v237_v3, %v38_v14  ;;  %vm70_vm0 = vcmp.ge.f32.partialorder %v54_v18, 0.0  ;;  %vm71_vm1 = vcmp.ge.f32.partialorder %v55_v19, 0.0  ;;  %v86_v26 = vmul.f32 0.2, %v54_v18 }
   0x8   :  { %v87_v27 = vmul.f32 0.2, %v55_v19  ;;  %vm72_vm2 = vcmp.ge.f32.partialorder %v56_v20, 0.0  ;;  %vm73_vm3 = vcmp.ge.f32.partialorder %v57_v21, 0.0  ;;  %v88_v28 = vmul.f32 0.2, %v56_v20 }
   0x9   :  { %v89_v29 = vmul.f32 0.2, %v57_v21  ;;  %v102_v30 = vsel %vm70_vm0, %v54_v18, %v86_v26  ;;  %vm74_vm4 = vcmp.ge.f32.partialorder %v58_v22, 0.0  ;;  %vm75_vm5 = vcmp.ge.f32.partialorder %v59_v23, 0.0 }
   0xa   :  { %v103_v31 = vsel %vm71_vm1, %v55_v19, %v87_v27  ;;  %v104_v34 = vsel %vm72_vm2, %v56_v20, %v88_v28  ;;  %v90_v36 = vmul.f32 0.2, %v58_v22  ;;  %v91_v41 = vmul.f32 0.2, %v59_v23 }
   0xb   :  { %v157_v33 = vpack.c.bf16 %v103_v31, %v102_v30  ;;  %v105_v35 = vsel %vm73_vm3, %v57_v21, %v89_v29  ;;  %vm76_vm6 = vcmp.ge.f32.partialorder %v60_v24, 0.0  ;;  %vm77_vm7 = vcmp.ge.f32.partialorder %v61_v25, 0.0 }
   0xc   :  { %v162_v40 = vpack.c.bf16 %v105_v35, %v104_v34  ;;  %v106_v42 = vsel %vm74_vm4, %v58_v22, %v90_v36  ;;  %v92_v43 = vmul.f32 0.2, %v60_v24  ;;  %v93_v44 = vmul.f32 0.2, %v61_v25 }
   0xd   :  { %158 = vst [vmem:[%s341_s3] sm:$0xff] %v157_v33   ;;  %v42_v45 = vmul.f32 %v232_v2, %v22_v32  ;;  %v107_v46 = vsel %vm75_vm5, %v59_v23, %v91_v41  ;;  %v43_v47 = vmul.f32 %v232_v2, %v23_v37  ;;  %v44_v48 = vmul.f32 %v232_v2, %v24_v38 }
   0xe   :  { %194 = vst [vmem:[%s341_s3 + $0x8] sm:$0xff] %v162_v40   ;;  %v45_v49 = vmul.f32 %v232_v2, %v25_v39  ;;  %v167_v52 = vpack.c.bf16 %v107_v46, %v106_v42  ;;  %v108_v53 = vsel %vm76_vm6, %v60_v24, %v92_v43  ;;  %v109_v54 = vsel %vm77_vm7, %v61_v25, %v93_v44 }
   0xf   :  { %v62_v55 = vadd.f32 %v237_v3, %v42_v45  ;;  %v172_v56 = vpack.c.bf16 %v109_v54, %v108_v53  ;;  %v63_v57 = vadd.f32 %v237_v3, %v43_v47  ;;  %v64_v58 = vadd.f32 %v237_v3, %v44_v48 }
  0x10   :  { %v65_v59 = vadd.f32 %v237_v3, %v45_v49  ;;  %195 = vst [vmem:[%s341_s3 + $0x10] sm:$0xff] %v167_v52   ;;  %v46_v61 = vmul.f32 %v232_v2, %v26_v50  ;;  %v47_v62 = vmul.f32 %v232_v2, %v27_v51  ;;  %v48_v10 = vmul.f32 %v232_v2, %v28_v63 }
  0x11   :  { %vm78_vm8 = vcmp.ge.f32.partialorder %v62_v55, 0.0  ;;  %v94_v60 = vmul.f32 0.2, %v62_v55  ;;  %196 = vst [vmem:[%s341_s3 + $0x18] sm:$0xff] %v172_v56   ;;  %vm79_vm9 = vcmp.ge.f32.partialorder %v63_v57, 0.0  ;;  %vm80_vm10 = vcmp.ge.f32.partialorder %v64_v58, 0.0 }
  0x12   :  { %v95_v1 = vmul.f32 0.2, %v63_v57  ;;  %vm81_vm11 = vcmp.ge.f32.partialorder %v65_v59, 0.0  ;;  %v96_v5 = vmul.f32 0.2, %v64_v58  ;;  %v66_v7 = vadd.f32 %v237_v3, %v46_v61 }
  0x13   :  { %v110_v4 = vsel %vm78_vm8, %v62_v55, %v94_v60  ;;  %v97_v6 = vmul.f32 0.2, %v65_v59  ;;  %v67_v9 = vadd.f32 %v237_v3, %v47_v62  ;;  %v49_v11 = vmul.f32 %v232_v2, %v29_v0 }
  0x14   :  { %v111_v8 = vsel %vm79_vm9, %v63_v57, %v95_v1  ;;  %v112_v13 = vsel %vm80_vm10, %v64_v58, %v96_v5  ;;  %vm82_vm12 = vcmp.ge.f32.partialorder %v66_v7, 0.0  ;;  %v98_v16 = vmul.f32 0.2, %v66_v7 }
  0x15   :  { %v177_v12 = vpack.c.bf16 %v111_v8, %v110_v4  ;;  %v113_v14 = vsel %vm81_vm11, %v65_v59, %v97_v6  ;;  %vm83_vm13 = vcmp.ge.f32.partialorder %v67_v9, 0.0  ;;  %v99_v17 = vmul.f32 0.2, %v67_v9 }
  0x16   :  { %v182_v15 = vpack.c.bf16 %v113_v14, %v112_v13  ;;  %v68_v18 = vadd.f32 %v237_v3, %v48_v10  ;;  %v69_v19 = vadd.f32 %v237_v3, %v49_v11  ;;  %v114_v2 = vsel %vm82_vm12, %v66_v7, %v98_v16 }
  0x17   :  { %197 = vst [vmem:[%s341_s3 + $0x20] sm:$0xff] %v177_v12   ;;  %v115_v20 = vsel %vm83_vm13, %v67_v9, %v99_v17 }
  0x18   :  { %198 = vst [vmem:[%s341_s3 + $0x28] sm:$0xff] %v182_v15   ;;  %v187_v21 = vpack.c.bf16 %v115_v20, %v114_v2  ;;  %vm84_vm14 = vcmp.ge.f32.partialorder %v68_v18, 0.0  ;;  %vm85_vm15 = vcmp.ge.f32.partialorder %v69_v19, 0.0  ;;  %v100_v22 = vmul.f32 0.2, %v68_v18 }
  0x19   :  { %v101_v23 = vmul.f32 0.2, %v69_v19 }
  0x1a   :  { %199 = vst [vmem:[%s341_s3 + $0x30] sm:$0xff] %v187_v21   ;;  %v116_v24 = vsel %vm84_vm14, %v68_v18, %v100_v22 }
  0x1b   :  { %v117_v25 = vsel %vm85_vm15, %v69_v19, %v101_v23 }
  0x1c   :  { %v192_v26 = vpack.c.bf16 %v117_v25, %v116_v24 }
  0x1e   :  { %200 = vst [vmem:[%s341_s3 + $0x38] sm:$0xff] %v192_v26  }

// kernel: discriminator_forward.11
= control target key start
LH: loop header
LB: loop body
LE: loop exit
PB: predicated region body
PF: predicated region fallthrough
CT: control target
= control target key end

     0   :  { %s1630_s15 = smov 0   ;;  %s1632_s16 = smov 0   ;;  %s1903_s0 = inlined_call_operand.vmem [shape: bf16[32,2048], index: 0, kind: input, shape index: {}]   ;;  %s1904_s1 = inlined_call_operand.vmem [shape: bf16[2048,256], index: 1, kind: input, shape index: {}]   ;;  %s1905_s2 = inlined_call_operand.vmem [shape: f32[32,256], index: 2, kind: output, shape index: {0}]   ;;  %s1906_s3 = inlined_call_operand.vmem [shape: f32[1,256], index: 3, kind: output, shape index: {1}]   ;;  %s1907_s4 = inlined_call_operand.vmem [shape: f32[1,256], index: 4, kind: output, shape index: {2}]  }
   0x1   :  { %s1634_s17 = smov 0   ;;  %s1636_s18 = smov 0  }
   0x2   :  { %s1638_s19 = smov 0  }
   0x3 LB: > { %s24_s20 = sadd.s32 1, %s1598_s18  ;;  %p43_p1 = scmp.ne.s32.totalorder %s1590_s16, %s1586_s15  ;;  %s1602_s19 = sphi %s1638_s19, %s15_s19   ;;  %s1598_s18 = sphi %s1636_s18, %s1911_s18   ;;  %s1594_s17 = sphi %s1634_s17, %s1910_s17   ;;  %s1590_s16 = sphi %s1632_s16, %s1909_s16   ;;  %s1586_s15 = sphi %s1630_s15, %s1908_s15  }
   0x4   : > { %p25_p0 = scmp.ge.s32.totalorder %s24_s20, 4  ;;  %p44_p2 = scmp.eq.s32.totalorder %s1602_s19, 0 }
   0x5   : > { %s36_s22 = sadd.s32 1, %s1590_s16  ;;  %p1144_p5 = scmp.ge.s32.totalorder %s1602_s19, 4 }
   0x6   : > { %s1913_s20 = smov (%p25_p0, %s24_s20), 0  ;;  %p45_p3 = por %p44_p2, %p43_p1 }
   0x7   : > { %s32_s21 = ssub.s32 %s1598_s18, %s1913_s20  ;;  %173 = sbr.rel (%p1144_p5) target bundleno = 24 (0x18), region = 16 }
   0x8   : > { %p34_p4 = scmp.eq.s32.totalorder %s32_s21, 0 }
   0xa   : > { %s1665_s23 = scalar_select %p34_p4, %s1590_s16, %s36_s22  }
   0xc   : > { %176 = sbr.rel (!%p45_p3) target bundleno = 24 (0x18), region = 20  ;;  %s178_s24 = sand.u32 (%p45_p3), 1, %s1590_s16  }
   0xd   : > { %s1449_s25 = sshll.u32 (%p45_p3), %s1598_s18, 4  ;;  %s1145_s26 = sshll.u32 (%p45_p3), %s178_s24, 6 }
   0xe   : > { %s186_s29 = scalar_lea.vmem (%p45_p3), %s1903_s0, %s1449_s25  ;;  %s180_s30 = scalar_lea.vmem (%p45_p3), [#allocation3], %s1145_s26 }
   0xf   : > { %v199_v0 = vld [vmem:[%s186_s29] sm:$0xff] (%p45_p3)  ;;  %v201_v1 = vld [vmem:[%s186_s29 + $0x8] sm:$0xff] (%p45_p3) }
  0x10   : > { %v203_v2 = vld [vmem:[%s186_s29 + $0x40] sm:$0xff] (%p45_p3)  ;;  %200 = vst [vmem:[%s180_s30] sm:$0xff] (%p45_p3), %v199_v0  ;;  %v205_v3 = vld [vmem:[%s186_s29 + $0x48] sm:$0xff] (%p45_p3) }
  0x11   : > { %202 = vst [vmem:[%s180_s30 + $0x8] sm:$0xff] %v201_v1  ;;  %v207_v4 = vld [vmem:[%s186_s29 + $0x80] sm:$0xff]  ;;  %v209_v5 = vld [vmem:[%s186_s29 + $0x88] sm:$0xff] }
  0x12   : > { %204 = vst [vmem:[%s180_s30 + $0x10] sm:$0xff] %v203_v2  ;;  %v211_v6 = vld [vmem:[%s186_s29 + $0xc0] sm:$0xff]  ;;  %v213_v7 = vld [vmem:[%s186_s29 + $0xc8] sm:$0xff] }
  0x13   : > { %206 = vst [vmem:[%s180_s30 + $0x18] sm:$0xff] %v205_v3 }
  0x14   : > { %208 = vst [vmem:[%s180_s30 + $0x20] sm:$0xff] %v207_v4 }
  0x15   : > { %210 = vst [vmem:[%s180_s30 + $0x28] sm:$0xff] %v209_v5 }
  0x16   : > { %212 = vst [vmem:[%s180_s30 + $0x30] sm:$0xff] %v211_v6 }
  0x17   : > { %214 = vst [vmem:[%s180_s30 + $0x38] sm:$0xff] %v213_v7 }
  0x18 PF: > { %p1148_p6 = scmp.ge.s32.totalorder %s1602_s19, 1  ;;  %p229_p7 = scmp.lt.s32.totalorder %s1602_s19, 5 }
  0x1a   : > { %p230_p8 = pnand %p1148_p6, %p229_p7 }
  0x1b   : > { %s236_s5 = sand.u32 (!%p230_p8), 1, %s1586_s15   ;;  %s1150_s6 = sshll.u32 (!%p230_p8), %s1594_s17, 6 }
  0x1c   : > { %233 = sbr.rel (%p230_p8) target bundleno = 305 (0x131), region = 47  ;;  %s1149_s7 = sshll.u32 (!%p230_p8), %s236_s5, 6 }
  0x1d   : > { %p279_p9 = scmp.lt.s32.totalorder (!%p230_p8), %s1150_s6, 255  ;;  %s1682_s12 = scalar_lea.vmem (!%p230_p8), [#allocation3], %s1149_s7 }
  0x1e   : > { %p1153_p10 = scmp.ne.s32.totalorder (!%p230_p8), %s1594_s17, 0 }
  0x21   : > { %s1915_s6 = smov (!%p279_p9, %s1150_s6), 255  ;;  %303 = sbr.rel (%p1153_p10) target bundleno = 47 (0x2f), region = 55 }
  0x22   : > { %s1450_s8 = sshll.u32 %s1915_s6, 3 }
  0x23   : > { %s1680_s11 = scalar_lea.vmem %s1904_s1, %s1450_s8 }
  0x26   : > { %v1604_v8 = vmov 0.0  }
  0x27   : > { %304 = vst [vmem:[#allocation2 + $0x30] sm:$0xff] %v1604_v8 }
  0x28   : > { %305 = vst [vmem:[#allocation2] sm:$0xff] %v1604_v8 }
  0x29   : > { %306 = vst [vmem:[#allocation2 + $0x18] sm:$0xff] %v1604_v8 }
  0x2a   : > { %307 = vst [vmem:[#allocation2 + $0x10] sm:$0xff] %v1604_v8 }
  0x2b   : > { %308 = vst [vmem:[#allocation2 + $0x8] sm:$0xff] %v1604_v8 }
  0x2c   : > { %309 = vst [vmem:[#allocation2 + $0x20] sm:$0xff] %v1604_v8 }
  0x2d   : > { %310 = vst [vmem:[#allocation2 + $0x28] sm:$0xff] %v1604_v8 }
  0x2e   : > { %311 = vst [vmem:[#allocation2 + $0x38] sm:$0xff] %v1604_v8 }
  0x2f PF: > { %v1244_v9 = vld [vmem:[%s1680_s11 + $0x70] sm:$0xf]  ;;  %v1474_v10 = vld [vmem:[%s1680_s11 + $0x74] sm:$0xf0]  ;;  %v1236_v20 = vld [vmem:[%s1680_s11 + $0x60] sm:$0xf] }
  0x30   : > { %v1308_v11 = vld [vmem:[%s1680_s11 + $0xf0] sm:$0xf]  ;;  %v1245_v12 = vor.u32 %v1474_v10, %v1244_v9  ;;  %v1490_v13 = vld [vmem:[%s1680_s11 + $0xf4] sm:$0xf0]  ;;  %v1472_v22 = vld [vmem:[%s1680_s11 + $0x64] sm:$0xf0] }
  0x31   : > { %v1372_v14 = vld [vmem:[%s1680_s11 + $0x170] sm:$0xf]  ;;  %v1506_v15 = vld [vmem:[%s1680_s11 + $0x174] sm:$0xf0]  ;;  %v1309_v16 = vor.u32 %v1490_v13, %v1308_v11  ;;  %v1300_v23 = vld [vmem:[%s1680_s11 + $0xe0] sm:$0xf]  ;;  %v1237_v25 = vor.u32 %v1472_v22, %v1236_v20 }
  0x32   : > { %v1373_v17 = vor.u32 %v1506_v15, %v1372_v14  ;;  %v1436_v18 = vld [vmem:[%s1680_s11 + $0x1f0] sm:$0xf]  ;;  %v1522_v19 = vld [vmem:[%s1680_s11 + $0x1f4] sm:$0xf0]  ;;  %752 = vmatpush.bf16.msra.mxu0 %v1245_v12  ;;  %v1488_v24 = vld [vmem:[%s1680_s11 + $0xe4] sm:$0xf0] }
  0x33   : > { %v1437_v21 = vor.u32 %v1522_v19, %v1436_v18  ;;  %771 = vmatpush.bf16.msra.mxu1 %v1309_v16  ;;  %v1301_v26 = vor.u32 %v1488_v24, %v1300_v23  ;;  %v1364_v27 = vld [vmem:[%s1680_s11 + $0x160] sm:$0xf]  ;;  %v1504_v28 = vld [vmem:[%s1680_s11 + $0x164] sm:$0xf0]  ;;  %v1228_v32 = vld [vmem:[%s1680_s11 + $0x50] sm:$0xf] }
  0x34   : > { %790 = vmatpush.bf16.msra.mxu2 %v1373_v17  ;;  %v1428_v29 = vld [vmem:[%s1680_s11 + $0x1e0] sm:$0xf]  ;;  %v1365_v30 = vor.u32 %v1504_v28, %v1364_v27  ;;  %v1520_v31 = vld [vmem:[%s1680_s11 + $0x1e4] sm:$0xf0]  ;;  %v1470_v33 = vld [vmem:[%s1680_s11 + $0x54] sm:$0xf0] }
  0x35   : > { %809 = vmatpush.bf16.msra.mxu3 %v1437_v21  ;;  %v1429_v34 = vor.u32 %v1520_v31, %v1428_v29  ;;  %v1292_v35 = vld [vmem:[%s1680_s11 + $0xd0] sm:$0xf]  ;;  %v1486_v36 = vld [vmem:[%s1680_s11 + $0xd4] sm:$0xf0]  ;;  %v1229_v38 = vor.u32 %v1470_v33, %v1228_v32  ;;  %v1220_v44 = vld [vmem:[%s1680_s11 + $0x40] sm:$0xf] }
  0x36   : > { %v1356_v37 = vld [vmem:[%s1680_s11 + $0x150] sm:$0xf]  ;;  %753 = vmatpush.bf16.msra.mxu0 %v1237_v25  ;;  %v1502_v39 = vld [vmem:[%s1680_s11 + $0x154] sm:$0xf0]  ;;  %v1293_v42 = vor.u32 %v1486_v36, %v1292_v35  ;;  %v1468_v45 = vld [vmem:[%s1680_s11 + $0x44] sm:$0xf0] }
  0x37   : > { %v1420_v40 = vld [vmem:[%s1680_s11 + $0x1d0] sm:$0xf]  ;;  %v1518_v41 = vld [vmem:[%s1680_s11 + $0x1d4] sm:$0xf0]  ;;  %772 = vmatpush.bf16.msra.mxu1 %v1301_v26  ;;  %v1357_v43 = vor.u32 %v1502_v39, %v1356_v37  ;;  %v1284_v46 = vld [vmem:[%s1680_s11 + $0xc0] sm:$0xf]  ;;  %v1221_v53 = vor.u32 %v1468_v45, %v1220_v44 }
  0x38   : > { %791 = vmatpush.bf16.msra.mxu2 %v1365_v30  ;;  %v1421_v47 = vor.u32 %v1518_v41, %v1420_v40  ;;  %v1484_v48 = vld [vmem:[%s1680_s11 + $0xc4] sm:$0xf0]  ;;  %v1348_v49 = vld [vmem:[%s1680_s11 + $0x140] sm:$0xf]  ;;  %v1212_v56 = vld [vmem:[%s1680_s11 + $0x30] sm:$0xf] }
  0x39   : > { %810 = vmatpush.bf16.msra.mxu3 %v1429_v34  ;;  %v1500_v50 = vld [vmem:[%s1680_s11 + $0x144] sm:$0xf0]  ;;  %v1412_v51 = vld [vmem:[%s1680_s11 + $0x1c0] sm:$0xf]  ;;  %v1285_v54 = vor.u32 %v1484_v48, %v1284_v46  ;;  %v1466_v57 = vld [vmem:[%s1680_s11 + $0x34] sm:$0xf0] }
  0x3a   : > { %v1516_v52 = vld [vmem:[%s1680_s11 + $0x1c4] sm:$0xf0]  ;;  %754 = vmatpush.bf16.msra.mxu0 %v1229_v38  ;;  %v1349_v55 = vor.u32 %v1500_v50, %v1348_v49  ;;  %v1276_v58 = vld [vmem:[%s1680_s11 + $0xb0] sm:$0xf]  ;;  %v1482_v60 = vld [vmem:[%s1680_s11 + $0xb4] sm:$0xf0]  ;;  %v1213_v1 = vor.u32 %v1466_v57, %v1212_v56 }
  0x3b   : > { %773 = vmatpush.bf16.msra.mxu1 %v1293_v42  ;;  %v1413_v59 = vor.u32 %v1516_v52, %v1412_v51  ;;  %v1340_v61 = vld [vmem:[%s1680_s11 + $0x130] sm:$0xf]  ;;  %v1498_v62 = vld [vmem:[%s1680_s11 + $0x134] sm:$0xf0]  ;;  %v1277_v2 = vor.u32 %v1482_v60, %v1276_v58  ;;  %v1204_v4 = vld [vmem:[%s1680_s11 + $0x20] sm:$0xf] }
  0x3c   : > { %792 = vmatpush.bf16.msra.mxu2 %v1357_v43  ;;  %v1404_v63 = vld [vmem:[%s1680_s11 + $0x1b0] sm:$0xf]  ;;  %v1514_v0 = vld [vmem:[%s1680_s11 + $0x1b4] sm:$0xf0]  ;;  %v1341_v3 = vor.u32 %v1498_v62, %v1340_v61  ;;  %v1464_v5 = vld [vmem:[%s1680_s11 + $0x24] sm:$0xf0] }
  0x3d   : > { %811 = vmatpush.bf16.msra.mxu3 %v1421_v47  ;;  %v1268_v6 = vld [vmem:[%s1680_s11 + $0xa0] sm:$0xf]  ;;  %v1405_v7 = vor.u32 %v1514_v0, %v1404_v63  ;;  %v1480_v8 = vld [vmem:[%s1680_s11 + $0xa4] sm:$0xf0]  ;;  %v1205_v13 = vor.u32 %v1464_v5, %v1204_v4  ;;  %v1196_v16 = vld [vmem:[%s1680_s11 + $0x10] sm:$0xf] }
  0x3e   : > { %755 = vmatpush.bf16.msra.mxu0 %v1221_v53  ;;  %v1332_v9 = vld [vmem:[%s1680_s11 + $0x120] sm:$0xf]  ;;  %v1496_v10 = vld [vmem:[%s1680_s11 + $0x124] sm:$0xf0]  ;;  %v1269_v14 = vor.u32 %v1480_v8, %v1268_v6  ;;  %v1462_v17 = vld [vmem:[%s1680_s11 + $0x14] sm:$0xf0] }
  0x3f   : > { %774 = vmatpush.bf16.msra.mxu1 %v1285_v54  ;;  %v1396_v11 = vld [vmem:[%s1680_s11 + $0x1a0] sm:$0xf]  ;;  %v1512_v12 = vld [vmem:[%s1680_s11 + $0x1a4] sm:$0xf0]  ;;  %v1333_v15 = vor.u32 %v1496_v10, %v1332_v9  ;;  %v1260_v18 = vld [vmem:[%s1680_s11 + $0x90] sm:$0xf]  ;;  %v1197_v26 = vor.u32 %v1462_v17, %v1196_v16 }
  0x40   : > { %793 = vmatpush.bf16.msra.mxu2 %v1349_v55  ;;  %v1397_v19 = vor.u32 %v1512_v12, %v1396_v11  ;;  %v1478_v20 = vld [vmem:[%s1680_s11 + $0x94] sm:$0xf0]  ;;  %v1324_v21 = vld [vmem:[%s1680_s11 + $0x110] sm:$0xf]  ;;  %v1188_v25 = vld [vmem:[%s1680_s11] sm:$0xf] }
  0x41   : > { %812 = vmatpush.bf16.msra.mxu3 %v1413_v59  ;;  %v1494_v22 = vld [vmem:[%s1680_s11 + $0x114] sm:$0xf0]  ;;  %v1388_v23 = vld [vmem:[%s1680_s11 + $0x190] sm:$0xf]  ;;  %v1460_v27 = vld [vmem:[%s1680_s11 + $0x4] sm:$0xf0]  ;;  %v1261_v30 = vor.u32 %v1478_v20, %v1260_v18 }
  0x42   : > { %756 = vmatpush.bf16.msra.mxu0 %v1213_v1  ;;  %v1510_v24 = vld [vmem:[%s1680_s11 + $0x194] sm:$0xf0]  ;;  %v1252_v28 = vld [vmem:[%s1680_s11 + $0x80] sm:$0xf]  ;;  %v1476_v29 = vld [vmem:[%s1680_s11 + $0x84] sm:$0xf0]  ;;  %v1325_v31 = vor.u32 %v1494_v22, %v1324_v21  ;;  %v1189_v43 = vor.u32 %v1460_v27, %v1188_v25 }
  0x43   : > { %775 = vmatpush.bf16.msra.mxu1 %v1277_v2  ;;  %v1316_v32 = vld [vmem:[%s1680_s11 + $0x100] sm:$0xf]  ;;  %v1492_v33 = vld [vmem:[%s1680_s11 + $0x104] sm:$0xf0]  ;;  %v1389_v35 = vor.u32 %v1510_v24, %v1388_v23  ;;  %v1453_v38 = vld [vmem:[%s1682_s12 + $0xc] sm:$0xf0]  ;;  %v1253_v47 = vor.u32 %v1476_v29, %v1252_v28 }
  0x44   : > { %794 = vmatpush.bf16.msra.mxu2 %v1341_v3  ;;  %v1380_v34 = vld [vmem:[%s1680_s11 + $0x180] sm:$0xf]  ;;  %v1508_v36 = vld [vmem:[%s1680_s11 + $0x184] sm:$0xf0]  ;;  %v1451_v39 = vld [vmem:[%s1682_s12 + $0x4] sm:$0xf]  ;;  %v1317_v48 = vor.u32 %v1492_v33, %v1316_v32 }
  0x45   : > { %813 = vmatpush.bf16.msra.mxu3 %v1405_v7  ;;  %v1156_v37 = vld [vmem:[%s1682_s12] sm:$0xf]  ;;  %v1158_v40 = vld [vmem:[%s1682_s12 + $0x10] sm:$0xf0]  ;;  %v1374_v42 = vld [vmem:[%s1680_s11 + $0x178] sm:$0xf0]  ;;  %v1381_v52 = vor.u32 %v1508_v36, %v1380_v34 }
  0x46   : > { %757 = vmatpush.bf16.msra.mxu0 %v1205_v13  ;;  %v1505_v41 = vld [vmem:[%s1680_s11 + $0x174] sm:$0xf]  ;;  %v1164_v44 = vld [vmem:[%s1682_s12 + $0x8] sm:$0xf]  ;;  %v1310_v46 = vld [vmem:[%s1680_s11 + $0xf8] sm:$0xf0]  ;;  %v1764_v57 = vor.u32 %v1453_v38, %v1156_v37  ;;  %v1769_v62 = vor.u32 %v1451_v39, %v1158_v40 }
  0x47   : > { %776 = vmatpush.bf16.msra.mxu1 %v1269_v14  ;;  %v1489_v45 = vld [vmem:[%s1680_s11 + $0xf4] sm:$0xf]  ;;  %v1454_v49 = vld [vmem:[%s1682_s12 + $0x14] sm:$0xf0]  ;;  %v1452_v50 = vld [vmem:[%s1682_s12 + $0xc] sm:$0xf]  ;;  %v1377_v53 = vor.u32 %v1505_v41, %v1374_v42 }
  0x48   : > { %795 = vmatpush.bf16.msra.mxu2 %v1333_v15  ;;  %v1166_v51 = vld [vmem:[%s1682_s12 + $0x18] sm:$0xf0]  ;;  %v1473_v54 = vld [vmem:[%s1680_s11 + $0x74] sm:$0xf]  ;;  %v1313_v58 = vor.u32 %v1489_v45, %v1310_v46  ;;  %v1503_v60 = vld [vmem:[%s1680_s11 + $0x164] sm:$0xf]  ;;  %v1771_v63 = vor.u32 %v1454_v49, %v1164_v44 }
  0x49   : > { %814 = vmatpush.bf16.msra.mxu3 %v1397_v19  ;;  %v1246_v55 = vld [vmem:[%s1680_s11 + $0x78] sm:$0xf0]  ;;  %v1521_v56 = vld [vmem:[%s1680_s11 + $0x1f4] sm:$0xf]  ;;  %v1366_v61 = vld [vmem:[%s1680_s11 + $0x168] sm:$0xf0]  ;;  %v1775_v2 = vor.u32 %v1452_v50, %v1166_v51 }
  0x4a   : > { %758 = vmatpush.bf16.msra.mxu0 %v1197_v26  ;;  %v1438_v59 = vld [vmem:[%s1680_s11 + $0x1f8] sm:$0xf0]  ;;  %v1487_v0 = vld [vmem:[%s1680_s11 + $0xe4] sm:$0xf]  ;;  %v1302_v1 = vld [vmem:[%s1680_s11 + $0xe8] sm:$0xf0]  ;;  %v1249_v3 = vor.u32 %v1473_v54, %v1246_v55  ;;  %v1369_v5 = vor.u32 %v1503_v60, %v1366_v61 }
  0x4b   : > { %777 = vmatpush.bf16.msra.mxu1 %v1261_v30  ;;  %v1441_v4 = vor.u32 %v1521_v56, %v1438_v59  ;;  %v1471_v6 = vld [vmem:[%s1680_s11 + $0x64] sm:$0xf]  ;;  %v1238_v7 = vld [vmem:[%s1680_s11 + $0x68] sm:$0xf0]  ;;  %v1305_v9 = vor.u32 %v1487_v0, %v1302_v1  ;;  %v1501_v11 = vld [vmem:[%s1680_s11 + $0x154] sm:$0xf] }
  0x4c   : > { %796 = vmatpush.bf16.msra.mxu2 %v1325_v31  ;;  %v1519_v8 = vld [vmem:[%s1680_s11 + $0x1e4] sm:$0xf]  ;;  %v1430_v10 = vld [vmem:[%s1680_s11 + $0x1e8] sm:$0xf0]  ;;  %v1358_v12 = vld [vmem:[%s1680_s11 + $0x158] sm:$0xf0]  ;;  %v1241_v15 = vor.u32 %v1471_v6, %v1238_v7 }
  0x4d   : > { %815 = vmatpush.bf16.msra.mxu3 %v1389_v35  ;;  %v1485_v13 = vld [vmem:[%s1680_s11 + $0xd4] sm:$0xf]  ;;  %v1294_v14 = vld [vmem:[%s1680_s11 + $0xd8] sm:$0xf0]  ;;  %v1433_v16 = vor.u32 %v1519_v8, %v1430_v10  ;;  %v1361_v17 = vor.u32 %v1501_v11, %v1358_v12  ;;  %v1499_v23 = vld [vmem:[%s1680_s11 + $0x144] sm:$0xf] }
  0x4e   : > { %759 = vmatpush.bf16.msra.mxu0 %v1189_v43  ;;  %v1469_v18 = vld [vmem:[%s1680_s11 + $0x54] sm:$0xf]  ;;  %v1230_v19 = vld [vmem:[%s1680_s11 + $0x58] sm:$0xf0]  ;;  %v1297_v21 = vor.u32 %v1485_v13, %v1294_v14  ;;  %v1350_v24 = vld [vmem:[%s1680_s11 + $0x148] sm:$0xf0] }
  0x4f   : > { %778 = vmatpush.bf16.msra.mxu1 %v1253_v47  ;;  %v1517_v20 = vld [vmem:[%s1680_s11 + $0x1d4] sm:$0xf]  ;;  %v1422_v22 = vld [vmem:[%s1680_s11 + $0x1d8] sm:$0xf0]  ;;  %v1483_v25 = vld [vmem:[%s1680_s11 + $0xc4] sm:$0xf]  ;;  %v1233_v27 = vor.u32 %v1469_v18, %v1230_v19  ;;  %v1353_v32 = vor.u32 %v1499_v23, %v1350_v24 }
  0x50   : > { %797 = vmatpush.bf16.msra.mxu2 %v1317_v48  ;;  %v1286_v26 = vld [vmem:[%s1680_s11 + $0xc8] sm:$0xf0]  ;;  %v1467_v28 = vld [vmem:[%s1680_s11 + $0x44] sm:$0xf]  ;;  %v1425_v31 = vor.u32 %v1517_v20, %v1422_v22  ;;  %v1172_v34 = vld [vmem:[%s1682_s12 + $0x20] sm:$0xf] }
  0x51   : > { %816 = vmatpush.bf16.msra.mxu3 %v1381_v52  ;;  %760 = vmatmul.bf16.vlgmr.msra.gmra.mxu0 %v1764_v57  ;;  %v1222_v29 = vld [vmem:[%s1680_s11 + $0x48] sm:$0xf0]  ;;  %v1515_v30 = vld [vmem:[%s1680_s11 + $0x1c4] sm:$0xf]  ;;  %v1457_v35 = vld [vmem:[%s1682_s12 + $0x2c] sm:$0xf0]  ;;  %v1289_v36 = vor.u32 %v1483_v25, %v1286_v26 }
  0x52   : > { %779 = vmatmul.bf16.vlgmr.msra.gmra.mxu1 %v1769_v62  ;;  %828 = vmatpush.bf16.msrb.mxu0 %v1249_v3  ;;  %v1414_v33 = vld [vmem:[%s1680_s11 + $0x1c8] sm:$0xf0]  ;;  %v1455_v37 = vld [vmem:[%s1682_s12 + $0x24] sm:$0xf]  ;;  %v1174_v38 = vld [vmem:[%s1682_s12 + $0x30] sm:$0xf0]  ;;  %v1225_v44 = vor.u32 %v1467_v28, %v1222_v29 }
  0x53   : > { %847 = vmatpush.bf16.msrb.mxu1 %v1313_v58  ;;  %798 = vmatmul.bf16.vlgmr.msra.gmra.mxu2 %v1771_v63  ;;  %v1497_v39 = vld [vmem:[%s1680_s11 + $0x134] sm:$0xf]  ;;  %v1342_v40 = vld [vmem:[%s1680_s11 + $0x138] sm:$0xf0]  ;;  %v1180_v41 = vld [vmem:[%s1682_s12 + $0x28] sm:$0xf]  ;;  %v1417_v48 = vor.u32 %v1515_v30, %v1414_v33  ;;  %v1821_v59 = vor.u32 %v1455_v37, %v1174_v38 }
  0x54   : > { %866 = vmatpush.bf16.msrb.mxu2 %v1377_v53  ;;  %817 = vmatmul.bf16.vlgmr.msra.gmra.mxu3 %v1775_v2  ;;  %v1481_v42 = vld [vmem:[%s1680_s11 + $0xb4] sm:$0xf]  ;;  %v1278_v43 = vld [vmem:[%s1680_s11 + $0xb8] sm:$0xf0]  ;;  %v1458_v45 = vld [vmem:[%s1682_s12 + $0x34] sm:$0xf0]  ;;  %v1345_v49 = vor.u32 %v1497_v39, %v1342_v40  ;;  %v1816_v53 = vor.u32 %v1457_v35, %v1172_v34 }
  0x55   : > { %885 = vmatpush.bf16.msrb.mxu3 %v1441_v4  ;;  %v1456_v46 = vld [vmem:[%s1682_s12 + $0x2c] sm:$0xf]  ;;  %v1182_v47 = vld [vmem:[%s1682_s12 + $0x38] sm:$0xf0]  ;;  %v1465_v50 = vld [vmem:[%s1680_s11 + $0x34] sm:$0xf]  ;;  %v1281_v54 = vor.u32 %v1481_v42, %v1278_v43  ;;  %v1823_v60 = vor.u32 %v1458_v45, %v1180_v41 }
  0x56   : > { %829 = vmatpush.bf16.msrb.mxu0 %v1241_v15  ;;  %v1214_v51 = vld [vmem:[%s1680_s11 + $0x38] sm:$0xf0]  ;;  %v1513_v52 = vld [vmem:[%s1680_s11 + $0x1b4] sm:$0xf]  ;;  %v1495_v56 = vld [vmem:[%s1680_s11 + $0x124] sm:$0xf]  ;;  %v1185_v1 = vor.u32 %v1456_v46, %v1182_v47 }
  0x57   : > { %848 = vmatpush.bf16.msrb.mxu1 %v1305_v9  ;;  %v1406_v55 = vld [vmem:[%s1680_s11 + $0x1b8] sm:$0xf0]  ;;  %v1334_v58 = vld [vmem:[%s1680_s11 + $0x128] sm:$0xf0]  ;;  %v1479_v61 = vld [vmem:[%s1680_s11 + $0xa4] sm:$0xf]  ;;  %v1217_v3 = vor.u32 %v1465_v50, %v1214_v51 }
  0x58   : > { %867 = vmatpush.bf16.msrb.mxu2 %v1369_v5  ;;  %v1270_v0 = vld [vmem:[%s1680_s11 + $0xa8] sm:$0xf0]  ;;  %v1409_v4 = vor.u32 %v1513_v52, %v1406_v55  ;;  %v1337_v5 = vor.u32 %v1495_v56, %v1334_v58  ;;  %v1463_v6 = vld [vmem:[%s1680_s11 + $0x24] sm:$0xf]  ;;  %v1493_v11 = vld [vmem:[%s1680_s11 + $0x114] sm:$0xf] }
  0x59   : > { %886 = vmatpush.bf16.msrb.mxu3 %v1433_v16  ;;  %v1206_v7 = vld [vmem:[%s1680_s11 + $0x28] sm:$0xf0]  ;;  %v1511_v8 = vld [vmem:[%s1680_s11 + $0x1a4] sm:$0xf]  ;;  %v1273_v9 = vor.u32 %v1479_v61, %v1270_v0  ;;  %v1326_v12 = vld [vmem:[%s1680_s11 + $0x118] sm:$0xf0] }
  0x5a   : > { %830 = vmatpush.bf16.msrb.mxu0 %v1233_v27  ;;  %v1398_v10 = vld [vmem:[%s1680_s11 + $0x1a8] sm:$0xf0]  ;;  %v1477_v13 = vld [vmem:[%s1680_s11 + $0x94] sm:$0xf]  ;;  %v1262_v14 = vld [vmem:[%s1680_s11 + $0x98] sm:$0xf0]  ;;  %v1209_v15 = vor.u32 %v1463_v6, %v1206_v7 }
  0x5b   : > { %849 = vmatpush.bf16.msrb.mxu1 %v1297_v21  ;;  %v1401_v16 = vor.u32 %v1511_v8, %v1398_v10  ;;  %v1461_v18 = vld [vmem:[%s1680_s11 + $0x14] sm:$0xf]  ;;  %v1198_v19 = vld [vmem:[%s1680_s11 + $0x18] sm:$0xf0]  ;;  %v1265_v21 = vor.u32 %v1477_v13, %v1262_v14  ;;  %v1491_v23 = vld [vmem:[%s1680_s11 + $0x104] sm:$0xf] }
  0x5c   : > { %868 = vmatpush.bf16.msrb.mxu2 %v1361_v17  ;;  %v1329_v17 = vor.u32 %v1493_v11, %v1326_v12  ;;  %v1509_v20 = vld [vmem:[%s1680_s11 + $0x194] sm:$0xf]  ;;  %v1390_v22 = vld [vmem:[%s1680_s11 + $0x198] sm:$0xf0]  ;;  %v1318_v24 = vld [vmem:[%s1680_s11 + $0x108] sm:$0xf0]  ;;  %v1201_v27 = vor.u32 %v1461_v18, %v1198_v19 }
  0x5d   : > { %887 = vmatpush.bf16.msrb.mxu3 %v1425_v31  ;;  %v1475_v25 = vld [vmem:[%s1680_s11 + $0x84] sm:$0xf]  ;;  %v1254_v26 = vld [vmem:[%s1680_s11 + $0x88] sm:$0xf0]  ;;  %v1393_v28 = vor.u32 %v1509_v20, %v1390_v22  ;;  %v1321_v29 = vor.u32 %v1491_v23, %v1318_v24  ;;  %v312_v43 = vld [vmem:[#allocation2 + $0x30] sm:$0xff]  ;;  %p1442_p11 = scmp.ne.s32.totalorder %s1594_s17, 3 }
  0x5e   : > { %831 = vmatpush.bf16.msrb.mxu0 %v1225_v44  ;;  %v1459_v30 = vld [vmem:[%s1680_s11 + $0x4] sm:$0xf]  ;;  %v1190_v31 = vld [vmem:[%s1680_s11 + $0x8] sm:$0xf0]  ;;  %v315_v24 = vld [vmem:[#allocation2 + $0x10] sm:$0xff] }
  0x5f   : > { %850 = vmatpush.bf16.msrb.mxu1 %v1289_v36  ;;  %v1507_v33 = vld [vmem:[%s1680_s11 + $0x184] sm:$0xf]  ;;  %v1382_v34 = vld [vmem:[%s1680_s11 + $0x188] sm:$0xf0]  ;;  %v1193_v35 = vor.u32 %v1459_v30, %v1190_v31 }
  0x60   : > { %869 = vmatpush.bf16.msrb.mxu2 %v1353_v32  ;;  %v1257_v32 = vor.u32 %v1475_v25, %v1254_v26  ;;  %v1385_v36 = vor.u32 %v1507_v33, %v1382_v34  ;;  %v318_v6 = vld [vmem:[#allocation2 + $0x28] sm:$0xff]  ;;  %v317_v33 = vld [vmem:[#allocation2 + $0x20] sm:$0xff] }
  0x61   : > { %888 = vmatpush.bf16.msrb.mxu3 %v1417_v48  ;;  %765 = vmatmul.bf16.gmra.mxu0 %v1816_v53 }
  0x62   : > { %784 = vmatmul.bf16.gmra.mxu1 %v1821_v59  ;;  %832 = vmatpush.bf16.msrb.mxu0 %v1217_v3 }
  0x63   : > { %851 = vmatpush.bf16.msrb.mxu1 %v1281_v54  ;;  %803 = vmatmul.bf16.gmra.mxu2 %v1823_v60 }
  0x64   : > { %870 = vmatpush.bf16.msrb.mxu2 %v1345_v49  ;;  %822 = vmatmul.bf16.gmra.mxu3 %v1185_v1  ;;  %v314_v49 = vld [vmem:[#allocation2 + $0x18] sm:$0xff] }
  0x65   : > { %889 = vmatpush.bf16.msrb.mxu3 %v1409_v4 }
  0x66   : > { %833 = vmatpush.bf16.msrb.mxu0 %v1209_v15 }
  0x67   : > { %852 = vmatpush.bf16.msrb.mxu1 %v1273_v9 }
  0x68   : > { %871 = vmatpush.bf16.msrb.mxu2 %v1337_v5 }
  0x69   : > { %890 = vmatpush.bf16.msrb.mxu3 %v1401_v16 }
  0x6a   : > { %834 = vmatpush.bf16.msrb.mxu0 %v1201_v27 }
  0x6b   : > { %853 = vmatpush.bf16.msrb.mxu1 %v1265_v21 }
  0x6c   : > { %872 = vmatpush.bf16.msrb.mxu2 %v1329_v17  ;;  %v313_v17 = vld [vmem:[#allocation2] sm:$0xff] }
  0x6d   : > { %891 = vmatpush.bf16.msrb.mxu3 %v1393_v28 }
  0x6e   : > { %835 = vmatpush.bf16.msrb.mxu0 %v1193_v35 }
  0x6f   : > { %854 = vmatpush.bf16.msrb.mxu1 %v1257_v32 }
  0x70   : > { %873 = vmatpush.bf16.msrb.mxu2 %v1321_v29 }
  0x71   : > { %892 = vmatpush.bf16.msrb.mxu3 %v1385_v36  ;;  %836 = vmatmul.bf16.vlgmr.msrb.gmra.mxu0 %v1764_v57 }
  0x72   : > { %855 = vmatmul.bf16.vlgmr.msrb.gmra.mxu1 %v1769_v62 }
  0x73   : > { %874 = vmatmul.bf16.vlgmr.msrb.gmra.mxu2 %v1771_v63 }
  0x74   : > { %893 = vmatmul.bf16.vlgmr.msrb.gmra.mxu3 %v1775_v2 }
  0x81   : > { %841 = vmatmul.bf16.gmra.mxu0 %v1816_v53 }
  0x82   : > { %860 = vmatmul.bf16.gmra.mxu1 %v1821_v59  ;;  %v316_v59 = vld [vmem:[#allocation2 + $0x8] sm:$0xff] }
  0x83   : > { %879 = vmatmul.bf16.gmra.mxu2 %v1823_v60 }
  0x84   : > { %898 = vmatmul.bf16.gmra.mxu3 %v1185_v1 }
  0xce   : > { %v761_v37 = vpop.f32.mrf.mxu0 }
  0xcf   : > { %v780_v38 = vpop.f32.mrf.mxu1 }
  0xd0   : > { %v781_v39 = vadd.f32 %v780_v38, %v761_v37 }
  0xd6   : > { %v799_v40 = vpop.f32.mrf.mxu2  ;;  %v763_v57 = vpop.f32.mrf.mxu0 }
  0xd7   : > { %v800_v41 = vadd.f32 %v799_v40, %v781_v39  ;;  %v818_v42 = vpop.f32.mrf.mxu3  ;;  %v782_v62 = vpop.f32.mrf.mxu1 }
  0xd8   : > { %v783_v2 = vadd.f32 %v782_v62, %v763_v57 }
  0xd9   : > { %v819_v44 = vadd.f32 %v818_v42, %v800_v41  ;;  %v319_v41 = vld [vmem:[#allocation2 + $0x38] sm:$0xff] }
  0xdb   : > { %v904_v63 = vadd.f32 %v819_v44, %v312_v43 }
  0xdd   : > { %912 = vst [vmem:[#allocation2 + $0x30] sm:$0xff] %v904_v63 }
  0xde   : > { %v801_v45 = vpop.f32.mrf.mxu2  ;;  %v766_v48 = vpop.f32.mrf.mxu0 }
  0xdf   : > { %v802_v46 = vadd.f32 %v801_v45, %v783_v2  ;;  %v820_v47 = vpop.f32.mrf.mxu3  ;;  %v785_v50 = vpop.f32.mrf.mxu1 }
  0xe0   : > { %v786_v53 = vadd.f32 %v785_v50, %v766_v48 }
  0xe1   : > { %v821_v51 = vadd.f32 %v820_v47, %v802_v46 }
  0xe3   : > { %v906_v52 = vadd.f32 %v821_v51, %v314_v49 }
  0xe5   : > { %914 = vst [vmem:[#allocation2 + $0x18] sm:$0xff] %v906_v52 }
  0xe6   : > { %v804_v54 = vpop.f32.mrf.mxu2  ;;  %v768_v58 = vpop.f32.mrf.mxu0 }
  0xe7   : > { %v805_v55 = vadd.f32 %v804_v54, %v786_v53  ;;  %v823_v56 = vpop.f32.mrf.mxu3  ;;  %v787_v60 = vpop.f32.mrf.mxu1 }
  0xe8   : > { %v788_v1 = vadd.f32 %v787_v60, %v768_v58 }
  0xe9   : > { %v824_v61 = vadd.f32 %v823_v56, %v805_v55 }
  0xeb   : > { %v908_v0 = vadd.f32 %v824_v61, %v316_v59 }
  0xed   : > { %916 = vst [vmem:[#allocation2 + $0x8] sm:$0xff] %v908_v0 }
  0xee   : > { %v806_v3 = vpop.f32.mrf.mxu2  ;;  %v837_v7 = vpop.f32.mrf.mxu0 }
  0xef   : > { %v807_v4 = vadd.f32 %v806_v3, %v788_v1  ;;  %v825_v5 = vpop.f32.mrf.mxu3  ;;  %v856_v8 = vpop.f32.mrf.mxu1 }
  0xf0   : > { %v857_v11 = vadd.f32 %v856_v8, %v837_v7 }
  0xf1   : > { %v826_v9 = vadd.f32 %v825_v5, %v807_v4 }
  0xf3   : > { %v910_v10 = vadd.f32 %v826_v9, %v318_v6 }
  0xf5   : > { %918 = vst [vmem:[#allocation2 + $0x28] sm:$0xff] %v910_v10 }
  0xf6   : > { %v875_v12 = vpop.f32.mrf.mxu2  ;;  %v839_v15 = vpop.f32.mrf.mxu0 }
  0xf7   : > { %v894_v13 = vpop.f32.mrf.mxu3  ;;  %v876_v14 = vadd.f32 %v875_v12, %v857_v11  ;;  %v858_v16 = vpop.f32.mrf.mxu1 }
  0xf8   : > { %v859_v20 = vadd.f32 %v858_v16, %v839_v15 }
  0xf9   : > { %v895_v18 = vadd.f32 %v894_v13, %v876_v14 }
  0xfb   : > { %v905_v19 = vadd.f32 %v895_v18, %v313_v17 }
  0xfd   : > { %913 = vst [vmem:[#allocation2] sm:$0xff] %v905_v19 }
  0xfe   : > { %v877_v21 = vpop.f32.mrf.mxu2  ;;  %v842_v25 = vpop.f32.mrf.mxu0 }
  0xff   : > { %v896_v22 = vpop.f32.mrf.mxu3  ;;  %v878_v23 = vadd.f32 %v877_v21, %v859_v20  ;;  %v861_v26 = vpop.f32.mrf.mxu1 }
 0x100   : > { %v862_v29 = vadd.f32 %v861_v26, %v842_v25 }
 0x101   : > { %v897_v27 = vadd.f32 %v896_v22, %v878_v23 }
 0x103   : > { %v907_v28 = vadd.f32 %v897_v27, %v315_v24 }
 0x105   : > { %915 = vst [vmem:[#allocation2 + $0x10] sm:$0xff] %v907_v28 }
 0x106   : > { %v880_v30 = vpop.f32.mrf.mxu2  ;;  %v844_v35 = vpop.f32.mrf.mxu0 }
 0x107   : > { %v899_v31 = vpop.f32.mrf.mxu3  ;;  %v881_v32 = vadd.f32 %v880_v30, %v862_v29  ;;  %v863_v36 = vpop.f32.mrf.mxu1 }
 0x108   : > { %v864_v38 = vadd.f32 %v863_v36, %v844_v35 }
 0x109   : > { %v900_v34 = vadd.f32 %v899_v31, %v881_v32 }
 0x10b   : > { %v909_v37 = vadd.f32 %v900_v34, %v317_v33 }
 0x10d   : > { %917 = vst [vmem:[#allocation2 + $0x20] sm:$0xff] %v909_v37 }
 0x10e   : > { %v882_v39 = vpop.f32.mrf.mxu2 }
 0x10f   : > { %v883_v40 = vadd.f32 %v882_v39, %v864_v38  ;;  %v901_v42 = vpop.f32.mrf.mxu3 }
 0x111   : > { %v902_v57 = vadd.f32 %v901_v42, %v883_v40  ;;  %923 = sbr.rel (%p1442_p11) target bundleno = 305 (0x131), region = 59 }
 0x113   : > { %v911_v43 = vadd.f32 %v902_v57, %v319_v41 }
 0x115   : > { %919 = vst [vmem:[#allocation2 + $0x38] sm:$0xff] %v911_v43 }
 0x116   : > { %v924_v62 = vld [vmem:[#allocation2 + $0x30] sm:$0xff]  ;;  %v925_v44 = vld [vmem:[#allocation2] sm:$0xff]  ;;  %v926_v63 = vld [vmem:[#allocation2 + $0x18] sm:$0xff]  ;;  %v964_v26 = vlaneseq  ;;  %vm961_vm0 = vcmask 1040384  }
 0x117   : > { %932 = vst [vmem:[%s1905_s2] sm:$0xff] %v924_v62  ;;  %v969_v2 = vmul.f32 %v924_v62, %v924_v62  ;;  %v970_v45 = vmul.f32 %v925_v44, %v925_v44  ;;  %v940_v46 = vadd.f32 %v926_v63, %v924_v62  ;;  %v971_v47 = vmul.f32 %v926_v63, %v926_v63  ;;  %v927_v48 = vld [vmem:[#allocation2 + $0x10] sm:$0xff]  ;;  %v928_v49 = vld [vmem:[#allocation2 + $0x8] sm:$0xff]  ;;  %v929_v50 = vld [vmem:[#allocation2 + $0x20] sm:$0xff] }
 0x118   : > { %933 = vst [vmem:[%s1905_s2 + $0x8] sm:$0xff] %v925_v44  ;;  %v949_v51 = vadd.f32 %v927_v48, %v925_v44  ;;  %v972_v52 = vmul.f32 %v927_v48, %v927_v48  ;;  %v973_v53 = vmul.f32 %v928_v49, %v928_v49  ;;  %v974_v54 = vmul.f32 %v929_v50, %v929_v50  ;;  %v930_v55 = vld [vmem:[#allocation2 + $0x28] sm:$0xff] }
 0x119   : > { %934 = vst [vmem:[%s1905_s2 + $0x10] sm:$0xff] %v926_v63  ;;  %v977_v58 = vadd.f32 %v971_v47, %v969_v2  ;;  %v941_v59 = vadd.f32 %v940_v46, %v928_v49  ;;  %v975_v60 = vmul.f32 %v930_v55, %v930_v55  ;;  %vm966_vm1 = vcmp.lt.s32.totalorder %v964_v26, 256 }
 0x11a   : > { %935 = vst [vmem:[%s1905_s2 + $0x18] sm:$0xff] %v927_v48  ;;  %v986_v61 = vadd.f32 %v972_v52, %v970_v45  ;;  %v950_v0 = vadd.f32 %v949_v51, %v929_v50 }
 0x11b   : > { %936 = vst [vmem:[%s1905_s2 + $0x20] sm:$0xff] %v928_v49  ;;  %v978_v3 = vadd.f32 %v977_v58, %v973_v53  ;;  %v942_v4 = vadd.f32 %v941_v59, %v930_v55 }
 0x11c   : > { %v931_v56 = vld [vmem:[#allocation2 + $0x38] sm:$0xff]  ;;  %937 = vst [vmem:[%s1905_s2 + $0x28] sm:$0xff] %v929_v50  ;;  %v987_v5 = vadd.f32 %v986_v61, %v974_v54 }
 0x11d   : > { %v976_v1 = vmul.f32 %v931_v56, %v931_v56  ;;  %v951_v6 = vadd.f32 %v950_v0, %v931_v56  ;;  %938 = vst [vmem:[%s1905_s2 + $0x30] sm:$0xff] %v930_v55  ;;  %v943_v7 = vrot.slane %v942_v4, 4  ;;  %v979_v8 = vadd.f32 %v978_v3, %v975_v60 }
 0x11e   : > { %939 = vst [vmem:[%s1905_s2 + $0x38] sm:$0xff] %v931_v56 }
 0x11f   : > { %v952_v9 = vrot.slane %v951_v6, 4  ;;  %v988_v10 = vadd.f32 %v987_v5, %v976_v1  ;;  %v944_v11 = vadd.f32 %v943_v7, %v942_v4  ;;  %v980_v12 = vrot.slane %v979_v8, 4 }
 0x121   : > { %v953_v13 = vadd.f32 %v952_v9, %v951_v6  ;;  %v989_v14 = vrot.slane %v988_v10, 4  ;;  %v945_v15 = vrot.slane %v944_v11, 2  ;;  %v981_v16 = vadd.f32 %v980_v12, %v979_v8 }
 0x123   : > { %v954_v17 = vrot.slane %v953_v13, 2  ;;  %v990_v18 = vadd.f32 %v989_v14, %v988_v10  ;;  %v946_v19 = vadd.f32 %v945_v15, %v944_v11  ;;  %v982_v20 = vrot.slane %v981_v16, 2 }
 0x125   : > { %v955_v21 = vadd.f32 %v954_v17, %v953_v13  ;;  %v991_v22 = vrot.slane %v990_v18, 2  ;;  %v947_v23 = vrot.slane %v946_v19, 1  ;;  %v983_v24 = vadd.f32 %v982_v20, %v981_v16 }
 0x127   : > { %v956_v25 = vrot.slane %v955_v21, 1  ;;  %v992_v27 = vadd.f32 %v991_v22, %v990_v18  ;;  %v984_v28 = vrot.slane %v983_v24, 1  ;;  %v948_v29 = vadd.f32 %v947_v23, %v946_v19 }
 0x129   : > { %v957_v30 = vadd.f32 %v956_v25, %v955_v21  ;;  %v993_v31 = vrot.slane %v992_v27, 1  ;;  %v985_v33 = vadd.f32 %v984_v28, %v983_v24 }
 0x12b   : > { %v960_v32 = vrot.slane %v957_v30, 7  ;;  %v994_v34 = vadd.f32 %v993_v31, %v992_v27 }
 0x12d   : > { %v962_v35 = vsel %vm961_vm0, %v948_v29, %v960_v32  ;;  %v997_v36 = vrot.slane %v994_v34, 7 }
 0x12e   : > { %968 = vst.msk [vmem:[%s1906_s3] sm:$0x3] %vm966_vm1, %v962_v35 }
 0x12f   : > { %v998_v37 = vsel %vm961_vm0, %v985_v33, %v997_v36 }
 0x130   : > { %1000 = vst.msk [vmem:[%s1907_s4] sm:$0x3] %vm966_vm1, %v998_v37 }
 0x131 PF: > { %s15_s19 = sadd.s32 1, %s1602_s19   ;;  %s1908_s15 = smov %s1590_s16 }
 0x132   : > { %p12_p12 = scmp.ge.s32.totalorder %s15_s19, 6   ;;  %s1909_s16 = smov %s1665_s23 }
 0x133   : > { %s1910_s17 = smov %s1598_s18  ;;  %s1911_s18 = smov %s1913_s20 }
 0x134   :  { %14 = sbr.rel (!%p12_p12) target bundleno = 3 (0x3), region = 121 }

// kernel: discriminator_forward.12
= control target key start
LH: loop header
LB: loop body
LE: loop exit
PB: predicated region body
PF: predicated region fallthrough
CT: control target
= control target key end

     0   :  { %s148_s0 = inlined_call_operand.vmem [shape: f32[32,256], index: 0, kind: input, shape index: {}]   ;;  %s149_s1 = inlined_call_operand.vmem [shape: f32[1,256], index: 1, kind: input, shape index: {}]   ;;  %s150_s2 = inlined_call_operand.vmem [shape: f32[1,256], index: 2, kind: input, shape index: {}]   ;;  %s151_s3 = inlined_call_operand.vmem [shape: bf16[32,256], index: 3, kind: output, shape index: {}]  }
   0x1   :  { %v14_v0 = vld [vmem:[%s148_s0] sm:$0xff]  ;;  %v15_v1 = vld [vmem:[%s148_s0 + $0x8] sm:$0xff]  ;;  %v16_v6 = vld [vmem:[%s148_s0 + $0x10] sm:$0xff] }
   0x2   :  { %v22_v2 = vld [vmem:[%s149_s1] sm:$0x3]  ;;  %v17_v7 = vld [vmem:[%s148_s0 + $0x18] sm:$0xff]  ;;  %v19_v11 = vld [vmem:[%s148_s0 + $0x28] sm:$0xff] }
   0x3   :  { %v24_v3 = vperm.slane %v22_v2, 0  ;;  %v25_v4 = vperm.slane %v22_v2, 1  ;;  %v36_v5 = vld [vmem:[%s150_s2] sm:$0x3]  ;;  %v20_v12 = vld [vmem:[%s148_s0 + $0x30] sm:$0xff]  ;;  %v21_v17 = vld [vmem:[%s148_s0 + $0x38] sm:$0xff] }
   0x4   :  { %v38_v8 = vperm.slane %v36_v5, 0  ;;  %v39_v9 = vperm.slane %v36_v5, 1  ;;  %v18_v10 = vld [vmem:[%s148_s0 + $0x20] sm:$0xff] }
   0x5   :  { %v28_v13 = vmul.f32 %v24_v3, %v14_v0  ;;  %v29_v14 = vmul.f32 %v25_v4, %v15_v1  ;;  %v30_v15 = vmul.f32 %v24_v3, %v16_v6  ;;  %v31_v16 = vmul.f32 %v25_v4, %v17_v7 }
   0x6   :  { %v32_v18 = vmul.f32 %v24_v3, %v18_v10  ;;  %v33_v19 = vmul.f32 %v25_v4, %v19_v11  ;;  %v34_v20 = vmul.f32 %v24_v3, %v20_v12  ;;  %v35_v21 = vmul.f32 %v25_v4, %v21_v17 }
   0x7   :  { %v42_v22 = vadd.f32 %v38_v8, %v28_v13  ;;  %v43_v23 = vadd.f32 %v39_v9, %v29_v14  ;;  %v44_v24 = vadd.f32 %v38_v8, %v30_v15  ;;  %v45_v25 = vadd.f32 %v39_v9, %v31_v16 }
   0x8   :  { %v46_v26 = vadd.f32 %v38_v8, %v32_v18  ;;  %v47_v27 = vadd.f32 %v39_v9, %v33_v19  ;;  %v48_v28 = vadd.f32 %v38_v8, %v34_v20  ;;  %v49_v29 = vadd.f32 %v39_v9, %v35_v21 }
   0x9   :  { %vm50_vm0 = vcmp.ge.f32.partialorder %v42_v22, 0.0  ;;  %vm51_vm1 = vcmp.ge.f32.partialorder %v43_v23, 0.0  ;;  %v58_v30 = vmul.f32 0.2, %v42_v22  ;;  %v59_v31 = vmul.f32 0.2, %v43_v23 }
   0xa   :  { %vm52_vm2 = vcmp.ge.f32.partialorder %v44_v24, 0.0  ;;  %vm53_vm3 = vcmp.ge.f32.partialorder %v45_v25, 0.0  ;;  %v60_v32 = vmul.f32 0.2, %v44_v24  ;;  %v61_v33 = vmul.f32 0.2, %v45_v25 }
   0xb   :  { %v66_v34 = vsel %vm50_vm0, %v42_v22, %v58_v30  ;;  %v67_v35 = vsel %vm51_vm1, %v43_v23, %v59_v31  ;;  %vm54_vm4 = vcmp.ge.f32.partialorder %v46_v26, 0.0  ;;  %vm55_vm5 = vcmp.ge.f32.partialorder %v47_v27, 0.0 }
   0xc   :  { %v74_v36 = vpack.c.bf16 %v67_v35, %v66_v34  ;;  %v68_v37 = vsel %vm52_vm2, %v44_v24, %v60_v32  ;;  %v69_v38 = vsel %vm53_vm3, %v45_v25, %v61_v33  ;;  %v62_v39 = vmul.f32 0.2, %v46_v26 }
   0xd   :  { %v75_v40 = vpack.c.bf16 %v69_v38, %v68_v37  ;;  %v63_v41 = vmul.f32 0.2, %v47_v27  ;;  %vm56_vm6 = vcmp.ge.f32.partialorder %v48_v28, 0.0  ;;  %vm57_vm7 = vcmp.ge.f32.partialorder %v49_v29, 0.0 }
   0xe   :  { %78 = vst [vmem:[%s151_s3] sm:$0xff] %v74_v36  ;;  %v70_v42 = vsel %vm54_vm4, %v46_v26, %v62_v39  ;;  %v64_v43 = vmul.f32 0.2, %v48_v28  ;;  %v65_v44 = vmul.f32 0.2, %v49_v29 }
   0xf   :  { %79 = vst [vmem:[%s151_s3 + $0x8] sm:$0xff] %v75_v40  ;;  %v71_v45 = vsel %vm55_vm5, %v47_v27, %v63_v41 }
  0x10   :  { %v76_v46 = vpack.c.bf16 %v71_v45, %v70_v42  ;;  %v72_v47 = vsel %vm56_vm6, %v48_v28, %v64_v43  ;;  %v73_v48 = vsel %vm57_vm7, %v49_v29, %v65_v44 }
  0x11   :  { %v77_v49 = vpack.c.bf16 %v73_v48, %v72_v47 }
  0x12   :  { %80 = vst [vmem:[%s151_s3 + $0x10] sm:$0xff] %v76_v46 }
  0x13   :  { %81 = vst [vmem:[%s151_s3 + $0x18] sm:$0xff] %v77_v49 }

// kernel: discriminator_forward.14
= control target key start
LH: loop header
LB: loop body
LE: loop exit
PB: predicated region body
PF: predicated region fallthrough
CT: control target
= control target key end

     0   :  { %s297_s0 = inlined_call_operand.vmem [shape: f32[32,512], index: 0, kind: input, shape index: {}]   ;;  %s298_s1 = inlined_call_operand.vmem [shape: f32[1,512], index: 1, kind: input, shape index: {}]   ;;  %s299_s2 = inlined_call_operand.vmem [shape: f32[1,512], index: 2, kind: input, shape index: {}]   ;;  %s300_s3 = inlined_call_operand.vmem [shape: bf16[32,512], index: 3, kind: output, shape index: {}]  }
   0x1   :  { %v14_v0 = vld [vmem:[%s297_s0] sm:$0xff]  ;;  %v15_v1 = vld [vmem:[%s297_s0 + $0x8] sm:$0xff]  ;;  %v16_v6 = vld [vmem:[%s297_s0 + $0x10] sm:$0xff] }
   0x2   :  { %v30_v2 = vld [vmem:[%s298_s1] sm:$0xf]  ;;  %v17_v7 = vld [vmem:[%s297_s0 + $0x18] sm:$0xff]  ;;  %v19_v13 = vld [vmem:[%s297_s0 + $0x28] sm:$0xff] }
   0x3   :  { %v179_v3 = vperm.slane %v30_v2, 0  ;;  %v181_v4 = vperm.slane %v30_v2, 1  ;;  %v56_v5 = vld [vmem:[%s299_s2] sm:$0xf]  ;;  %v196_v10 = vperm.slane %v30_v2, 2  ;;  %v198_v11 = vperm.slane %v30_v2, 3 }
   0x4   :  { %v192_v8 = vperm.slane %v56_v5, 0  ;;  %v194_v9 = vperm.slane %v56_v5, 1  ;;  %v18_v12 = vld [vmem:[%s297_s0 + $0x20] sm:$0xff]  ;;  %v208_v16 = vperm.slane %v56_v5, 2  ;;  %v210_v17 = vperm.slane %v56_v5, 3  ;;  %v20_v18 = vld [vmem:[%s297_s0 + $0x30] sm:$0xff] }
   0x5   :  { %v40_v14 = vmul.f32 %v179_v3, %v14_v0  ;;  %v41_v15 = vmul.f32 %v181_v4, %v15_v1  ;;  %v21_v19 = vld [vmem:[%s297_s0 + $0x38] sm:$0xff]  ;;  %v42_v20 = vmul.f32 %v196_v10, %v16_v6  ;;  %v43_v21 = vmul.f32 %v198_v11, %v17_v7  ;;  %v22_v38 = vld [vmem:[%s297_s0 + $0x40] sm:$0xff]  ;;  %v23_v39 = vld [vmem:[%s297_s0 + $0x48] sm:$0xff] }
   0x6   :  { %v44_v22 = vmul.f32 %v179_v3, %v18_v12  ;;  %v45_v23 = vmul.f32 %v181_v4, %v19_v13  ;;  %v46_v26 = vmul.f32 %v196_v10, %v20_v18  ;;  %v47_v27 = vmul.f32 %v198_v11, %v21_v19  ;;  %v24_v40 = vld [vmem:[%s297_s0 + $0x50] sm:$0xff]  ;;  %v25_v52 = vld [vmem:[%s297_s0 + $0x58] sm:$0xff]  ;;  %v26_v54 = vld [vmem:[%s297_s0 + $0x60] sm:$0xff] }
   0x7   :  { %v66_v24 = vadd.f32 %v192_v8, %v40_v14  ;;  %v67_v25 = vadd.f32 %v194_v9, %v41_v15  ;;  %v68_v28 = vadd.f32 %v208_v16, %v42_v20  ;;  %v69_v29 = vadd.f32 %v210_v17, %v43_v21  ;;  %v27_v0 = vld [vmem:[%s297_s0 + $0x68] sm:$0xff]  ;;  %v28_v6 = vld [vmem:[%s297_s0 + $0x70] sm:$0xff]  ;;  %v29_v19 = vld [vmem:[%s297_s0 + $0x78] sm:$0xff] }
   0x8   :  { %v70_v30 = vadd.f32 %v192_v8, %v44_v22  ;;  %v71_v31 = vadd.f32 %v194_v9, %v45_v23  ;;  %v72_v47 = vadd.f32 %v208_v16, %v46_v26  ;;  %v73_v48 = vadd.f32 %v210_v17, %v47_v27 }
   0x9   :  { %vm82_vm0 = vcmp.ge.f32.partialorder %v66_v24, 0.0  ;;  %vm83_vm1 = vcmp.ge.f32.partialorder %v67_v25, 0.0  ;;  %v98_v32 = vmul.f32 0.2, %v66_v24  ;;  %v99_v33 = vmul.f32 0.2, %v67_v25 }
   0xa   :  { %vm84_vm2 = vcmp.ge.f32.partialorder %v68_v28, 0.0  ;;  %vm85_vm3 = vcmp.ge.f32.partialorder %v69_v29, 0.0  ;;  %v100_v34 = vmul.f32 0.2, %v68_v28  ;;  %v101_v35 = vmul.f32 0.2, %v69_v29 }
   0xb   :  { %v114_v36 = vsel %vm82_vm0, %v66_v24, %v98_v32  ;;  %v115_v37 = vsel %vm83_vm1, %v67_v25, %v99_v33  ;;  %vm86_vm4 = vcmp.ge.f32.partialorder %v70_v30, 0.0  ;;  %vm87_vm5 = vcmp.ge.f32.partialorder %v71_v31, 0.0 }
   0xc   :  { %v130_v41 = vpack.c.bf16 %v115_v37, %v114_v36  ;;  %v116_v42 = vsel %vm84_vm2, %v68_v28, %v100_v34  ;;  %v117_v43 = vsel %vm85_vm3, %v69_v29, %v101_v35  ;;  %v102_v44 = vmul.f32 0.2, %v70_v30 }
   0xd   :  { %v131_v45 = vpack.c.bf16 %v117_v43, %v116_v42  ;;  %v103_v46 = vmul.f32 0.2, %v71_v31  ;;  %v48_v50 = vmul.f32 %v179_v3, %v22_v38  ;;  %v49_v51 = vmul.f32 %v181_v4, %v23_v39 }
   0xe   :  { %138 = vst [vmem:[%s300_s3] sm:$0xff] %v130_v41  ;;  %v118_v49 = vsel %vm86_vm4, %v70_v30, %v102_v44  ;;  %v50_v53 = vmul.f32 %v196_v10, %v24_v40  ;;  %vm88_vm6 = vcmp.ge.f32.partialorder %v72_v47, 0.0  ;;  %vm89_vm7 = vcmp.ge.f32.partialorder %v73_v48, 0.0 }
   0xf   :  { %139 = vst [vmem:[%s300_s3 + $0x8] sm:$0xff] %v131_v45  ;;  %v119_v55 = vsel %vm87_vm5, %v71_v31, %v103_v46  ;;  %v104_v56 = vmul.f32 0.2, %v72_v47  ;;  %v105_v58 = vmul.f32 0.2, %v73_v48  ;;  %v74_v59 = vadd.f32 %v192_v8, %v48_v50 }
  0x10   :  { %v132_v57 = vpack.c.bf16 %v119_v55, %v118_v49  ;;  %v75_v60 = vadd.f32 %v194_v9, %v49_v51  ;;  %v51_v62 = vmul.f32 %v198_v11, %v25_v52  ;;  %v76_v63 = vadd.f32 %v208_v16, %v50_v53 }
  0x11   :  { %v120_v61 = vsel %vm88_vm6, %v72_v47, %v104_v56  ;;  %v52_v1 = vmul.f32 %v179_v3, %v26_v54  ;;  %v121_v2 = vsel %vm89_vm7, %v73_v48, %v105_v58  ;;  %vm90_vm8 = vcmp.ge.f32.partialorder %v74_v59, 0.0 }
  0x12   :  { %140 = vst [vmem:[%s300_s3 + $0x10] sm:$0xff] %v132_v57  ;;  %vm91_vm9 = vcmp.ge.f32.partialorder %v75_v60, 0.0  ;;  %v106_v5 = vmul.f32 0.2, %v74_v59  ;;  %v133_v7 = vpack.c.bf16 %v121_v2, %v120_v61  ;;  %v107_v12 = vmul.f32 0.2, %v75_v60 }
  0x13   :  { %v77_v13 = vadd.f32 %v210_v17, %v51_v62  ;;  %vm92_vm10 = vcmp.ge.f32.partialorder %v76_v63, 0.0  ;;  %v108_v15 = vmul.f32 0.2, %v76_v63  ;;  %v53_v3 = vmul.f32 %v181_v4, %v27_v0 }
  0x14   :  { %v122_v14 = vsel %vm90_vm8, %v74_v59, %v106_v5  ;;  %v78_v18 = vadd.f32 %v192_v8, %v52_v1  ;;  %141 = vst [vmem:[%s300_s3 + $0x18] sm:$0xff] %v133_v7  ;;  %v123_v20 = vsel %vm91_vm9, %v75_v60, %v107_v12  ;;  %v54_v22 = vmul.f32 %v196_v10, %v28_v6 }
  0x15   :  { %vm93_vm11 = vcmp.ge.f32.partialorder %v77_v13, 0.0  ;;  %v109_v21 = vmul.f32 0.2, %v77_v13  ;;  %v134_v23 = vpack.c.bf16 %v123_v20, %v122_v14  ;;  %v124_v24 = vsel %vm92_vm10, %v76_v63, %v108_v15 }
  0x16   :  { %v79_v25 = vadd.f32 %v194_v9, %v53_v3  ;;  %vm94_vm12 = vcmp.ge.f32.partialorder %v78_v18, 0.0  ;;  %v110_v8 = vmul.f32 0.2, %v78_v18  ;;  %v55_v26 = vmul.f32 %v198_v11, %v29_v19 }
  0x17   :  { %v125_v4 = vsel %vm93_vm11, %v77_v13, %v109_v21  ;;  %v80_v27 = vadd.f32 %v208_v16, %v54_v22  ;;  %142 = vst [vmem:[%s300_s3 + $0x20] sm:$0xff] %v134_v23 }
  0x18   :  { %v135_v28 = vpack.c.bf16 %v125_v4, %v124_v24  ;;  %vm95_vm13 = vcmp.ge.f32.partialorder %v79_v25, 0.0  ;;  %v111_v29 = vmul.f32 0.2, %v79_v25  ;;  %v126_v30 = vsel %vm94_vm12, %v78_v18, %v110_v8 }
  0x19   :  { %v81_v10 = vadd.f32 %v210_v17, %v55_v26  ;;  %vm96_vm14 = vcmp.ge.f32.partialorder %v80_v27, 0.0  ;;  %v112_v31 = vmul.f32 0.2, %v80_v27 }
  0x1a   :  { %143 = vst [vmem:[%s300_s3 + $0x28] sm:$0xff] %v135_v28  ;;  %v127_v9 = vsel %vm95_vm13, %v79_v25, %v111_v29 }
  0x1b   :  { %v136_v11 = vpack.c.bf16 %v127_v9, %v126_v30  ;;  %vm97_vm15 = vcmp.ge.f32.partialorder %v81_v10, 0.0  ;;  %v113_v16 = vmul.f32 0.2, %v81_v10  ;;  %v128_v32 = vsel %vm96_vm14, %v80_v27, %v112_v31 }
  0x1d   :  { %144 = vst [vmem:[%s300_s3 + $0x30] sm:$0xff] %v136_v11  ;;  %v129_v33 = vsel %vm97_vm15, %v81_v10, %v113_v16 }
  0x1e   :  { %v137_v34 = vpack.c.bf16 %v129_v33, %v128_v32 }
  0x20   :  { %145 = vst [vmem:[%s300_s3 + $0x38] sm:$0xff] %v137_v34 }

// kernel: discriminator_forward.13
= control target key start
LH: loop header
LB: loop body
LE: loop exit
PB: predicated region body
PF: predicated region fallthrough
CT: control target
= control target key end

     0   :  { %s2592_s15 = smov 0   ;;  %s2594_s16 = smov 0   ;;  %s3041_s0 = inlined_call_operand.vmem [shape: bf16[32,4096], index: 0, kind: input, shape index: {}]   ;;  %s3042_s1 = inlined_call_operand.vmem [shape: bf16[4096,512], index: 1, kind: input, shape index: {}]   ;;  %s3043_s2 = inlined_call_operand.vmem [shape: f32[32,512], index: 2, kind: output, shape index: {0}]   ;;  %s3044_s3 = inlined_call_operand.vmem [shape: f32[1,512], index: 3, kind: output, shape index: {1}]   ;;  %s3045_s4 = inlined_call_operand.vmem [shape: f32[1,512], index: 4, kind: output, shape index: {2}]  }
   0x1   :  { %s2596_s17 = smov 0   ;;  %s2598_s18 = smov 0  }
   0x2   :  { %s2600_s19 = smov 0  }
   0x3 LB: > { %s24_s20 = sadd.s32 1, %s2560_s18  ;;  %p43_p1 = scmp.ne.s32.totalorder %s2552_s16, %s2548_s15  ;;  %s2564_s19 = sphi %s2600_s19, %s15_s19   ;;  %s2560_s18 = sphi %s2598_s18, %s3049_s18   ;;  %s2556_s17 = sphi %s2596_s17, %s3048_s17   ;;  %s2552_s16 = sphi %s2594_s16, %s3047_s16   ;;  %s2548_s15 = sphi %s2592_s15, %s3046_s15  }
   0x4   : > { %p25_p0 = scmp.ge.s32.totalorder %s24_s20, 8  ;;  %p44_p2 = scmp.eq.s32.totalorder %s2564_s19, 0 }
   0x5   : > { %s36_s22 = sadd.s32 1, %s2552_s16  ;;  %p1786_p5 = scmp.ge.s32.totalorder %s2564_s19, 8 }
   0x6   : > { %s3051_s20 = smov (%p25_p0, %s24_s20), 0  ;;  %p45_p3 = por %p44_p2, %p43_p1 }
   0x7   : > { %s32_s21 = ssub.s32 %s2560_s18, %s3051_s20  ;;  %173 = sbr.rel (%p1786_p5) target bundleno = 24 (0x18), region = 16 }
   0x8   : > { %p34_p4 = scmp.eq.s32.totalorder %s32_s21, 0 }
   0xa   : > { %s2627_s23 = scalar_select %p34_p4, %s2552_s16, %s36_s22  }
   0xc   : > { %176 = sbr.rel (!%p45_p3) target bundleno = 24 (0x18), region = 20  ;;  %s178_s24 = sand.u32 (%p45_p3), 1, %s2552_s16  }
   0xd   : > { %s2347_s25 = sshll.u32 (%p45_p3), %s2560_s18, 4  ;;  %s1787_s26 = sshll.u32 (%p45_p3), %s178_s24, 6 }
   0xe   : > { %s186_s29 = scalar_lea.vmem (%p45_p3), %s3041_s0, %s2347_s25  ;;  %s180_s30 = scalar_lea.vmem (%p45_p3), [#allocation3], %s1787_s26 }
   0xf   : > { %v199_v0 = vld [vmem:[%s186_s29] sm:$0xff] (%p45_p3)  ;;  %v201_v1 = vld [vmem:[%s186_s29 + $0x8] sm:$0xff] (%p45_p3) }
  0x10   : > { %v203_v2 = vld [vmem:[%s186_s29 + $0x80] sm:$0xff] (%p45_p3)  ;;  %200 = vst [vmem:[%s180_s30] sm:$0xff] (%p45_p3), %v199_v0  ;;  %v205_v3 = vld [vmem:[%s186_s29 + $0x88] sm:$0xff] (%p45_p3) }
  0x11   : > { %202 = vst [vmem:[%s180_s30 + $0x8] sm:$0xff] %v201_v1  ;;  %v207_v4 = vld [vmem:[%s186_s29 + $0x100] sm:$0xff]  ;;  %v209_v5 = vld [vmem:[%s186_s29 + $0x108] sm:$0xff] }
  0x12   : > { %204 = vst [vmem:[%s180_s30 + $0x10] sm:$0xff] %v203_v2  ;;  %v211_v6 = vld [vmem:[%s186_s29 + $0x180] sm:$0xff]  ;;  %v213_v7 = vld [vmem:[%s186_s29 + $0x188] sm:$0xff] }
  0x13   : > { %206 = vst [vmem:[%s180_s30 + $0x18] sm:$0xff] %v205_v3 }
  0x14   : > { %208 = vst [vmem:[%s180_s30 + $0x20] sm:$0xff] %v207_v4 }
  0x15   : > { %210 = vst [vmem:[%s180_s30 + $0x28] sm:$0xff] %v209_v5 }
  0x16   : > { %212 = vst [vmem:[%s180_s30 + $0x30] sm:$0xff] %v211_v6 }
  0x17   : > { %214 = vst [vmem:[%s180_s30 + $0x38] sm:$0xff] %v213_v7 }
  0x18 PF: > { %p1790_p6 = scmp.ge.s32.totalorder %s2564_s19, 1  ;;  %p229_p7 = scmp.lt.s32.totalorder %s2564_s19, 9 }
  0x1a   : > { %p230_p8 = pnand %p1790_p6, %p229_p7 }
  0x1b   : > { %s236_s5 = sand.u32 (!%p230_p8), 1, %s2548_s15   ;;  %s1792_s6 = sshll.u32 (!%p230_p8), %s2556_s17, 6 }
  0x1c   : > { %233 = sbr.rel (%p230_p8) target bundleno = 383 (0x17f), region = 47  ;;  %s1791_s7 = sshll.u32 (!%p230_p8), %s236_s5, 6 }
  0x1d   : > { %p279_p9 = scmp.lt.s32.totalorder (!%p230_p8), %s1792_s6, 511  ;;  %s2644_s12 = scalar_lea.vmem (!%p230_p8), [#allocation3], %s1791_s7 }
  0x1e   : > { %p1795_p10 = scmp.ne.s32.totalorder (!%p230_p8), %s2556_s17, 0 }
  0x21   : > { %s3053_s6 = smov (!%p279_p9, %s1792_s6), 511  ;;  %303 = sbr.rel (%p1795_p10) target bundleno = 55 (0x37), region = 55 }
  0x22   : > { %s2348_s8 = sshll.u32 %s3053_s6, 4 }
  0x23   : > { %s2642_s11 = scalar_lea.vmem %s3042_s1, %s2348_s8 }
  0x26   : > { %v2566_v8 = vmov 0.0  }
  0x27   : > { %304 = vst [vmem:[#allocation2 + $0x30] sm:$0xff] %v2566_v8 }
  0x28   : > { %305 = vst [vmem:[#allocation2] sm:$0xff] %v2566_v8 }
  0x29   : > { %306 = vst [vmem:[#allocation2 + $0x58] sm:$0xff] %v2566_v8 }
  0x2a   : > { %307 = vst [vmem:[#allocation2 + $0x18] sm:$0xff] %v2566_v8 }
  0x2b   : > { %308 = vst [vmem:[#allocation2 + $0x50] sm:$0xff] %v2566_v8 }
  0x2c   : > { %309 = vst [vmem:[#allocation2 + $0x68] sm:$0xff] %v2566_v8 }
  0x2d   : > { %310 = vst [vmem:[#allocation2 + $0x8] sm:$0xff] %v2566_v8 }
  0x2e   : > { %311 = vst [vmem:[#allocation2 + $0x48] sm:$0xff] %v2566_v8 }
  0x2f   : > { %312 = vst [vmem:[#allocation2 + $0x40] sm:$0xff] %v2566_v8 }
  0x30   : > { %313 = vst [vmem:[#allocation2 + $0x20] sm:$0xff] %v2566_v8 }
  0x31   : > { %314 = vst [vmem:[#allocation2 + $0x10] sm:$0xff] %v2566_v8 }
  0x32   : > { %315 = vst [vmem:[#allocation2 + $0x38] sm:$0xff] %v2566_v8 }
  0x33   : > { %316 = vst [vmem:[#allocation2 + $0x60] sm:$0xff] %v2566_v8 }
  0x34   : > { %317 = vst [vmem:[#allocation2 + $0x70] sm:$0xff] %v2566_v8 }
  0x35   : > { %318 = vst [vmem:[#allocation2 + $0x78] sm:$0xff] %v2566_v8 }
  0x36   : > { %319 = vst [vmem:[#allocation2 + $0x28] sm:$0xff] %v2566_v8 }
  0x37 PF: > { %v1942_v9 = vld [vmem:[%s2642_s11 + $0xe0] sm:$0xf]  ;;  %v2387_v10 = vld [vmem:[%s2642_s11 + $0xec] sm:$0xf0]  ;;  %p2340_p11 = scmp.ne.s32.totalorder %s2556_s17, 7 }
  0x38   : > { %v2070_v11 = vld [vmem:[%s2642_s11 + $0x1e0] sm:$0xf]  ;;  %v1943_v12 = vor.u32 %v2387_v10, %v1942_v9  ;;  %v2419_v13 = vld [vmem:[%s2642_s11 + $0x1ec] sm:$0xf0] }
  0x39   : > { %v2198_v14 = vld [vmem:[%s2642_s11 + $0x2e0] sm:$0xf]  ;;  %v2451_v15 = vld [vmem:[%s2642_s11 + $0x2ec] sm:$0xf0]  ;;  %v2071_v16 = vor.u32 %v2419_v13, %v2070_v11 }
  0x3a   : > { %v2199_v17 = vor.u32 %v2451_v15, %v2198_v14  ;;  %v2326_v18 = vld [vmem:[%s2642_s11 + $0x3e0] sm:$0xf]  ;;  %v2483_v19 = vld [vmem:[%s2642_s11 + $0x3ec] sm:$0xf0]  ;;  %1152 = vmatpush.bf16.msra.mxu0 %v1943_v12 }
  0x3b   : > { %v1926_v20 = vld [vmem:[%s2642_s11 + $0xc0] sm:$0xf]  ;;  %v2327_v21 = vor.u32 %v2483_v19, %v2326_v18  ;;  %v2383_v22 = vld [vmem:[%s2642_s11 + $0xcc] sm:$0xf0]  ;;  %1171 = vmatpush.bf16.msra.mxu1 %v2071_v16 }
  0x3c   : > { %v2054_v23 = vld [vmem:[%s2642_s11 + $0x1c0] sm:$0xf]  ;;  %v2415_v24 = vld [vmem:[%s2642_s11 + $0x1cc] sm:$0xf0]  ;;  %1190 = vmatpush.bf16.msra.mxu2 %v2199_v17  ;;  %v1927_v25 = vor.u32 %v2383_v22, %v1926_v20 }
  0x3d   : > { %v2055_v26 = vor.u32 %v2415_v24, %v2054_v23  ;;  %v2182_v27 = vld [vmem:[%s2642_s11 + $0x2c0] sm:$0xf]  ;;  %v2447_v28 = vld [vmem:[%s2642_s11 + $0x2cc] sm:$0xf0]  ;;  %1209 = vmatpush.bf16.msra.mxu3 %v2327_v21 }
  0x3e   : > { %v2310_v29 = vld [vmem:[%s2642_s11 + $0x3c0] sm:$0xf]  ;;  %v2183_v30 = vor.u32 %v2447_v28, %v2182_v27  ;;  %v2479_v31 = vld [vmem:[%s2642_s11 + $0x3cc] sm:$0xf0]  ;;  %1153 = vmatpush.bf16.msra.mxu0 %v1927_v25 }
  0x3f   : > { %v1910_v32 = vld [vmem:[%s2642_s11 + $0xa0] sm:$0xf]  ;;  %v2379_v33 = vld [vmem:[%s2642_s11 + $0xac] sm:$0xf0]  ;;  %v2311_v34 = vor.u32 %v2479_v31, %v2310_v29  ;;  %1172 = vmatpush.bf16.msra.mxu1 %v2055_v26 }
  0x40   : > { %v2038_v35 = vld [vmem:[%s2642_s11 + $0x1a0] sm:$0xf]  ;;  %v2411_v36 = vld [vmem:[%s2642_s11 + $0x1ac] sm:$0xf0]  ;;  %v1911_v38 = vor.u32 %v2379_v33, %v1910_v32  ;;  %1191 = vmatpush.bf16.msra.mxu2 %v2183_v30 }
  0x41   : > { %v2166_v37 = vld [vmem:[%s2642_s11 + $0x2a0] sm:$0xf]  ;;  %v2443_v39 = vld [vmem:[%s2642_s11 + $0x2ac] sm:$0xf0]  ;;  %v2039_v42 = vor.u32 %v2411_v36, %v2038_v35  ;;  %1210 = vmatpush.bf16.msra.mxu3 %v2311_v34 }
  0x42   : > { %v2294_v40 = vld [vmem:[%s2642_s11 + $0x3a0] sm:$0xf]  ;;  %v2475_v41 = vld [vmem:[%s2642_s11 + $0x3ac] sm:$0xf0]  ;;  %v2167_v43 = vor.u32 %v2443_v39, %v2166_v37  ;;  %1154 = vmatpush.bf16.msra.mxu0 %v1911_v38  ;;  %v2349_v39 = vld [vmem:[%s2644_s12 + $0x4] sm:$0xf] }
  0x43   : > { %v1894_v44 = vld [vmem:[%s2642_s11 + $0x80] sm:$0xf]  ;;  %v2375_v45 = vld [vmem:[%s2642_s11 + $0x8c] sm:$0xf0]  ;;  %v2295_v47 = vor.u32 %v2475_v41, %v2294_v40  ;;  %1173 = vmatpush.bf16.msra.mxu1 %v2039_v42  ;;  %v1800_v40 = vld [vmem:[%s2644_s12 + $0x10] sm:$0xf0] }
  0x44   : > { %v2022_v46 = vld [vmem:[%s2642_s11 + $0x180] sm:$0xf]  ;;  %v2407_v48 = vld [vmem:[%s2642_s11 + $0x18c] sm:$0xf0]  ;;  %v1895_v53 = vor.u32 %v2375_v45, %v1894_v44  ;;  %1192 = vmatpush.bf16.msra.mxu2 %v2167_v43  ;;  %v2449_v41 = vld [vmem:[%s2642_s11 + $0x2e4] sm:$0xf] }
  0x45   : > { %v2150_v49 = vld [vmem:[%s2642_s11 + $0x280] sm:$0xf]  ;;  %v2439_v50 = vld [vmem:[%s2642_s11 + $0x28c] sm:$0xf0]  ;;  %v2023_v54 = vor.u32 %v2407_v48, %v2022_v46  ;;  %1211 = vmatpush.bf16.msra.mxu3 %v2295_v47  ;;  %v2200_v42 = vld [vmem:[%s2642_s11 + $0x2f0] sm:$0xf0] }
  0x46   : > { %v2278_v51 = vld [vmem:[%s2642_s11 + $0x380] sm:$0xf]  ;;  %v2471_v52 = vld [vmem:[%s2642_s11 + $0x38c] sm:$0xf0]  ;;  %v2151_v55 = vor.u32 %v2439_v50, %v2150_v49  ;;  %1155 = vmatpush.bf16.msra.mxu0 %v1895_v53  ;;  %v1806_v44 = vld [vmem:[%s2644_s12 + $0x8] sm:$0xf]  ;;  %v2203_v53 = vor.u32 %v2449_v41, %v2200_v42 }
  0x47   : > { %v1878_v56 = vld [vmem:[%s2642_s11 + $0x60] sm:$0xf]  ;;  %v2371_v57 = vld [vmem:[%s2642_s11 + $0x6c] sm:$0xf0]  ;;  %v2279_v59 = vor.u32 %v2471_v52, %v2278_v51  ;;  %1174 = vmatpush.bf16.msra.mxu1 %v2023_v54  ;;  %v2417_v45 = vld [vmem:[%s2642_s11 + $0x1e4] sm:$0xf] }
  0x48   : > { %v2006_v58 = vld [vmem:[%s2642_s11 + $0x160] sm:$0xf]  ;;  %v2403_v60 = vld [vmem:[%s2642_s11 + $0x16c] sm:$0xf0]  ;;  %v1879_v1 = vor.u32 %v2371_v57, %v1878_v56  ;;  %1193 = vmatpush.bf16.msra.mxu2 %v2151_v55  ;;  %v2072_v46 = vld [vmem:[%s2642_s11 + $0x1f0] sm:$0xf0] }
  0x49   : > { %v2134_v61 = vld [vmem:[%s2642_s11 + $0x260] sm:$0xf]  ;;  %v2435_v62 = vld [vmem:[%s2642_s11 + $0x26c] sm:$0xf0]  ;;  %v2007_v2 = vor.u32 %v2403_v60, %v2006_v58  ;;  %1212 = vmatpush.bf16.msra.mxu3 %v2279_v59  ;;  %v2352_v49 = vld [vmem:[%s2644_s12 + $0x14] sm:$0xf0]  ;;  %v2075_v58 = vor.u32 %v2417_v45, %v2072_v46 }
  0x4a   : > { %v2262_v63 = vld [vmem:[%s2642_s11 + $0x360] sm:$0xf]  ;;  %v2467_v0 = vld [vmem:[%s2642_s11 + $0x36c] sm:$0xf0]  ;;  %v2135_v3 = vor.u32 %v2435_v62, %v2134_v61  ;;  %1156 = vmatpush.bf16.msra.mxu0 %v1879_v1  ;;  %v2350_v50 = vld [vmem:[%s2644_s12 + $0xc] sm:$0xf]  ;;  %v2731_v62 = vor.u32 %v2349_v39, %v1800_v40 }
  0x4b   : > { %v1862_v4 = vld [vmem:[%s2642_s11 + $0x40] sm:$0xf]  ;;  %v2367_v5 = vld [vmem:[%s2642_s11 + $0x4c] sm:$0xf0]  ;;  %v2263_v7 = vor.u32 %v2467_v0, %v2262_v63  ;;  %1175 = vmatpush.bf16.msra.mxu1 %v2007_v2  ;;  %v1808_v51 = vld [vmem:[%s2644_s12 + $0x18] sm:$0xf0]  ;;  %v2733_v63 = vor.u32 %v2352_v49, %v1806_v44 }
  0x4c   : > { %v1990_v6 = vld [vmem:[%s2642_s11 + $0x140] sm:$0xf]  ;;  %v2399_v8 = vld [vmem:[%s2642_s11 + $0x14c] sm:$0xf0]  ;;  %v1863_v13 = vor.u32 %v2367_v5, %v1862_v4  ;;  %1194 = vmatpush.bf16.msra.mxu2 %v2135_v3  ;;  %v2385_v54 = vld [vmem:[%s2642_s11 + $0xe4] sm:$0xf]  ;;  %v2737_v2 = vor.u32 %v2350_v50, %v1808_v51 }
  0x4d   : > { %v2118_v9 = vld [vmem:[%s2642_s11 + $0x240] sm:$0xf]  ;;  %v2431_v10 = vld [vmem:[%s2642_s11 + $0x24c] sm:$0xf0]  ;;  %v1991_v14 = vor.u32 %v2399_v8, %v1990_v6  ;;  %1213 = vmatpush.bf16.msra.mxu3 %v2263_v7  ;;  %v1944_v55 = vld [vmem:[%s2642_s11 + $0xf0] sm:$0xf0] }
  0x4e   : > { %v2246_v11 = vld [vmem:[%s2642_s11 + $0x340] sm:$0xf]  ;;  %v2463_v12 = vld [vmem:[%s2642_s11 + $0x34c] sm:$0xf0]  ;;  %v2119_v15 = vor.u32 %v2431_v10, %v2118_v9  ;;  %1157 = vmatpush.bf16.msra.mxu0 %v1863_v13  ;;  %v2481_v56 = vld [vmem:[%s2642_s11 + $0x3e4] sm:$0xf]  ;;  %v1947_v3 = vor.u32 %v2385_v54, %v1944_v55 }
  0x4f   : > { %v1846_v16 = vld [vmem:[%s2642_s11 + $0x20] sm:$0xf]  ;;  %v2363_v17 = vld [vmem:[%s2642_s11 + $0x2c] sm:$0xf0]  ;;  %v2247_v19 = vor.u32 %v2463_v12, %v2246_v11  ;;  %1176 = vmatpush.bf16.msra.mxu1 %v1991_v14  ;;  %v2328_v59 = vld [vmem:[%s2642_s11 + $0x3f0] sm:$0xf0] }
  0x50   : > { %v1974_v18 = vld [vmem:[%s2642_s11 + $0x120] sm:$0xf]  ;;  %v2395_v20 = vld [vmem:[%s2642_s11 + $0x12c] sm:$0xf0]  ;;  %v1847_v26 = vor.u32 %v2363_v17, %v1846_v16  ;;  %1195 = vmatpush.bf16.msra.mxu2 %v2119_v15  ;;  %v2445_v60 = vld [vmem:[%s2642_s11 + $0x2c4] sm:$0xf]  ;;  %v2331_v4 = vor.u32 %v2481_v56, %v2328_v59 }
  0x51   : > { %v2102_v21 = vld [vmem:[%s2642_s11 + $0x220] sm:$0xf]  ;;  %v2427_v22 = vld [vmem:[%s2642_s11 + $0x22c] sm:$0xf0]  ;;  %v1975_v30 = vor.u32 %v2395_v20, %v1974_v18  ;;  %1214 = vmatpush.bf16.msra.mxu3 %v2247_v19  ;;  %v2184_v61 = vld [vmem:[%s2642_s11 + $0x2d0] sm:$0xf0] }
  0x52   : > { %v2230_v23 = vld [vmem:[%s2642_s11 + $0x320] sm:$0xf]  ;;  %v2459_v24 = vld [vmem:[%s2642_s11 + $0x32c] sm:$0xf0]  ;;  %v2103_v31 = vor.u32 %v2427_v22, %v2102_v21  ;;  %1158 = vmatpush.bf16.msra.mxu0 %v1847_v26  ;;  %v2413_v0 = vld [vmem:[%s2642_s11 + $0x1c4] sm:$0xf]  ;;  %v2187_v5 = vor.u32 %v2445_v60, %v2184_v61 }
  0x53   : > { %v1830_v25 = vld [vmem:[%s2642_s11] sm:$0xf]  ;;  %v2359_v27 = vld [vmem:[%s2642_s11 + $0xc] sm:$0xf0]  ;;  %v2231_v35 = vor.u32 %v2459_v24, %v2230_v23  ;;  %1177 = vmatpush.bf16.msra.mxu1 %v1975_v30  ;;  %v2056_v1 = vld [vmem:[%s2642_s11 + $0x1d0] sm:$0xf0] }
  0x54   : > { %v1958_v28 = vld [vmem:[%s2642_s11 + $0x100] sm:$0xf]  ;;  %v2391_v29 = vld [vmem:[%s2642_s11 + $0x10c] sm:$0xf0]  ;;  %v1831_v43 = vor.u32 %v2359_v27, %v1830_v25  ;;  %1196 = vmatpush.bf16.msra.mxu2 %v2103_v31  ;;  %v2381_v6 = vld [vmem:[%s2642_s11 + $0xc4] sm:$0xf]  ;;  %v2059_v9 = vor.u32 %v2413_v0, %v2056_v1 }
  0x55   : > { %v2086_v32 = vld [vmem:[%s2642_s11 + $0x200] sm:$0xf]  ;;  %v2423_v33 = vld [vmem:[%s2642_s11 + $0x20c] sm:$0xf0]  ;;  %v1959_v47 = vor.u32 %v2391_v29, %v1958_v28  ;;  %1215 = vmatpush.bf16.msra.mxu3 %v2231_v35  ;;  %v1928_v7 = vld [vmem:[%s2642_s11 + $0xd0] sm:$0xf0] }
  0x56   : > { %v2214_v34 = vld [vmem:[%s2642_s11 + $0x300] sm:$0xf]  ;;  %v2455_v36 = vld [vmem:[%s2642_s11 + $0x30c] sm:$0xf0]  ;;  %v2087_v48 = vor.u32 %v2423_v33, %v2086_v32  ;;  %1159 = vmatpush.bf16.msra.mxu0 %v1831_v43  ;;  %v2477_v8 = vld [vmem:[%s2642_s11 + $0x3c4] sm:$0xf]  ;;  %v1931_v15 = vor.u32 %v2381_v6, %v1928_v7 }
  0x57   : > { %v1798_v37 = vld [vmem:[%s2644_s12] sm:$0xf]  ;;  %v2351_v38 = vld [vmem:[%s2644_s12 + $0xc] sm:$0xf0]  ;;  %v2215_v52 = vor.u32 %v2455_v36, %v2214_v34  ;;  %1178 = vmatpush.bf16.msra.mxu1 %v1959_v47  ;;  %v2312_v10 = vld [vmem:[%s2642_s11 + $0x3d0] sm:$0xf0] }
  0x58   : > { %v2726_v57 = vor.u32 %v2351_v38, %v1798_v37  ;;  %1197 = vmatpush.bf16.msra.mxu2 %v2087_v48  ;;  %v2441_v11 = vld [vmem:[%s2642_s11 + $0x2a4] sm:$0xf]  ;;  %v2168_v12 = vld [vmem:[%s2642_s11 + $0x2b0] sm:$0xf0]  ;;  %v2315_v16 = vor.u32 %v2477_v8, %v2312_v10  ;;  %v1814_v34 = vld [vmem:[%s2644_s12 + $0x20] sm:$0xf] }
  0x59   : > { %1216 = vmatpush.bf16.msra.mxu3 %v2215_v52  ;;  %v2409_v13 = vld [vmem:[%s2642_s11 + $0x1a4] sm:$0xf]  ;;  %v2040_v14 = vld [vmem:[%s2642_s11 + $0x1b0] sm:$0xf0]  ;;  %v2171_v17 = vor.u32 %v2441_v11, %v2168_v12  ;;  %v2355_v35 = vld [vmem:[%s2644_s12 + $0x2c] sm:$0xf0] }
  0x5a   : > { %1160 = vmatmul.bf16.vlgmr.msra.gmra.mxu0 %v2726_v57  ;;  %1179 = vmatmul.bf16.vlgmr.msra.gmra.mxu1 %v2731_v62  ;;  %v2377_v18 = vld [vmem:[%s2642_s11 + $0xa4] sm:$0xf]  ;;  %v1912_v19 = vld [vmem:[%s2642_s11 + $0xb0] sm:$0xf0]  ;;  %v2043_v21 = vor.u32 %v2409_v13, %v2040_v14  ;;  %v1822_v41 = vld [vmem:[%s2644_s12 + $0x28] sm:$0xf] }
  0x5b   : > { %1247 = vmatpush.bf16.msrb.mxu1 %v2075_v58  ;;  %1198 = vmatmul.bf16.vlgmr.msra.gmra.mxu2 %v2733_v63  ;;  %v2473_v20 = vld [vmem:[%s2642_s11 + $0x3a4] sm:$0xf]  ;;  %v2296_v22 = vld [vmem:[%s2642_s11 + $0x3b0] sm:$0xf0]  ;;  %v1915_v27 = vor.u32 %v2377_v18, %v1912_v19  ;;  %v2356_v45 = vld [vmem:[%s2644_s12 + $0x34] sm:$0xf0] }
  0x5c   : > { %1266 = vmatpush.bf16.msrb.mxu2 %v2203_v53  ;;  %1217 = vmatmul.bf16.vlgmr.msra.gmra.mxu3 %v2737_v2  ;;  %v2437_v23 = vld [vmem:[%s2642_s11 + $0x284] sm:$0xf]  ;;  %v2152_v24 = vld [vmem:[%s2642_s11 + $0x290] sm:$0xf0]  ;;  %v2299_v31 = vor.u32 %v2473_v20, %v2296_v22  ;;  %v2354_v46 = vld [vmem:[%s2644_s12 + $0x2c] sm:$0xf]  ;;  %v2778_v53 = vor.u32 %v2355_v35, %v1814_v34  ;;  %v2785_v60 = vor.u32 %v2356_v45, %v1822_v41 }
  0x5d   : > { %1228 = vmatpush.bf16.msrb.mxu0 %v1947_v3  ;;  %1285 = vmatpush.bf16.msrb.mxu3 %v2331_v4  ;;  %v2405_v25 = vld [vmem:[%s2642_s11 + $0x184] sm:$0xf]  ;;  %v2024_v26 = vld [vmem:[%s2642_s11 + $0x190] sm:$0xf0]  ;;  %v2155_v32 = vor.u32 %v2437_v23, %v2152_v24  ;;  %v1824_v47 = vld [vmem:[%s2644_s12 + $0x38] sm:$0xf0] }
  0x5e   : > { %v2373_v28 = vld [vmem:[%s2642_s11 + $0x84] sm:$0xf]  ;;  %v1896_v29 = vld [vmem:[%s2642_s11 + $0x90] sm:$0xf0]  ;;  %v2027_v36 = vor.u32 %v2405_v25, %v2024_v26  ;;  %v2789_v1 = vor.u32 %v2354_v46, %v1824_v47  ;;  %v2388_v41 = vld [vmem:[%s2642_s11 + $0xf4] sm:$0xf0] }
  0x5f   : > { %1248 = vmatpush.bf16.msrb.mxu1 %v2059_v9  ;;  %v2469_v30 = vld [vmem:[%s2642_s11 + $0x384] sm:$0xf]  ;;  %v2280_v33 = vld [vmem:[%s2642_s11 + $0x390] sm:$0xf0]  ;;  %v1899_v44 = vor.u32 %v2373_v28, %v1896_v29  ;;  %v2452_v28 = vld [vmem:[%s2642_s11 + $0x2f4] sm:$0xf0] }
  0x60   : > { %1267 = vmatpush.bf16.msrb.mxu2 %v2187_v5  ;;  %v2353_v37 = vld [vmem:[%s2644_s12 + $0x24] sm:$0xf]  ;;  %v1816_v38 = vld [vmem:[%s2644_s12 + $0x30] sm:$0xf0]  ;;  %v2283_v48 = vor.u32 %v2469_v30, %v2280_v33  ;;  %v2190_v45 = vld [vmem:[%s2642_s11 + $0x2c8] sm:$0xf] }
  0x61   : > { %1229 = vmatpush.bf16.msrb.mxu0 %v1931_v15  ;;  %1286 = vmatpush.bf16.msrb.mxu3 %v2315_v16  ;;  %v2433_v39 = vld [vmem:[%s2642_s11 + $0x264] sm:$0xf]  ;;  %v2136_v40 = vld [vmem:[%s2642_s11 + $0x270] sm:$0xf0]  ;;  %v2783_v59 = vor.u32 %v2353_v37, %v1816_v38  ;;  %v2448_v46 = vld [vmem:[%s2642_s11 + $0x2d4] sm:$0xf0] }
  0x62   : > { %v2401_v42 = vld [vmem:[%s2642_s11 + $0x164] sm:$0xf]  ;;  %v2008_v43 = vld [vmem:[%s2642_s11 + $0x170] sm:$0xf0]  ;;  %v2139_v49 = vor.u32 %v2433_v39, %v2136_v40  ;;  %v1950_v40 = vld [vmem:[%s2642_s11 + $0xe8] sm:$0xf] }
  0x63   : > { %1249 = vmatpush.bf16.msrb.mxu1 %v2043_v21  ;;  %v2369_v50 = vld [vmem:[%s2642_s11 + $0x64] sm:$0xf]  ;;  %v1880_v51 = vld [vmem:[%s2642_s11 + $0x70] sm:$0xf0]  ;;  %v2011_v54 = vor.u32 %v2401_v42, %v2008_v43  ;;  %v2334_v42 = vld [vmem:[%s2642_s11 + $0x3e8] sm:$0xf] }
  0x64   : > { %1268 = vmatpush.bf16.msrb.mxu2 %v2171_v17  ;;  %v2465_v52 = vld [vmem:[%s2642_s11 + $0x364] sm:$0xf]  ;;  %v2264_v55 = vld [vmem:[%s2642_s11 + $0x370] sm:$0xf0]  ;;  %v1883_v3 = vor.u32 %v2369_v50, %v1880_v51  ;;  %v1934_v50 = vld [vmem:[%s2642_s11 + $0xc8] sm:$0xf] }
  0x65   : > { %1230 = vmatpush.bf16.msrb.mxu0 %v1915_v27  ;;  %1287 = vmatpush.bf16.msrb.mxu3 %v2299_v31  ;;  %v2429_v56 = vld [vmem:[%s2642_s11 + $0x244] sm:$0xf]  ;;  %v2120_v58 = vld [vmem:[%s2642_s11 + $0x250] sm:$0xf0]  ;;  %v2267_v4 = vor.u32 %v2465_v52, %v2264_v55  ;;  %v2206_v27 = vld [vmem:[%s2642_s11 + $0x2e8] sm:$0xf] }
  0x66   : > { %v2397_v61 = vld [vmem:[%s2642_s11 + $0x144] sm:$0xf]  ;;  %v1992_v0 = vld [vmem:[%s2642_s11 + $0x150] sm:$0xf0]  ;;  %v2123_v5 = vor.u32 %v2429_v56, %v2120_v58  ;;  %v2078_v31 = vld [vmem:[%s2642_s11 + $0x1e8] sm:$0xf]  ;;  %v2207_v39 = vor.u32 %v2452_v28, %v2206_v27 }
  0x67   : > { %1250 = vmatpush.bf16.msrb.mxu1 %v2027_v36  ;;  %v2365_v6 = vld [vmem:[%s2642_s11 + $0x44] sm:$0xf]  ;;  %v1864_v7 = vld [vmem:[%s2642_s11 + $0x50] sm:$0xf0]  ;;  %v1995_v9 = vor.u32 %v2397_v61, %v1992_v0  ;;  %v2384_v51 = vld [vmem:[%s2642_s11 + $0xd4] sm:$0xf0] }
  0x68   : > { %1269 = vmatpush.bf16.msrb.mxu2 %v2155_v32  ;;  %v2461_v8 = vld [vmem:[%s2642_s11 + $0x344] sm:$0xf]  ;;  %v2248_v10 = vld [vmem:[%s2642_s11 + $0x350] sm:$0xf0]  ;;  %v1867_v15 = vor.u32 %v2365_v6, %v1864_v7  ;;  %v2420_v32 = vld [vmem:[%s2642_s11 + $0x1f4] sm:$0xf0] }
  0x69   : > { %1231 = vmatpush.bf16.msrb.mxu0 %v1899_v44  ;;  %1288 = vmatpush.bf16.msrb.mxu3 %v2283_v48  ;;  %v2425_v11 = vld [vmem:[%s2642_s11 + $0x224] sm:$0xf]  ;;  %v2104_v12 = vld [vmem:[%s2642_s11 + $0x230] sm:$0xf0]  ;;  %v2251_v17 = vor.u32 %v2461_v8, %v2248_v10  ;;  %v2079_v43 = vor.u32 %v2420_v32, %v2078_v31  ;;  %v2484_v44 = vld [vmem:[%s2642_s11 + $0x3f4] sm:$0xf0] }
  0x6a   : > { %1165 = vmatmul.bf16.gmra.mxu0 %v2778_v53  ;;  %1184 = vmatmul.bf16.gmra.mxu1 %v2783_v59  ;;  %v2393_v13 = vld [vmem:[%s2642_s11 + $0x124] sm:$0xf]  ;;  %v1976_v14 = vld [vmem:[%s2642_s11 + $0x130] sm:$0xf0]  ;;  %v2107_v18 = vor.u32 %v2425_v11, %v2104_v12  ;;  %v2335_v52 = vor.u32 %v2484_v44, %v2334_v42  ;;  %v2062_v55 = vld [vmem:[%s2642_s11 + $0x1c8] sm:$0xf] }
  0x6b   : > { %1251 = vmatpush.bf16.msrb.mxu1 %v2011_v54  ;;  %1203 = vmatmul.bf16.gmra.mxu2 %v2785_v60  ;;  %v2361_v16 = vld [vmem:[%s2642_s11 + $0x24] sm:$0xf]  ;;  %v1848_v19 = vld [vmem:[%s2642_s11 + $0x30] sm:$0xf0]  ;;  %v1979_v22 = vor.u32 %v2393_v13, %v1976_v14  ;;  %v2191_v54 = vor.u32 %v2448_v46, %v2190_v45  ;;  %v2416_v56 = vld [vmem:[%s2642_s11 + $0x1d4] sm:$0xf0] }
  0x6c   : > { %1270 = vmatpush.bf16.msrb.mxu2 %v2139_v49  ;;  %1222 = vmatmul.bf16.gmra.mxu3 %v2789_v1  ;;  %v2457_v20 = vld [vmem:[%s2642_s11 + $0x324] sm:$0xf]  ;;  %v2232_v21 = vld [vmem:[%s2642_s11 + $0x330] sm:$0xf0]  ;;  %v1851_v29 = vor.u32 %v2361_v16, %v1848_v19  ;;  %v1951_v49 = vor.u32 %v2388_v41, %v1950_v40  ;;  %v2318_v58 = vld [vmem:[%s2642_s11 + $0x3c8] sm:$0xf] }
  0x6d   : > { %1232 = vmatpush.bf16.msrb.mxu0 %v1883_v3  ;;  %1289 = vmatpush.bf16.msrb.mxu3 %v2267_v4  ;;  %v2421_v23 = vld [vmem:[%s2642_s11 + $0x204] sm:$0xf]  ;;  %v2088_v24 = vld [vmem:[%s2642_s11 + $0x210] sm:$0xf0]  ;;  %v2235_v33 = vor.u32 %v2457_v20, %v2232_v21  ;;  %v2480_v61 = vld [vmem:[%s2642_s11 + $0x3d4] sm:$0xf0]  ;;  %v1935_v4 = vor.u32 %v2384_v51, %v1934_v50 }
  0x6e   : > { %v2389_v25 = vld [vmem:[%s2642_s11 + $0x104] sm:$0xf]  ;;  %v1960_v26 = vld [vmem:[%s2642_s11 + $0x110] sm:$0xf0]  ;;  %v2091_v34 = vor.u32 %v2421_v23, %v2088_v24  ;;  %v2174_v0 = vld [vmem:[%s2642_s11 + $0x2a8] sm:$0xf]  ;;  %v2319_v8 = vor.u32 %v2480_v61, %v2318_v58 }
  0x6f   : > { %1252 = vmatpush.bf16.msrb.mxu1 %v1995_v9  ;;  %v2357_v30 = vld [vmem:[%s2642_s11 + $0x4] sm:$0xf]  ;;  %v1832_v35 = vld [vmem:[%s2642_s11 + $0x10] sm:$0xf0]  ;;  %v1963_v38 = vor.u32 %v2389_v25, %v1960_v26  ;;  %v2444_v3 = vld [vmem:[%s2642_s11 + $0x2b4] sm:$0xf0] }
  0x70   : > { %1271 = vmatpush.bf16.msrb.mxu2 %v2123_v5  ;;  %v2453_v36 = vld [vmem:[%s2642_s11 + $0x304] sm:$0xf]  ;;  %v2216_v37 = vld [vmem:[%s2642_s11 + $0x310] sm:$0xf0]  ;;  %v1835_v47 = vor.u32 %v2357_v30, %v1832_v35  ;;  %v2063_v5 = vor.u32 %v2416_v56, %v2062_v55  ;;  %v1918_v6 = vld [vmem:[%s2642_s11 + $0xa8] sm:$0xf]  ;;  %v2175_v9 = vor.u32 %v2444_v3, %v2174_v0 }
  0x71   : > { %1233 = vmatpush.bf16.msrb.mxu0 %v1867_v15  ;;  %1290 = vmatpush.bf16.msrb.mxu3 %v2251_v17  ;;  %v2219_v48 = vor.u32 %v2453_v36, %v2216_v37  ;;  %v2380_v7 = vld [vmem:[%s2642_s11 + $0xb4] sm:$0xf0]  ;;  %v2046_v10 = vld [vmem:[%s2642_s11 + $0x1a8] sm:$0xf] }
  0x72   : > { %v2412_v11 = vld [vmem:[%s2642_s11 + $0x1b4] sm:$0xf0]  ;;  %v2302_v12 = vld [vmem:[%s2642_s11 + $0x3a8] sm:$0xf]  ;;  %v1919_v16 = vor.u32 %v2380_v7, %v1918_v6 }
  0x73   : > { %1253 = vmatpush.bf16.msrb.mxu1 %v1979_v22  ;;  %v2476_v13 = vld [vmem:[%s2642_s11 + $0x3b4] sm:$0xf0]  ;;  %v2158_v14 = vld [vmem:[%s2642_s11 + $0x288] sm:$0xf]  ;;  %v2047_v17 = vor.u32 %v2412_v11, %v2046_v10 }
  0x74   : > { %1272 = vmatpush.bf16.msrb.mxu2 %v2107_v18  ;;  %v2440_v15 = vld [vmem:[%s2642_s11 + $0x294] sm:$0xf0]  ;;  %v1902_v18 = vld [vmem:[%s2642_s11 + $0x88] sm:$0xf]  ;;  %v2303_v20 = vor.u32 %v2476_v13, %v2302_v12 }
  0x75   : > { %1234 = vmatpush.bf16.msrb.mxu0 %v1851_v29  ;;  %1291 = vmatpush.bf16.msrb.mxu3 %v2235_v33  ;;  %v2376_v19 = vld [vmem:[%s2642_s11 + $0x94] sm:$0xf0]  ;;  %v2159_v21 = vor.u32 %v2440_v15, %v2158_v14  ;;  %v2030_v22 = vld [vmem:[%s2642_s11 + $0x188] sm:$0xf] }
  0x76   : > { %v2408_v23 = vld [vmem:[%s2642_s11 + $0x194] sm:$0xf0]  ;;  %v2286_v24 = vld [vmem:[%s2642_s11 + $0x388] sm:$0xf]  ;;  %v1903_v28 = vor.u32 %v2376_v19, %v1902_v18 }
  0x77   : > { %1254 = vmatpush.bf16.msrb.mxu1 %v1963_v38  ;;  %v2472_v25 = vld [vmem:[%s2642_s11 + $0x394] sm:$0xf0]  ;;  %v2142_v26 = vld [vmem:[%s2642_s11 + $0x268] sm:$0xf]  ;;  %v2031_v29 = vor.u32 %v2408_v23, %v2030_v22  ;;  %v1952_v22 = vld [vmem:[%s2642_s11 + $0xf8] sm:$0xf0] }
  0x78   : > { %1273 = vmatpush.bf16.msrb.mxu2 %v2091_v34  ;;  %v2436_v27 = vld [vmem:[%s2642_s11 + $0x274] sm:$0xf0]  ;;  %v1886_v30 = vld [vmem:[%s2642_s11 + $0x68] sm:$0xf]  ;;  %v2287_v32 = vor.u32 %v2472_v25, %v2286_v24  ;;  %v2418_v23 = vld [vmem:[%s2642_s11 + $0x1ec] sm:$0xf] }
  0x79   : > { %1235 = vmatpush.bf16.msrb.mxu0 %v1835_v47  ;;  %1292 = vmatpush.bf16.msrb.mxu3 %v2219_v48  ;;  %v2372_v31 = vld [vmem:[%s2642_s11 + $0x74] sm:$0xf0]  ;;  %v2143_v33 = vor.u32 %v2436_v27, %v2142_v26  ;;  %v2014_v34 = vld [vmem:[%s2642_s11 + $0x168] sm:$0xf]  ;;  %v2080_v24 = vld [vmem:[%s2642_s11 + $0x1f8] sm:$0xf0] }
  0x7a   : > { %1255 = vmatmul.bf16.vlgmr.msrb.gmra.mxu1 %v2731_v62  ;;  %v2404_v35 = vld [vmem:[%s2642_s11 + $0x174] sm:$0xf0]  ;;  %v2270_v36 = vld [vmem:[%s2642_s11 + $0x368] sm:$0xf]  ;;  %v1887_v40 = vor.u32 %v2372_v31, %v1886_v30  ;;  %v2482_v25 = vld [vmem:[%s2642_s11 + $0x3ec] sm:$0xf] }
  0x7b   : > { %1323 = vmatpush.bf16.msra.mxu1 %v2079_v43  ;;  %1274 = vmatmul.bf16.vlgmr.msrb.gmra.mxu2 %v2733_v63  ;;  %v2468_v37 = vld [vmem:[%s2642_s11 + $0x374] sm:$0xf0]  ;;  %v2126_v38 = vld [vmem:[%s2642_s11 + $0x248] sm:$0xf]  ;;  %v2015_v41 = vor.u32 %v2404_v35, %v2014_v34  ;;  %v2336_v26 = vld [vmem:[%s2642_s11 + $0x3f8] sm:$0xf0] }
  0x7c   : > { %1342 = vmatpush.bf16.msra.mxu2 %v2207_v39  ;;  %1236 = vmatmul.bf16.vlgmr.msrb.gmra.mxu0 %v2726_v57  ;;  %v2432_v39 = vld [vmem:[%s2642_s11 + $0x254] sm:$0xf0]  ;;  %v1870_v42 = vld [vmem:[%s2642_s11 + $0x48] sm:$0xf]  ;;  %v2271_v44 = vor.u32 %v2468_v37, %v2270_v36  ;;  %v2192_v30 = vld [vmem:[%s2642_s11 + $0x2d8] sm:$0xf0]  ;;  %v2339_v34 = vor.u32 %v2482_v25, %v2336_v26 }
  0x7d   : > { %1304 = vmatpush.bf16.msra.mxu0 %v1951_v49  ;;  %1361 = vmatpush.bf16.msra.mxu3 %v2335_v52  ;;  %v2368_v43 = vld [vmem:[%s2642_s11 + $0x54] sm:$0xf0]  ;;  %v2127_v45 = vor.u32 %v2432_v39, %v2126_v38  ;;  %v1998_v46 = vld [vmem:[%s2642_s11 + $0x148] sm:$0xf]  ;;  %v2382_v35 = vld [vmem:[%s2642_s11 + $0xcc] sm:$0xf] }
  0x7e   : > { %1293 = vmatmul.bf16.vlgmr.msrb.gmra.mxu3 %v2737_v2  ;;  %v2400_v47 = vld [vmem:[%s2642_s11 + $0x154] sm:$0xf0]  ;;  %v2254_v48 = vld [vmem:[%s2642_s11 + $0x348] sm:$0xf]  ;;  %v1871_v52 = vor.u32 %v2368_v43, %v1870_v42  ;;  %v1936_v36 = vld [vmem:[%s2642_s11 + $0xd8] sm:$0xf0] }
  0x7f   : > { %1324 = vmatpush.bf16.msra.mxu1 %v2063_v5  ;;  %v2464_v49 = vld [vmem:[%s2642_s11 + $0x354] sm:$0xf0]  ;;  %v2110_v50 = vld [vmem:[%s2642_s11 + $0x228] sm:$0xf]  ;;  %v2414_v38 = vld [vmem:[%s2642_s11 + $0x1cc] sm:$0xf] }
  0x80   : > { %1343 = vmatpush.bf16.msra.mxu2 %v2191_v54  ;;  %v2428_v51 = vld [vmem:[%s2642_s11 + $0x234] sm:$0xf0]  ;;  %v1999_v54 = vor.u32 %v2400_v47, %v1998_v46  ;;  %v1854_v55 = vld [vmem:[%s2642_s11 + $0x28] sm:$0xf]  ;;  %v2255_v58 = vor.u32 %v2464_v49, %v2254_v48  ;;  %v2064_v39 = vld [vmem:[%s2642_s11 + $0x1d8] sm:$0xf0] }
  0x81   : > { %1305 = vmatpush.bf16.msra.mxu0 %v1935_v4  ;;  %1362 = vmatpush.bf16.msra.mxu3 %v2319_v8  ;;  %v2364_v56 = vld [vmem:[%s2642_s11 + $0x34] sm:$0xf0]  ;;  %v2111_v61 = vor.u32 %v2428_v51, %v2110_v50  ;;  %v1982_v0 = vld [vmem:[%s2642_s11 + $0x128] sm:$0xf]  ;;  %v2450_v8 = vld [vmem:[%s2642_s11 + $0x2ec] sm:$0xf]  ;;  %v2067_v47 = vor.u32 %v2414_v38, %v2064_v39 }
  0x82   : > { %v2396_v3 = vld [vmem:[%s2642_s11 + $0x134] sm:$0xf0]  ;;  %v2238_v4 = vld [vmem:[%s2642_s11 + $0x328] sm:$0xf]  ;;  %v1855_v10 = vor.u32 %v2364_v56, %v1854_v55  ;;  %v2320_v42 = vld [vmem:[%s2642_s11 + $0x3d8] sm:$0xf0] }
  0x83   : > { %1325 = vmatpush.bf16.msra.mxu1 %v2047_v17  ;;  %v2460_v5 = vld [vmem:[%s2642_s11 + $0x334] sm:$0xf0]  ;;  %v2094_v6 = vld [vmem:[%s2642_s11 + $0x208] sm:$0xf]  ;;  %v1983_v11 = vor.u32 %v2396_v3, %v1982_v0  ;;  %v2442_v43 = vld [vmem:[%s2642_s11 + $0x2ac] sm:$0xf] }
  0x84   : > { %1344 = vmatpush.bf16.msra.mxu2 %v2175_v9  ;;  %v2424_v7 = vld [vmem:[%s2642_s11 + $0x214] sm:$0xf0]  ;;  %v2208_v9 = vld [vmem:[%s2642_s11 + $0x2f8] sm:$0xf0]  ;;  %v1838_v12 = vld [vmem:[%s2642_s11 + $0x8] sm:$0xf]  ;;  %v2239_v15 = vor.u32 %v2460_v5, %v2238_v4 }
  0x85   : > { %1306 = vmatpush.bf16.msra.mxu0 %v1919_v16  ;;  %1363 = vmatpush.bf16.msra.mxu3 %v2303_v20  ;;  %v2360_v13 = vld [vmem:[%s2642_s11 + $0x14] sm:$0xf0]  ;;  %v1966_v14 = vld [vmem:[%s2642_s11 + $0x108] sm:$0xf]  ;;  %v2095_v16 = vor.u32 %v2424_v7, %v2094_v6  ;;  %v2211_v20 = vor.u32 %v2450_v8, %v2208_v9  ;;  %v1920_v46 = vld [vmem:[%s2642_s11 + $0xb8] sm:$0xf0] }
  0x86   : > { %v2392_v17 = vld [vmem:[%s2642_s11 + $0x114] sm:$0xf0]  ;;  %v2222_v18 = vld [vmem:[%s2642_s11 + $0x308] sm:$0xf]  ;;  %v1839_v27 = vor.u32 %v2360_v13, %v1838_v12  ;;  %v2410_v49 = vld [vmem:[%s2642_s11 + $0x1ac] sm:$0xf] }
  0x87   : > { %1326 = vmatpush.bf16.msra.mxu1 %v2031_v29  ;;  %v2456_v19 = vld [vmem:[%s2642_s11 + $0x314] sm:$0xf0]  ;;  %v2446_v29 = vld [vmem:[%s2642_s11 + $0x2cc] sm:$0xf]  ;;  %v2048_v50 = vld [vmem:[%s2642_s11 + $0x1b8] sm:$0xf0] }
  0x88   : > { %1345 = vmatpush.bf16.msra.mxu2 %v2159_v21  ;;  %v2386_v21 = vld [vmem:[%s2642_s11 + $0xec] sm:$0xf]  ;;  %v2223_v31 = vor.u32 %v2456_v19, %v2222_v18  ;;  %v2195_v37 = vor.u32 %v2446_v29, %v2192_v30  ;;  %v2304_v55 = vld [vmem:[%s2642_s11 + $0x3b8] sm:$0xf0]  ;;  %v2051_v3 = vor.u32 %v2410_v49, %v2048_v50 }
  0x89   : > { %1307 = vmatpush.bf16.msra.mxu0 %v1903_v28  ;;  %1364 = vmatpush.bf16.msra.mxu3 %v2287_v32  ;;  %v1967_v28 = vor.u32 %v2392_v17, %v1966_v14  ;;  %v1955_v32 = vor.u32 %v2386_v21, %v1952_v22  ;;  %v2438_v56 = vld [vmem:[%s2642_s11 + $0x28c] sm:$0xf]  ;;  %v1904_v0 = vld [vmem:[%s2642_s11 + $0x98] sm:$0xf0] }
  0x8a   : > { %1260 = vmatmul.bf16.gmra.mxu1 %v2783_v59  ;;  %v2406_v5 = vld [vmem:[%s2642_s11 + $0x18c] sm:$0xf]  ;;  %v2032_v6 = vld [vmem:[%s2642_s11 + $0x198] sm:$0xf0] }
  0x8b   : > { %1327 = vmatpush.bf16.msra.mxu1 %v2015_v41  ;;  %1279 = vmatmul.bf16.gmra.mxu2 %v2785_v60  ;;  %v2478_v41 = vld [vmem:[%s2642_s11 + $0x3cc] sm:$0xf]  ;;  %v2144_v12 = vld [vmem:[%s2642_s11 + $0x278] sm:$0xf0] }
  0x8c   : > { %1346 = vmatpush.bf16.msra.mxu2 %v2143_v33  ;;  %1241 = vmatmul.bf16.gmra.mxu0 %v2778_v53  ;;  %v2083_v33 = vor.u32 %v2418_v23, %v2080_v24  ;;  %v2323_v48 = vor.u32 %v2478_v41, %v2320_v42  ;;  %v2470_v9 = vld [vmem:[%s2642_s11 + $0x38c] sm:$0xf]  ;;  %v1888_v14 = vld [vmem:[%s2642_s11 + $0x78] sm:$0xf0] }
  0x8d   : > { %1308 = vmatpush.bf16.msra.mxu0 %v1887_v40  ;;  %1365 = vmatpush.bf16.msra.mxu3 %v2271_v44  ;;  %v1939_v40 = vor.u32 %v2382_v35, %v1936_v36  ;;  %v2176_v44 = vld [vmem:[%s2642_s11 + $0x2b8] sm:$0xf0]  ;;  %v2370_v13 = vld [vmem:[%s2642_s11 + $0x6c] sm:$0xf] }
  0x8e   : > { %1298 = vmatmul.bf16.gmra.mxu3 %v2789_v1  ;;  %v2179_v51 = vor.u32 %v2442_v43, %v2176_v44  ;;  %v2402_v17 = vld [vmem:[%s2642_s11 + $0x16c] sm:$0xf]  ;;  %v2016_v18 = vld [vmem:[%s2642_s11 + $0x178] sm:$0xf0] }
  0x8f   : > { %1328 = vmatpush.bf16.msra.mxu1 %v1999_v54  ;;  %v2474_v54 = vld [vmem:[%s2642_s11 + $0x3ac] sm:$0xf]  ;;  %v2272_v22 = vld [vmem:[%s2642_s11 + $0x378] sm:$0xf0] }
  0x90   : > { %1347 = vmatpush.bf16.msra.mxu2 %v2127_v45  ;;  %v2378_v45 = vld [vmem:[%s2642_s11 + $0xac] sm:$0xf]  ;;  %v2307_v4 = vor.u32 %v2474_v54, %v2304_v55  ;;  %v2128_v24 = vld [vmem:[%s2642_s11 + $0x258] sm:$0xf0] }
  0x91   : > { %1309 = vmatpush.bf16.msra.mxu0 %v1871_v52  ;;  %1366 = vmatpush.bf16.msra.mxu3 %v2255_v58  ;;  %v1923_v52 = vor.u32 %v2378_v45, %v1920_v46  ;;  %v2160_v58 = vld [vmem:[%s2642_s11 + $0x298] sm:$0xf0]  ;;  %v2466_v21 = vld [vmem:[%s2642_s11 + $0x36c] sm:$0xf] }
  0x92   : > { %v2163_v7 = vor.u32 %v2438_v56, %v2160_v58  ;;  %v2430_v23 = vld [vmem:[%s2642_s11 + $0x24c] sm:$0xf]  ;;  %v1872_v26 = vld [vmem:[%s2642_s11 + $0x58] sm:$0xf0] }
  0x93   : > { %1329 = vmatpush.bf16.msra.mxu1 %v1983_v11  ;;  %v2434_v11 = vld [vmem:[%s2642_s11 + $0x26c] sm:$0xf]  ;;  %v2000_v30 = vld [vmem:[%s2642_s11 + $0x158] sm:$0xf0] }
  0x94   : > { %1348 = vmatpush.bf16.msra.mxu2 %v2111_v61  ;;  %v2374_v61 = vld [vmem:[%s2642_s11 + $0x8c] sm:$0xf]  ;;  %v2147_v19 = vor.u32 %v2434_v11, %v2144_v12  ;;  %v2112_v36 = vld [vmem:[%s2642_s11 + $0x238] sm:$0xf0] }
  0x95   : > { %1310 = vmatpush.bf16.msra.mxu0 %v1855_v10  ;;  %1367 = vmatpush.bf16.msra.mxu3 %v2239_v15  ;;  %v1907_v8 = vor.u32 %v2374_v61, %v1904_v0  ;;  %v2288_v10 = vld [vmem:[%s2642_s11 + $0x398] sm:$0xf0]  ;;  %v2035_v15 = vor.u32 %v2406_v5, %v2032_v6  ;;  %v2366_v25 = vld [vmem:[%s2642_s11 + $0x4c] sm:$0xf] }
  0x96   : > { %v2398_v29 = vld [vmem:[%s2642_s11 + $0x14c] sm:$0xf]  ;;  %v1856_v38 = vld [vmem:[%s2642_s11 + $0x38] sm:$0xf0] }
  0x97   : > { %1330 = vmatpush.bf16.msra.mxu1 %v1967_v28  ;;  %v2275_v28 = vor.u32 %v2466_v21, %v2272_v22  ;;  %v2426_v35 = vld [vmem:[%s2642_s11 + $0x22c] sm:$0xf]  ;;  %v2003_v39 = vor.u32 %v2398_v29, %v2000_v30  ;;  %v1984_v42 = vld [vmem:[%s2642_s11 + $0x138] sm:$0xf0]  ;;  %v328_v22 = vld [vmem:[#allocation2 + $0x40] sm:$0xff] }
  0x98   : > { %1349 = vmatpush.bf16.msra.mxu2 %v2095_v16  ;;  %v2291_v16 = vor.u32 %v2470_v9, %v2288_v10  ;;  %v2394_v41 = vld [vmem:[%s2642_s11 + $0x12c] sm:$0xf]  ;;  %v2115_v43 = vor.u32 %v2426_v35, %v2112_v36  ;;  %v2240_v46 = vld [vmem:[%s2642_s11 + $0x338] sm:$0xf0]  ;;  %v332_v30 = vld [vmem:[#allocation2 + $0x60] sm:$0xff] }
  0x99   : > { %1311 = vmatpush.bf16.msra.mxu0 %v1839_v27  ;;  %1368 = vmatpush.bf16.msra.mxu3 %v2223_v31  ;;  %v2019_v27 = vor.u32 %v2402_v17, %v2016_v18  ;;  %v2131_v31 = vor.u32 %v2430_v23, %v2128_v24  ;;  %v2458_v45 = vld [vmem:[%s2642_s11 + $0x32c] sm:$0xf]  ;;  %v1840_v50 = vld [vmem:[%s2642_s11 + $0x18] sm:$0xf0] }
  0x9a   : > { %1331 = vmatmul.bf16.vlgmr.msra.gmra.mxu1 %v2731_v62  ;;  %v2358_v49 = vld [vmem:[%s2642_s11 + $0xc] sm:$0xf]  ;;  %v1968_v58 = vld [vmem:[%s2642_s11 + $0x118] sm:$0xf0] }
  0x9b   : > { %1399 = vmatpush.bf16.msrb.mxu1 %v2083_v33  ;;  %1350 = vmatmul.bf16.vlgmr.msra.gmra.mxu2 %v2733_v63  ;;  %v2462_v33 = vld [vmem:[%s2642_s11 + $0x34c] sm:$0xf]  ;;  %v1843_v56 = vor.u32 %v2358_v49, %v1840_v50  ;;  %v2224_v0 = vld [vmem:[%s2642_s11 + $0x318] sm:$0xf0] }
  0x9c   : > { %1418 = vmatpush.bf16.msrb.mxu2 %v2211_v20  ;;  %1312 = vmatmul.bf16.vlgmr.msra.gmra.mxu0 %v2726_v57  ;;  %v1891_v20 = vor.u32 %v2370_v13, %v1888_v14  ;;  %v2390_v54 = vld [vmem:[%s2642_s11 + $0x10c] sm:$0xf] }
  0x9d   : > { %1380 = vmatpush.bf16.msrb.mxu0 %v1955_v32  ;;  %1437 = vmatpush.bf16.msrb.mxu3 %v2339_v34  ;;  %v1875_v32 = vor.u32 %v2366_v25, %v1872_v26  ;;  %v2256_v34 = vld [vmem:[%s2642_s11 + $0x358] sm:$0xf0]  ;;  %v2454_v61 = vld [vmem:[%s2642_s11 + $0x30c] sm:$0xf] }
  0x9e   : > { %1369 = vmatmul.bf16.vlgmr.msra.gmra.mxu3 %v2737_v2  ;;  %v325_v50 = vld [vmem:[#allocation2 + $0x68] sm:$0xff] }
  0x9f   : > { %1400 = vmatpush.bf16.msrb.mxu1 %v2067_v47  ;;  %v2422_v47 = vld [vmem:[%s2642_s11 + $0x20c] sm:$0xf] }
  0xa0   : > { %1419 = vmatpush.bf16.msrb.mxu2 %v2195_v37  ;;  %v2362_v37 = vld [vmem:[%s2642_s11 + $0x2c] sm:$0xf] }
  0xa1   : > { %1381 = vmatpush.bf16.msrb.mxu0 %v1939_v40  ;;  %1438 = vmatpush.bf16.msrb.mxu3 %v2323_v48  ;;  %v2259_v40 = vor.u32 %v2462_v33, %v2256_v34  ;;  %v1859_v44 = vor.u32 %v2362_v37, %v1856_v38  ;;  %v2096_v48 = vld [vmem:[%s2642_s11 + $0x218] sm:$0xf0] }
  0xa2   : > { %v2099_v55 = vor.u32 %v2422_v47, %v2096_v48 }
  0xa3   : > { %1401 = vmatpush.bf16.msrb.mxu1 %v2051_v3  ;;  %v1971_v3 = vor.u32 %v2390_v54, %v1968_v58 }
  0xa4   : > { %1420 = vmatpush.bf16.msrb.mxu2 %v2179_v51  ;;  %v1987_v51 = vor.u32 %v2394_v41, %v1984_v42  ;;  %v321_v41 = vld [vmem:[#allocation2] sm:$0xff] }
  0xa5   : > { %1382 = vmatpush.bf16.msrb.mxu0 %v1923_v52  ;;  %1439 = vmatpush.bf16.msrb.mxu3 %v2307_v4  ;;  %v2243_v52 = vor.u32 %v2458_v45, %v2240_v46  ;;  %v2227_v4 = vor.u32 %v2454_v61, %v2224_v0 }
  0xa7   : > { %1402 = vmatpush.bf16.msrb.mxu1 %v2035_v15 }
  0xa8   : > { %1421 = vmatpush.bf16.msrb.mxu2 %v2163_v7 }
  0xa9   : > { %1383 = vmatpush.bf16.msrb.mxu0 %v1907_v8  ;;  %1440 = vmatpush.bf16.msrb.mxu3 %v2291_v16 }
  0xaa   : > { %1336 = vmatmul.bf16.gmra.mxu1 %v2783_v59 }
  0xab   : > { %1403 = vmatpush.bf16.msrb.mxu1 %v2019_v27  ;;  %1355 = vmatmul.bf16.gmra.mxu2 %v2785_v60 }
  0xac   : > { %1422 = vmatpush.bf16.msrb.mxu2 %v2147_v19  ;;  %1317 = vmatmul.bf16.gmra.mxu0 %v2778_v53 }
  0xad   : > { %1384 = vmatpush.bf16.msrb.mxu0 %v1891_v20  ;;  %1441 = vmatpush.bf16.msrb.mxu3 %v2275_v28 }
  0xae   : > { %1374 = vmatmul.bf16.gmra.mxu3 %v2789_v1 }
  0xaf   : > { %1404 = vmatpush.bf16.msrb.mxu1 %v2003_v39 }
  0xb0   : > { %1423 = vmatpush.bf16.msrb.mxu2 %v2131_v31 }
  0xb1   : > { %1385 = vmatpush.bf16.msrb.mxu0 %v1875_v32  ;;  %1442 = vmatpush.bf16.msrb.mxu3 %v2259_v40 }
  0xb3   : > { %1405 = vmatpush.bf16.msrb.mxu1 %v1987_v51 }
  0xb4   : > { %1424 = vmatpush.bf16.msrb.mxu2 %v2115_v43 }
  0xb5   : > { %1386 = vmatpush.bf16.msrb.mxu0 %v1859_v44  ;;  %1443 = vmatpush.bf16.msrb.mxu3 %v2243_v52 }
  0xb7   : > { %1406 = vmatpush.bf16.msrb.mxu1 %v1971_v3  ;;  %v329_v3 = vld [vmem:[#allocation2 + $0x20] sm:$0xff] }
  0xb8   : > { %1425 = vmatpush.bf16.msrb.mxu2 %v2099_v55 }
  0xb9   : > { %1387 = vmatpush.bf16.msrb.mxu0 %v1843_v56  ;;  %1444 = vmatpush.bf16.msrb.mxu3 %v2227_v4 }
  0xba   : > { %1407 = vmatmul.bf16.vlgmr.msrb.gmra.mxu1 %v2731_v62  ;;  %v320_v62 = vld [vmem:[#allocation2 + $0x30] sm:$0xff] }
  0xbb   : > { %1426 = vmatmul.bf16.vlgmr.msrb.gmra.mxu2 %v2733_v63 }
  0xbc   : > { %1388 = vmatmul.bf16.vlgmr.msrb.gmra.mxu0 %v2726_v57 }
  0xbe   : > { %1445 = vmatmul.bf16.vlgmr.msrb.gmra.mxu3 %v2737_v2 }
  0xca   : > { %1412 = vmatmul.bf16.gmra.mxu1 %v2783_v59 }
  0xcb   : > { %1431 = vmatmul.bf16.gmra.mxu2 %v2785_v60  ;;  %v324_v60 = vld [vmem:[#allocation2 + $0x50] sm:$0xff] }
  0xcc   : > { %1393 = vmatmul.bf16.gmra.mxu0 %v2778_v53 }
  0xce   : > { %1450 = vmatmul.bf16.gmra.mxu3 %v2789_v1 }
  0xd7   : > { %v1161_v5 = vpop.f32.mrf.mxu0  ;;  %v1180_v6 = vpop.f32.mrf.mxu1 }
  0xd8   : > { %v1181_v7 = vadd.f32 %v1180_v6, %v1161_v5 }
  0xde   : > { %v1199_v8 = vpop.f32.mrf.mxu2 }
  0xdf   : > { %v1200_v9 = vadd.f32 %v1199_v8, %v1181_v7  ;;  %v1218_v57 = vpop.f32.mrf.mxu3  ;;  %v1163_v10 = vpop.f32.mrf.mxu0 }
  0xe0   : > { %v1182_v11 = vpop.f32.mrf.mxu1 }
  0xe1   : > { %v1219_v63 = vadd.f32 %v1218_v57, %v1200_v9  ;;  %v1183_v2 = vadd.f32 %v1182_v11, %v1163_v10 }
  0xe3   : > { %v1456_v12 = vadd.f32 %v1219_v63, %v320_v62  ;;  %v333_v62 = vld [vmem:[#allocation2 + $0x70] sm:$0xff] }
  0xe5   : > { %1472 = vst [vmem:[#allocation2 + $0x30] sm:$0xff] %v1456_v12 }
  0xe6   : > { %v1201_v53 = vpop.f32.mrf.mxu2 }
  0xe7   : > { %v1202_v13 = vadd.f32 %v1201_v53, %v1183_v2  ;;  %v1220_v59 = vpop.f32.mrf.mxu3  ;;  %v1166_v14 = vpop.f32.mrf.mxu0 }
  0xe8   : > { %v1185_v15 = vpop.f32.mrf.mxu1 }
  0xe9   : > { %v1221_v1 = vadd.f32 %v1220_v59, %v1202_v13  ;;  %v1186_v17 = vadd.f32 %v1185_v15, %v1166_v14 }
  0xeb   : > { %v1460_v16 = vadd.f32 %v1221_v1, %v324_v60  ;;  %v322_v60 = vld [vmem:[#allocation2 + $0x58] sm:$0xff] }
  0xed   : > { %1476 = vst [vmem:[#allocation2 + $0x50] sm:$0xff] %v1460_v16 }
  0xee   : > { %v1204_v18 = vpop.f32.mrf.mxu2 }
  0xef   : > { %v1205_v19 = vadd.f32 %v1204_v18, %v1186_v17  ;;  %v1223_v20 = vpop.f32.mrf.mxu3  ;;  %v1168_v21 = vpop.f32.mrf.mxu0 }
  0xf0   : > { %v1187_v23 = vpop.f32.mrf.mxu1 }
  0xf1   : > { %v1224_v24 = vadd.f32 %v1223_v20, %v1205_v19  ;;  %v1188_v26 = vadd.f32 %v1187_v23, %v1168_v21 }
  0xf3   : > { %v1464_v25 = vadd.f32 %v1224_v24, %v328_v22  ;;  %v326_v22 = vld [vmem:[#allocation2 + $0x8] sm:$0xff] }
  0xf5   : > { %1480 = vst [vmem:[#allocation2 + $0x40] sm:$0xff] %v1464_v25 }
  0xf6   : > { %v1206_v27 = vpop.f32.mrf.mxu2 }
  0xf7   : > { %v1207_v28 = vadd.f32 %v1206_v27, %v1188_v26  ;;  %v1225_v29 = vpop.f32.mrf.mxu3 }
  0xf8   : > { %v1256_v32 = vpop.f32.mrf.mxu1 }
  0xf9   : > { %v1237_v31 = vpop.f32.mrf.mxu0  ;;  %v1226_v33 = vadd.f32 %v1225_v29, %v1207_v28 }
  0xfa   : > { %v1257_v35 = vadd.f32 %v1256_v32, %v1237_v31  ;;  %v330_v31 = vld [vmem:[#allocation2 + $0x10] sm:$0xff] }
  0xfb   : > { %v1468_v34 = vadd.f32 %v1226_v33, %v332_v30 }
  0xfd   : > { %1484 = vst [vmem:[#allocation2 + $0x60] sm:$0xff] %v1468_v34 }
  0xfe   : > { %v1275_v36 = vpop.f32.mrf.mxu2 }
  0xff   : > { %v1276_v38 = vadd.f32 %v1275_v36, %v1257_v35 }
 0x100   : > { %v1258_v40 = vpop.f32.mrf.mxu1 }
 0x101   : > { %v1294_v37 = vpop.f32.mrf.mxu3  ;;  %v1239_v39 = vpop.f32.mrf.mxu0 }
 0x102   : > { %v1295_v42 = vadd.f32 %v1294_v37, %v1276_v38  ;;  %v1259_v44 = vadd.f32 %v1258_v40, %v1239_v39  ;;  %v334_v40 = vld [vmem:[#allocation2 + $0x78] sm:$0xff] }
 0x104   : > { %v1457_v43 = vadd.f32 %v1295_v42, %v321_v41 }
 0x106   : > { %1473 = vst [vmem:[#allocation2] sm:$0xff] %v1457_v43  ;;  %v1277_v45 = vpop.f32.mrf.mxu2 }
 0x107   : > { %v1278_v47 = vadd.f32 %v1277_v45, %v1259_v44 }
 0x108   : > { %v1261_v49 = vpop.f32.mrf.mxu1 }
 0x109   : > { %v1296_v46 = vpop.f32.mrf.mxu3  ;;  %v1242_v48 = vpop.f32.mrf.mxu0 }
 0x10a   : > { %v1297_v51 = vadd.f32 %v1296_v46, %v1278_v47  ;;  %v1262_v54 = vadd.f32 %v1261_v49, %v1242_v48  ;;  %v323_v49 = vld [vmem:[#allocation2 + $0x18] sm:$0xff] }
 0x10c   : > { %v1461_v52 = vadd.f32 %v1297_v51, %v325_v50 }
 0x10e   : > { %1477 = vst [vmem:[#allocation2 + $0x68] sm:$0xff] %v1461_v52  ;;  %v1280_v55 = vpop.f32.mrf.mxu2 }
 0x10f   : > { %v1281_v58 = vadd.f32 %v1280_v55, %v1262_v54 }
 0x110   : > { %v1263_v0 = vpop.f32.mrf.mxu1 }
 0x111   : > { %v1299_v56 = vpop.f32.mrf.mxu3  ;;  %v1244_v61 = vpop.f32.mrf.mxu0 }
 0x112   : > { %v1300_v4 = vadd.f32 %v1299_v56, %v1281_v58  ;;  %v1264_v6 = vadd.f32 %v1263_v0, %v1244_v61  ;;  %v327_v58 = vld [vmem:[#allocation2 + $0x48] sm:$0xff] }
 0x114   : > { %v1465_v5 = vadd.f32 %v1300_v4, %v329_v3 }
 0x116   : > { %1481 = vst [vmem:[#allocation2 + $0x20] sm:$0xff] %v1465_v5  ;;  %v1282_v7 = vpop.f32.mrf.mxu2 }
 0x117   : > { %v1283_v9 = vadd.f32 %v1282_v7, %v1264_v6 }
 0x118   : > { %v1332_v10 = vpop.f32.mrf.mxu1 }
 0x119   : > { %v1301_v8 = vpop.f32.mrf.mxu3  ;;  %v1313_v57 = vpop.f32.mrf.mxu0 }
 0x11a   : > { %v1302_v11 = vadd.f32 %v1301_v8, %v1283_v9  ;;  %v1333_v12 = vadd.f32 %v1332_v10, %v1313_v57  ;;  %v331_v9 = vld [vmem:[#allocation2 + $0x38] sm:$0xff] }
 0x11c   : > { %v1469_v63 = vadd.f32 %v1302_v11, %v333_v62 }
 0x11e   : > { %1485 = vst [vmem:[#allocation2 + $0x70] sm:$0xff] %v1469_v63  ;;  %v1351_v2 = vpop.f32.mrf.mxu2 }
 0x11f   : > { %v1352_v13 = vadd.f32 %v1351_v2, %v1333_v12 }
 0x120   : > { %v1334_v14 = vpop.f32.mrf.mxu1 }
 0x121   : > { %v1370_v53 = vpop.f32.mrf.mxu3  ;;  %v1315_v59 = vpop.f32.mrf.mxu0 }
 0x122   : > { %v1371_v15 = vadd.f32 %v1370_v53, %v1352_v13  ;;  %v1335_v16 = vadd.f32 %v1334_v14, %v1315_v59  ;;  %v335_v53 = vld [vmem:[#allocation2 + $0x28] sm:$0xff] }
 0x124   : > { %v1458_v1 = vadd.f32 %v1371_v15, %v322_v60 }
 0x126   : > { %1474 = vst [vmem:[#allocation2 + $0x58] sm:$0xff] %v1458_v1  ;;  %v1353_v17 = vpop.f32.mrf.mxu2 }
 0x127   : > { %v1354_v19 = vadd.f32 %v1353_v17, %v1335_v16 }
 0x128   : > { %v1337_v21 = vpop.f32.mrf.mxu1 }
 0x129   : > { %v1372_v18 = vpop.f32.mrf.mxu3  ;;  %v1318_v20 = vpop.f32.mrf.mxu0 }
 0x12a   : > { %v1373_v23 = vadd.f32 %v1372_v18, %v1354_v19  ;;  %v1338_v25 = vadd.f32 %v1337_v21, %v1318_v20 }
 0x12c   : > { %v1462_v24 = vadd.f32 %v1373_v23, %v326_v22 }
 0x12e   : > { %1478 = vst [vmem:[#allocation2 + $0x8] sm:$0xff] %v1462_v24  ;;  %v1356_v26 = vpop.f32.mrf.mxu2 }
 0x12f   : > { %v1357_v28 = vadd.f32 %v1356_v26, %v1338_v25 }
 0x130   : > { %v1339_v30 = vpop.f32.mrf.mxu1 }
 0x131   : > { %v1375_v27 = vpop.f32.mrf.mxu3  ;;  %v1320_v29 = vpop.f32.mrf.mxu0 }
 0x132   : > { %v1376_v32 = vadd.f32 %v1375_v27, %v1357_v28  ;;  %v1340_v34 = vadd.f32 %v1339_v30, %v1320_v29 }
 0x134   : > { %v1466_v33 = vadd.f32 %v1376_v32, %v330_v31 }
 0x136   : > { %1482 = vst [vmem:[#allocation2 + $0x10] sm:$0xff] %v1466_v33  ;;  %v1358_v35 = vpop.f32.mrf.mxu2 }
 0x137   : > { %v1359_v37 = vadd.f32 %v1358_v35, %v1340_v34 }
 0x138   : > { %v1408_v39 = vpop.f32.mrf.mxu1 }
 0x139   : > { %v1377_v36 = vpop.f32.mrf.mxu3  ;;  %v1389_v38 = vpop.f32.mrf.mxu0 }
 0x13a   : > { %v1378_v41 = vadd.f32 %v1377_v36, %v1359_v37  ;;  %v1409_v43 = vadd.f32 %v1408_v39, %v1389_v38 }
 0x13c   : > { %v1470_v42 = vadd.f32 %v1378_v41, %v334_v40 }
 0x13e   : > { %1486 = vst [vmem:[#allocation2 + $0x78] sm:$0xff] %v1470_v42  ;;  %v1427_v44 = vpop.f32.mrf.mxu2 }
 0x13f   : > { %v1428_v46 = vadd.f32 %v1427_v44, %v1409_v43 }
 0x140   : > { %v1410_v48 = vpop.f32.mrf.mxu1 }
 0x141   : > { %v1446_v45 = vpop.f32.mrf.mxu3  ;;  %v1391_v47 = vpop.f32.mrf.mxu0 }
 0x142   : > { %v1447_v50 = vadd.f32 %v1446_v45, %v1428_v46  ;;  %v1411_v52 = vadd.f32 %v1410_v48, %v1391_v47 }
 0x144   : > { %v1459_v51 = vadd.f32 %v1447_v50, %v323_v49 }
 0x146   : > { %1475 = vst [vmem:[#allocation2 + $0x18] sm:$0xff] %v1459_v51  ;;  %v1429_v54 = vpop.f32.mrf.mxu2 }
 0x147   : > { %v1430_v56 = vadd.f32 %v1429_v54, %v1411_v52 }
 0x148   : > { %v1413_v0 = vpop.f32.mrf.mxu1 }
 0x149   : > { %v1448_v55 = vpop.f32.mrf.mxu3  ;;  %v1394_v61 = vpop.f32.mrf.mxu0 }
 0x14a   : > { %v1449_v3 = vadd.f32 %v1448_v55, %v1430_v56  ;;  %v1414_v5 = vadd.f32 %v1413_v0, %v1394_v61 }
 0x14c   : > { %v1463_v4 = vadd.f32 %v1449_v3, %v327_v58 }
 0x14e   : > { %1479 = vst [vmem:[#allocation2 + $0x48] sm:$0xff] %v1463_v4  ;;  %v1432_v6 = vpop.f32.mrf.mxu2 }
 0x14f   : > { %v1433_v8 = vadd.f32 %v1432_v6, %v1414_v5 }
 0x150   : > { %v1415_v62 = vpop.f32.mrf.mxu1 }
 0x151   : > { %v1451_v7 = vpop.f32.mrf.mxu3  ;;  %v1396_v10 = vpop.f32.mrf.mxu0 }
 0x152   : > { %v1452_v57 = vadd.f32 %v1451_v7, %v1433_v8  ;;  %v1416_v63 = vadd.f32 %v1415_v62, %v1396_v10 }
 0x154   : > { %v1467_v11 = vadd.f32 %v1452_v57, %v331_v9 }
 0x156   : > { %1483 = vst [vmem:[#allocation2 + $0x38] sm:$0xff] %v1467_v11  ;;  %v1434_v12 = vpop.f32.mrf.mxu2 }
 0x157   : > { %v1435_v2 = vadd.f32 %v1434_v12, %v1416_v63 }
 0x159   : > { %v1453_v13 = vpop.f32.mrf.mxu3 }
 0x15a   : > { %v1454_v59 = vadd.f32 %v1453_v13, %v1435_v2  ;;  %1491 = sbr.rel (%p2340_p11) target bundleno = 383 (0x17f), region = 59 }
 0x15c   : > { %v1471_v14 = vadd.f32 %v1454_v59, %v335_v53 }
 0x15e   : > { %1487 = vst [vmem:[#allocation2 + $0x28] sm:$0xff] %v1471_v14 }
 0x15f   : > { %v1492_v60 = vld [vmem:[#allocation2 + $0x30] sm:$0xff]  ;;  %v1493_v15 = vld [vmem:[#allocation2] sm:$0xff]  ;;  %v1494_v1 = vld [vmem:[#allocation2 + $0x58] sm:$0xff]  ;;  %vm1567_vm0 = vcmask 1040384   ;;  %vm1569_vm1 = vcmask 1042434   ;;  %vm1571_vm2 = vcmask 1041408  }
 0x160   : > { %1508 = vst [vmem:[%s3043_s2] sm:$0xff] %v1492_v60  ;;  %v1579_v16 = vmul.f32 %v1492_v60, %v1492_v60  ;;  %v1580_v17 = vmul.f32 %v1493_v15, %v1493_v15  ;;  %v1581_v18 = vmul.f32 %v1494_v1, %v1494_v1  ;;  %v1495_v19 = vld [vmem:[#allocation2 + $0x18] sm:$0xff]  ;;  %v1496_v20 = vld [vmem:[#allocation2 + $0x50] sm:$0xff]  ;;  %v1497_v21 = vld [vmem:[#allocation2 + $0x68] sm:$0xff] }
 0x161   : > { %1509 = vst [vmem:[%s3043_s2 + $0x8] sm:$0xff] %v1493_v15  ;;  %v1582_v22 = vmul.f32 %v1495_v19, %v1495_v19  ;;  %v1524_v23 = vadd.f32 %v1496_v20, %v1492_v60  ;;  %v1583_v24 = vmul.f32 %v1496_v20, %v1496_v20  ;;  %v1533_v25 = vadd.f32 %v1497_v21, %v1493_v15  ;;  %v1498_v26 = vld [vmem:[#allocation2 + $0x8] sm:$0xff]  ;;  %v1500_v28 = vld [vmem:[#allocation2 + $0x40] sm:$0xff]  ;;  %v1502_v34 = vld [vmem:[#allocation2 + $0x10] sm:$0xff] }
 0x162   : > { %v1499_v27 = vld [vmem:[#allocation2 + $0x48] sm:$0xff]  ;;  %1510 = vst [vmem:[%s3043_s2 + $0x10] sm:$0xff] %v1494_v1  ;;  %v1584_v29 = vmul.f32 %v1497_v21, %v1497_v21  ;;  %v1542_v30 = vadd.f32 %v1498_v26, %v1494_v1  ;;  %v1585_v31 = vmul.f32 %v1498_v26, %v1498_v26  ;;  %v1501_v33 = vld [vmem:[#allocation2 + $0x20] sm:$0xff]  ;;  %v1587_v38 = vmul.f32 %v1500_v28, %v1500_v28  ;;  %v1503_v39 = vld [vmem:[#allocation2 + $0x38] sm:$0xff] }
 0x163   : > { %v1551_v32 = vadd.f32 %v1499_v27, %v1495_v19  ;;  %1511 = vst [vmem:[%s3043_s2 + $0x18] sm:$0xff] %v1495_v19  ;;  %v1595_v35 = vadd.f32 %v1583_v24, %v1579_v16  ;;  %v1586_v36 = vmul.f32 %v1499_v27, %v1499_v27  ;;  %v1525_v37 = vadd.f32 %v1524_v23, %v1500_v28  ;;  %v1504_v44 = vld [vmem:[#allocation2 + $0x60] sm:$0xff]  ;;  %v1505_v45 = vld [vmem:[#allocation2 + $0x70] sm:$0xff]  ;;  %v1506_v50 = vld [vmem:[#allocation2 + $0x78] sm:$0xff] }
 0x164   : > { %1512 = vst [vmem:[%s3043_s2 + $0x20] sm:$0xff] %v1496_v20  ;;  %v1604_v40 = vadd.f32 %v1584_v29, %v1580_v17  ;;  %v1613_v41 = vadd.f32 %v1585_v31, %v1581_v18  ;;  %v1534_v42 = vadd.f32 %v1533_v25, %v1501_v33  ;;  %v1588_v43 = vmul.f32 %v1501_v33, %v1501_v33 }
 0x165   : > { %1513 = vst [vmem:[%s3043_s2 + $0x28] sm:$0xff] %v1497_v21  ;;  %v1622_v46 = vadd.f32 %v1586_v36, %v1582_v22  ;;  %v1596_v47 = vadd.f32 %v1595_v35, %v1587_v38  ;;  %v1543_v48 = vadd.f32 %v1542_v30, %v1502_v34  ;;  %v1589_v49 = vmul.f32 %v1502_v34, %v1502_v34  ;;  %v1507_v3 = vld [vmem:[#allocation2 + $0x28] sm:$0xff] }
 0x166   : > { %1514 = vst [vmem:[%s3043_s2 + $0x30] sm:$0xff] %v1498_v26  ;;  %v1605_v51 = vadd.f32 %v1604_v40, %v1588_v43  ;;  %v1552_v52 = vadd.f32 %v1551_v32, %v1503_v39  ;;  %v1590_v54 = vmul.f32 %v1503_v39, %v1503_v39  ;;  %v1526_v55 = vadd.f32 %v1525_v37, %v1504_v44 }
 0x167   : > { %1515 = vst [vmem:[%s3043_s2 + $0x38] sm:$0xff] %v1499_v27  ;;  %v1614_v56 = vadd.f32 %v1613_v41, %v1589_v49  ;;  %v1591_v58 = vmul.f32 %v1504_v44, %v1504_v44  ;;  %v1535_v61 = vadd.f32 %v1534_v42, %v1505_v45  ;;  %v1592_v0 = vmul.f32 %v1505_v45, %v1505_v45 }
 0x168   : > { %1516 = vst [vmem:[%s3043_s2 + $0x40] sm:$0xff] %v1500_v28  ;;  %v1623_v4 = vadd.f32 %v1622_v46, %v1590_v54  ;;  %v1527_v5 = vrot.slane %v1526_v55, 4  ;;  %v1544_v6 = vadd.f32 %v1543_v48, %v1506_v50  ;;  %v1593_v7 = vmul.f32 %v1506_v50, %v1506_v50 }
 0x169   : > { %1517 = vst [vmem:[%s3043_s2 + $0x48] sm:$0xff] %v1501_v33  ;;  %v1597_v8 = vadd.f32 %v1596_v47, %v1591_v58  ;;  %v1536_v9 = vrot.slane %v1535_v61, 4  ;;  %v1606_v57 = vadd.f32 %v1605_v51, %v1592_v0  ;;  %v1553_v10 = vadd.f32 %v1552_v52, %v1507_v3 }
 0x16a   : > { %1518 = vst [vmem:[%s3043_s2 + $0x50] sm:$0xff] %v1502_v34  ;;  %v1528_v62 = vadd.f32 %v1527_v5, %v1526_v55  ;;  %v1545_v11 = vrot.slane %v1544_v6, 4  ;;  %v1615_v63 = vadd.f32 %v1614_v56, %v1593_v7  ;;  %v1594_v12 = vmul.f32 %v1507_v3, %v1507_v3 }
 0x16b   : > { %1519 = vst [vmem:[%s3043_s2 + $0x58] sm:$0xff] %v1503_v39  ;;  %v1598_v2 = vrot.slane %v1597_v8, 4  ;;  %v1537_v53 = vadd.f32 %v1536_v9, %v1535_v61  ;;  %v1607_v13 = vrot.slane %v1606_v57, 4  ;;  %v1554_v59 = vrot.slane %v1553_v10, 4 }
 0x16c   : > { %1520 = vst [vmem:[%s3043_s2 + $0x60] sm:$0xff] %v1504_v44  ;;  %v1529_v14 = vrot.slane %v1528_v62, 2  ;;  %v1546_v60 = vadd.f32 %v1545_v11, %v1544_v6  ;;  %v1616_v15 = vrot.slane %v1615_v63, 4  ;;  %v1624_v1 = vadd.f32 %v1623_v4, %v1594_v12 }
 0x16d   : > { %v1599_v16 = vadd.f32 %v1598_v2, %v1597_v8  ;;  %1521 = vst [vmem:[%s3043_s2 + $0x68] sm:$0xff] %v1505_v45  ;;  %v1538_v17 = vrot.slane %v1537_v53, 2  ;;  %v1608_v18 = vadd.f32 %v1607_v13, %v1606_v57  ;;  %v1555_v19 = vadd.f32 %v1554_v59, %v1553_v10 }
 0x16e   : > { %v1530_v20 = vadd.f32 %v1529_v14, %v1528_v62  ;;  %1522 = vst [vmem:[%s3043_s2 + $0x70] sm:$0xff] %v1506_v50  ;;  %v1547_v21 = vrot.slane %v1546_v60, 2  ;;  %v1617_v22 = vadd.f32 %v1616_v15, %v1615_v63  ;;  %v1625_v23 = vrot.slane %v1624_v1, 4 }
 0x16f   : > { %v1600_v24 = vrot.slane %v1599_v16, 2  ;;  %v1539_v25 = vadd.f32 %v1538_v17, %v1537_v53  ;;  %v1609_v26 = vrot.slane %v1608_v18, 2  ;;  %1523 = vst [vmem:[%s3043_s2 + $0x78] sm:$0xff] %v1507_v3  ;;  %v1556_v27 = vrot.slane %v1555_v19, 2 }
 0x170   : > { %v1548_v28 = vadd.f32 %v1547_v21, %v1546_v60  ;;  %v1618_v29 = vrot.slane %v1617_v22, 2  ;;  %v1626_v30 = vadd.f32 %v1625_v23, %v1624_v1  ;;  %v1531_v31 = vrot.slane %v1530_v20, 1 }
 0x171   : > { %v1557_v32 = vadd.f32 %v1556_v27, %v1555_v19  ;;  %v1540_v33 = vrot.slane %v1539_v25, 1  ;;  %v1601_v34 = vadd.f32 %v1600_v24, %v1599_v16  ;;  %v1610_v38 = vadd.f32 %v1609_v26, %v1608_v18 }
 0x172   : > { %v1627_v35 = vrot.slane %v1626_v30, 2  ;;  %v1532_v36 = vadd.f32 %v1531_v31, %v1530_v20  ;;  %v1549_v37 = vrot.slane %v1548_v28, 1  ;;  %v1619_v42 = vadd.f32 %v1618_v29, %v1617_v22 }
 0x173   : > { %v1541_v39 = vadd.f32 %v1540_v33, %v1539_v25  ;;  %v1558_v40 = vrot.slane %v1557_v32, 1  ;;  %v1602_v41 = vrot.slane %v1601_v34, 1  ;;  %v1574_v44 = vlaneseq }
 0x174   : > { %v1550_v43 = vadd.f32 %v1549_v37, %v1548_v28  ;;  %v1611_v45 = vrot.slane %v1610_v38, 1  ;;  %v1628_v46 = vadd.f32 %v1627_v35, %v1626_v30  ;;  %v1620_v49 = vrot.slane %v1619_v42, 1 }
 0x175   : > { %v1559_v47 = vadd.f32 %v1558_v40, %v1557_v32  ;;  %v1564_v48 = vrot.slane %v1541_v39, 7  ;;  %v1603_v51 = vadd.f32 %v1602_v41, %v1601_v34  ;;  %vm1576_vm3 = vcmp.lt.s32.totalorder %v1574_v44, 512 }
 0x176   : > { %v1565_v50 = vrot.slane %v1550_v43, 6  ;;  %v1612_v52 = vadd.f32 %v1611_v45, %v1610_v38  ;;  %v1629_v54 = vrot.slane %v1628_v46, 1  ;;  %v1621_v58 = vadd.f32 %v1620_v49, %v1619_v42 }
 0x177   : > { %v1566_v55 = vrot.slane %v1559_v47, 5  ;;  %v1568_v56 = vsel %vm1567_vm0, %v1532_v36, %v1564_v48 }
 0x178   : > { %v1630_v61 = vadd.f32 %v1629_v54, %v1628_v46  ;;  %v1635_v0 = vrot.slane %v1612_v52, 7  ;;  %v1636_v4 = vrot.slane %v1621_v58, 6 }
 0x179   : > { %v1570_v3 = vsel %vm1569_vm1, %v1565_v50, %v1566_v55 }
 0x17a   : > { %v1572_v5 = vsel %vm1571_vm2, %v1568_v56, %v1570_v3  ;;  %v1637_v6 = vrot.slane %v1630_v61, 5  ;;  %v1638_v7 = vsel %vm1567_vm0, %v1603_v51, %v1635_v0 }
 0x17b   : > { %1578 = vst.msk [vmem:[%s3044_s3] sm:$0xf] %vm1576_vm3, %v1572_v5 }
 0x17c   : > { %v1639_v8 = vsel %vm1569_vm1, %v1636_v4, %v1637_v6 }
 0x17d   : > { %v1640_v9 = vsel %vm1571_vm2, %v1638_v7, %v1639_v8 }
 0x17e   : > { %1642 = vst.msk [vmem:[%s3045_s4] sm:$0xf] %vm1576_vm3, %v1640_v9 }
 0x17f PF: > { %s15_s19 = sadd.s32 1, %s2564_s19   ;;  %s3046_s15 = smov %s2552_s16 }
 0x180   : > { %p12_p12 = scmp.ge.s32.totalorder %s15_s19, 10   ;;  %s3047_s16 = smov %s2627_s23 }
 0x181   : > { %s3048_s17 = smov %s2560_s18  ;;  %s3049_s18 = smov %s3051_s20 }
 0x182   :  { %14 = sbr.rel (!%p12_p12) target bundleno = 3 (0x3), region = 121 }

// kernel: discriminator_forward.15
= control target key start
LH: loop header
LB: loop body
LE: loop exit
PB: predicated region body
PF: predicated region fallthrough
CT: control target
= control target key end

     0   :  { %s984_s12 = smov 0   ;;  %s986_s13 = smov 0   ;;  %s1104_s0 = inlined_call_operand.vmem [shape: bf16[16,8192], index: 0, kind: input, shape index: {}]   ;;  %s1105_s1 = inlined_call_operand.vmem [shape: bf16[8192,128], index: 1, kind: input, shape index: {}]   ;;  %s1106_s2 = inlined_call_operand.vmem [shape: f32[1,128], index: 2, kind: input, shape index: {}]   ;;  %s1107_s3 = inlined_call_operand.vmem [shape: f32[16,128], index: 3, kind: output, shape index: {}]  }
   0x1   :  { %s988_s14 = smov 0   ;;  %s990_s15 = smov 0  }
   0x2   :  { %s992_s16 = smov 0  }
   0x3 LB: > { %s22_s17 = sadd.s32 1, %s957_s15  ;;  %p41_p1 = scmp.ne.s32.totalorder %s949_s13, %s945_s12  ;;  %s961_s16 = sphi %s992_s16, %s13_s16   ;;  %s957_s15 = sphi %s990_s15, %s1111_s15   ;;  %s953_s14 = sphi %s988_s14, %s1110_s14   ;;  %s949_s13 = sphi %s986_s13, %s1109_s13   ;;  %s945_s12 = sphi %s984_s12, %s1108_s12  }
   0x4   : > { %p23_p0 = scmp.ge.s32.totalorder %s22_s17, 16  ;;  %p42_p2 = scmp.eq.s32.totalorder %s961_s16, 0 }
   0x5   : > { %s34_s19 = sadd.s32 1, %s949_s13  ;;  %p686_p5 = scmp.ge.s32.totalorder %s961_s16, 16 }
   0x6   : > { %s1113_s17 = smov (%p23_p0, %s22_s17), 0  ;;  %p43_p3 = por %p42_p2, %p41_p1 }
   0x7   : > { %s30_s18 = ssub.s32 %s957_s15, %s1113_s17  ;;  %143 = sbr.rel (%p686_p5) target bundleno = 20 (0x14), region = 20 }
   0x8   : > { %p32_p4 = scmp.eq.s32.totalorder %s30_s18, 0 }
   0xa   : > { %s1019_s20 = scalar_select %p32_p4, %s949_s13, %s34_s19  }
   0xc   : > { %146 = sbr.rel (!%p43_p3) target bundleno = 20 (0x14), region = 24  ;;  %s148_s21 = sand.u32 (%p43_p3), 1, %s949_s13  }
   0xd   : > { %s844_s22 = sshll.u32 (%p43_p3), %s957_s15, 4  ;;  %s687_s23 = sshll.u32 (%p43_p3), %s148_s21, 5 }
   0xe   : > { %s156_s26 = scalar_lea.vmem (%p43_p3), %s1104_s0, %s844_s22  ;;  %s150_s27 = scalar_lea.vmem (%p43_p3), [#allocation3], %s687_s23 }
   0xf   : > { %v169_v0 = vld [vmem:[%s156_s26] sm:$0xff] (%p43_p3)  ;;  %v171_v1 = vld [vmem:[%s156_s26 + $0x8] sm:$0xff] (%p43_p3) }
  0x10   : > { %v173_v2 = vld [vmem:[%s156_s26 + $0x100] sm:$0xff] (%p43_p3)  ;;  %170 = vst [vmem:[%s150_s27] sm:$0xff] (%p43_p3), %v169_v0  ;;  %v175_v3 = vld [vmem:[%s156_s26 + $0x108] sm:$0xff] (%p43_p3) }
  0x11   : > { %172 = vst [vmem:[%s150_s27 + $0x8] sm:$0xff] %v171_v1 }
  0x12   : > { %174 = vst [vmem:[%s150_s27 + $0x10] sm:$0xff] %v173_v2 }
  0x13   : > { %176 = vst [vmem:[%s150_s27 + $0x18] sm:$0xff] %v175_v3 }
  0x14 PF: > { %p690_p6 = scmp.ge.s32.totalorder %s961_s16, 1  ;;  %p190_p7 = scmp.lt.s32.totalorder %s961_s16, 17 }
  0x16   : > { %p191_p8 = pnand %p690_p6, %p190_p7 }
  0x17   : > { %s197_s28 = sand.u32 (!%p191_p8), 1, %s945_s12   ;;  %s692_s29 = sshll.u32 (!%p191_p8), %s953_s14, 6 }
  0x18   : > { %194 = sbr.rel (%p191_p8) target bundleno = 228 (0xe4), region = 51  ;;  %s691_s30 = sshll.u32 (!%p191_p8), %s197_s28, 5 }
  0x19   : > { %p228_p9 = scmp.lt.s32.totalorder (!%p191_p8), %s692_s29, 1023  ;;  %s1036_s8 = scalar_lea.vmem (!%p191_p8), [#allocation3], %s691_s30 }
  0x1a   : > { %p694_p10 = scmp.ne.s32.totalorder (!%p191_p8), %s953_s14, 0 }
  0x1d   : > { %s1115_s29 = smov (!%p228_p9, %s692_s29), 1023  ;;  %242 = sbr.rel (%p694_p10) target bundleno = 37 (0x25), region = 59 }
  0x1e   : > { %s693_s4 = sshll.u32 %s1115_s29, 2 }
  0x1f   : > { %s1034_s7 = scalar_lea.vmem %s1105_s1, %s693_s4 }
  0x22   : > { %v963_v4 = vmov 0.0  }
  0x23   : > { %243 = vst [vmem:[#allocation2] sm:$0xff] %v963_v4 }
  0x24   : > { %244 = vst [vmem:[#allocation2 + $0x8] sm:$0xff] %v963_v4 }
  0x25 PF: > { %v856_v5 = vld [vmem:[%s1034_s7 + $0x38] sm:$0xff]  ;;  %v855_v9 = vld [vmem:[%s1034_s7 + $0x30] sm:$0xff]  ;;  %v854_v13 = vld [vmem:[%s1034_s7 + $0x28] sm:$0xff]  ;;  %p839_p11 = scmp.ne.s32.totalorder %s953_s14, 15 }
  0x26   : > { %v864_v6 = vld [vmem:[%s1034_s7 + $0x78] sm:$0xff]  ;;  %527 = vmatpush.bf16.msra.mxu0 %v856_v5  ;;  %v863_v10 = vld [vmem:[%s1034_s7 + $0x70] sm:$0xff]  ;;  %v862_v14 = vld [vmem:[%s1034_s7 + $0x68] sm:$0xff] }
  0x27   : > { %v872_v7 = vld [vmem:[%s1034_s7 + $0xb8] sm:$0xff]  ;;  %541 = vmatpush.bf16.msra.mxu1 %v864_v6  ;;  %v871_v11 = vld [vmem:[%s1034_s7 + $0xb0] sm:$0xff]  ;;  %v870_v15 = vld [vmem:[%s1034_s7 + $0xa8] sm:$0xff] }
  0x28   : > { %v880_v8 = vld [vmem:[%s1034_s7 + $0xf8] sm:$0xff]  ;;  %555 = vmatpush.bf16.msra.mxu2 %v872_v7  ;;  %v879_v12 = vld [vmem:[%s1034_s7 + $0xf0] sm:$0xff]  ;;  %v878_v16 = vld [vmem:[%s1034_s7 + $0xe8] sm:$0xff] }
  0x29   : > { %569 = vmatpush.bf16.msra.mxu3 %v880_v8  ;;  %v853_v17 = vld [vmem:[%s1034_s7 + $0x20] sm:$0xff]  ;;  %v852_v21 = vld [vmem:[%s1034_s7 + $0x18] sm:$0xff]  ;;  %v851_v25 = vld [vmem:[%s1034_s7 + $0x10] sm:$0xff] }
  0x2a   : > { %528 = vmatpush.bf16.msra.mxu0 %v855_v9  ;;  %v861_v18 = vld [vmem:[%s1034_s7 + $0x60] sm:$0xff]  ;;  %v860_v22 = vld [vmem:[%s1034_s7 + $0x58] sm:$0xff]  ;;  %v859_v26 = vld [vmem:[%s1034_s7 + $0x50] sm:$0xff] }
  0x2b   : > { %542 = vmatpush.bf16.msra.mxu1 %v863_v10  ;;  %v869_v19 = vld [vmem:[%s1034_s7 + $0xa0] sm:$0xff]  ;;  %v868_v23 = vld [vmem:[%s1034_s7 + $0x98] sm:$0xff]  ;;  %v867_v27 = vld [vmem:[%s1034_s7 + $0x90] sm:$0xff] }
  0x2c   : > { %556 = vmatpush.bf16.msra.mxu2 %v871_v11  ;;  %v877_v20 = vld [vmem:[%s1034_s7 + $0xe0] sm:$0xff]  ;;  %v876_v24 = vld [vmem:[%s1034_s7 + $0xd8] sm:$0xff]  ;;  %v875_v28 = vld [vmem:[%s1034_s7 + $0xd0] sm:$0xff] }
  0x2d   : > { %570 = vmatpush.bf16.msra.mxu3 %v879_v12  ;;  %v850_v29 = vld [vmem:[%s1034_s7 + $0x8] sm:$0xff]  ;;  %v849_v33 = vld [vmem:[%s1034_s7] sm:$0xff]  ;;  %v697_v37 = vld [vmem:[%s1036_s8] sm:$0xf] }
  0x2e   : > { %529 = vmatpush.bf16.msra.mxu0 %v854_v13  ;;  %v858_v30 = vld [vmem:[%s1034_s7 + $0x48] sm:$0xff]  ;;  %v857_v34 = vld [vmem:[%s1034_s7 + $0x40] sm:$0xff]  ;;  %v845_v39 = vld [vmem:[%s1036_s8 + $0x4] sm:$0xf] }
  0x2f   : > { %543 = vmatpush.bf16.msra.mxu1 %v862_v14  ;;  %v866_v31 = vld [vmem:[%s1034_s7 + $0x88] sm:$0xff]  ;;  %v865_v35 = vld [vmem:[%s1034_s7 + $0x80] sm:$0xff]  ;;  %v705_v41 = vld [vmem:[%s1036_s8 + $0x8] sm:$0xf] }
  0x30   : > { %557 = vmatpush.bf16.msra.mxu2 %v870_v15  ;;  %v874_v32 = vld [vmem:[%s1034_s7 + $0xc8] sm:$0xff]  ;;  %v873_v36 = vld [vmem:[%s1034_s7 + $0xc0] sm:$0xff]  ;;  %v846_v43 = vld [vmem:[%s1036_s8 + $0xc] sm:$0xf] }
  0x31   : > { %571 = vmatpush.bf16.msra.mxu3 %v878_v16  ;;  %v847_v38 = vld [vmem:[%s1036_s8 + $0xc] sm:$0xf0]  ;;  %v699_v40 = vld [vmem:[%s1036_s8 + $0x10] sm:$0xf0]  ;;  %v848_v42 = vld [vmem:[%s1036_s8 + $0x14] sm:$0xf0] }
  0x32   : > { %530 = vmatpush.bf16.msra.mxu0 %v853_v17  ;;  %v707_v44 = vld [vmem:[%s1036_s8 + $0x18] sm:$0xf0]  ;;  %v698_v45 = vor.u32 %v847_v38, %v697_v37  ;;  %v702_v46 = vor.u32 %v845_v39, %v699_v40  ;;  %v706_v47 = vor.u32 %v848_v42, %v705_v41  ;;  %v245_v55 = vld [vmem:[#allocation2] sm:$0xff] }
  0x33   : > { %544 = vmatpush.bf16.msra.mxu1 %v861_v18  ;;  %v710_v48 = vor.u32 %v846_v43, %v707_v44  ;;  %v246_v63 = vld [vmem:[#allocation2 + $0x8] sm:$0xff] }
  0x34   : > { %558 = vmatpush.bf16.msra.mxu2 %v869_v19 }
  0x35   : > { %572 = vmatpush.bf16.msra.mxu3 %v877_v20 }
  0x36   : > { %531 = vmatpush.bf16.msra.mxu0 %v852_v21 }
  0x37   : > { %545 = vmatpush.bf16.msra.mxu1 %v860_v22 }
  0x38   : > { %559 = vmatpush.bf16.msra.mxu2 %v868_v23 }
  0x39   : > { %573 = vmatpush.bf16.msra.mxu3 %v876_v24 }
  0x3a   : > { %532 = vmatpush.bf16.msra.mxu0 %v851_v25 }
  0x3b   : > { %546 = vmatpush.bf16.msra.mxu1 %v859_v26 }
  0x3c   : > { %560 = vmatpush.bf16.msra.mxu2 %v867_v27 }
  0x3d   : > { %574 = vmatpush.bf16.msra.mxu3 %v875_v28 }
  0x3e   : > { %533 = vmatpush.bf16.msra.mxu0 %v850_v29 }
  0x3f   : > { %547 = vmatpush.bf16.msra.mxu1 %v858_v30 }
  0x40   : > { %561 = vmatpush.bf16.msra.mxu2 %v866_v31 }
  0x41   : > { %575 = vmatpush.bf16.msra.mxu3 %v874_v32 }
  0x42   : > { %534 = vmatpush.bf16.msra.mxu0 %v849_v33 }
  0x43   : > { %548 = vmatpush.bf16.msra.mxu1 %v857_v34 }
  0x44   : > { %562 = vmatpush.bf16.msra.mxu2 %v865_v35 }
  0x45   : > { %576 = vmatpush.bf16.msra.mxu3 %v873_v36  ;;  %535 = vmatmul.bf16.vlgmr.msra.gmra.mxu0 %v698_v45 }
  0x46   : > { %549 = vmatmul.bf16.vlgmr.msra.gmra.mxu1 %v702_v46 }
  0x47   : > { %563 = vmatmul.bf16.vlgmr.msra.gmra.mxu2 %v706_v47 }
  0x48   : > { %577 = vmatmul.bf16.vlgmr.msra.gmra.mxu3 %v710_v48 }
  0xc2   : > { %v536_v49 = vpop.f32.mrf.mxu0 }
  0xc3   : > { %v550_v50 = vpop.f32.mrf.mxu1 }
  0xc4   : > { %v551_v51 = vadd.f32 %v550_v50, %v536_v49 }
  0xca   : > { %v564_v52 = vpop.f32.mrf.mxu2  ;;  %v538_v57 = vpop.f32.mrf.mxu0 }
  0xcb   : > { %v578_v53 = vpop.f32.mrf.mxu3  ;;  %v565_v54 = vadd.f32 %v564_v52, %v551_v51  ;;  %v552_v58 = vpop.f32.mrf.mxu1 }
  0xcc   : > { %v553_v60 = vadd.f32 %v552_v58, %v538_v57 }
  0xcd   : > { %v579_v56 = vadd.f32 %v578_v53, %v565_v54 }
  0xcf   : > { %v583_v59 = vadd.f32 %v579_v56, %v245_v55 }
  0xd1   : > { %585 = vst [vmem:[#allocation2] sm:$0xff] %v583_v59 }
  0xd2   : > { %v566_v61 = vpop.f32.mrf.mxu2 }
  0xd3   : > { %v567_v62 = vadd.f32 %v566_v61, %v553_v60  ;;  %v580_v0 = vpop.f32.mrf.mxu3 }
  0xd5   : > { %v581_v1 = vadd.f32 %v580_v0, %v567_v62  ;;  %590 = sbr.rel (%p839_p11) target bundleno = 228 (0xe4), region = 63 }
  0xd7   : > { %v584_v2 = vadd.f32 %v581_v1, %v246_v63 }
  0xd9   : > { %586 = vst [vmem:[#allocation2 + $0x8] sm:$0xff] %v584_v2 }
  0xda   : > { %v591_v3 = vld [vmem:[#allocation2] sm:$0xff] }
  0xdb   : > { %v922_v4 = vld [vmem:[%s1106_s2] ss:$0 sm:$0xff] }
  0xdc   : > { %v597_v6 = vadd.f32 %v922_v4, %v591_v3 }
  0xde   : > { %599 = vst [vmem:[%s1107_s3] sm:$0xff] %v597_v6 }
  0xe0   : > { %v592_v5 = vld [vmem:[#allocation2 + $0x8] sm:$0xff] }
  0xe1   : > { %v598_v7 = vadd.f32 %v922_v4, %v592_v5 }
  0xe3   : > { %600 = vst [vmem:[%s1107_s3 + $0x8] sm:$0xff] %v598_v7 }
  0xe4 PF: > { %s13_s16 = sadd.s32 1, %s961_s16   ;;  %s1108_s12 = smov %s949_s13 }
  0xe5   : > { %p10_p12 = scmp.ge.s32.totalorder %s13_s16, 18   ;;  %s1109_s13 = smov %s1019_s20 }
  0xe6   : > { %s1110_s14 = smov %s957_s15  ;;  %s1111_s15 = smov %s1113_s17 }
  0xe7   :  { %12 = sbr.rel (!%p10_p12) target bundleno = 3 (0x3), region = 101 }

</bundles_post_ra>
